<compile_context>
chip_gen: v5e
topology: v5e:2x2
jax: 0.10.0
libtpu: 0.0.40
codegen_flags: <defaults>
</compile_context>

<pallas_src>
import math

import jax
import jax.numpy as jnp
from jax.experimental import pallas as pl
from jax.experimental.pallas import tpu as pltpu

# ---------------- model hyper-params (small, consistent with the module) ----
B = 2            # batch
S_TGT = 8        # target sequence length
S_MEM = 8        # memory (encoder) sequence length
D = 32           # n_dim
H = 4            # n_heads
DH = D // H      # per-head dim
D_FF = D         # PositionWiseFeedForward(n_dim, n_dim)
NBLK = 2         # n_decoder_blocks
VOCAB = 32       # vocab_size
EPS = 1e-5       # nn.LayerNorm default eps

BS = B * S_TGT                    # folded batch*seq rows
N_VEC = 10                        # packed (1, D) vectors per block in `tab`
ROWS = VOCAB + BS + NBLK * N_VEC  # emb table + tiled PE + per-block vectors


# --------------------------------- kernel -----------------------------------
def _layernorm(y, g, b):
    # single-pass variance: mean(x*x) - mu*mu (one fewer VALU pass)
    mu = jnp.mean(y, axis=-1, keepdims=True)
    ms = jnp.mean(y * y, axis=-1, keepdims=True)
    var = ms - mu * mu
    return (y - mu) * jax.lax.rsqrt(var + EPS) * g + b


def decoder_kernel(ids_ref, mem_ref, mask_ref, tab_ref, qkv_ref, qkvb_ref,
                   wo_ref, ff_ref, out_ref):
    ids = ids_ref[...]               # (B*S_TGT, 1) int32 token ids
    mem = mem_ref[...]               # (B*S_MEM, D) encoder memory (stacked)
    mask = mask_ref[...]             # (S_TGT, S_TGT) additive float mask
    tab = tab_ref[...]               # (ROWS, D) packed vectors / tables

    # loop-invariant: per-head sublane-stacked additive mask (hoisted once)
    mask_h = jnp.concatenate([mask] * H, axis=0)          # (H*S_TGT, S_TGT)

    # ---- embedding (one-hot matmul on the MXU) + positional encoding -------
    onehot = (jax.lax.broadcasted_iota(jnp.int32, (BS, VOCAB), 1) == ids
              ).astype(jnp.float32)
    x = jnp.dot(onehot, tab[0:VOCAB, :], preferred_element_type=jnp.float32)
    x = x + tab[VOCAB:VOCAB + BS, :]         # PE pre-tiled over batch on host

    def attention(q_in, kv_in, idx, is_self, add_mask):
        """Multi-head attention, batch-folded, lane-dense weights.

        qkv_ref[idx] : (D, 3D) fused [Wq*scale | Wk | Wv]
        qkvb_ref[idx]: (1, 3D) fused [bq*scale | bk | bv]
        wo_ref[idx]  : (D, D)  output projection
        Only the 8x8 score / P@V matmuls are per-(batch, head).
        """
        w = qkv_ref[idx]
        bias = qkvb_ref[idx]
        if is_self:
            qkv = jnp.dot(q_in, w, preferred_element_type=jnp.float32) + bias
            q = qkv[:, 0:D]
            k = qkv[:, D:2 * D]
            v = qkv[:, 2 * D:3 * D]
        else:
            q = (jnp.dot(q_in, w[:, 0:D],
                         preferred_element_type=jnp.float32) + bias[:, 0:D])
            kv = (jnp.dot(kv_in, w[:, D:3 * D],
                          preferred_element_type=jnp.float32) + bias[:, D:3 * D])
            k = kv[:, 0:D]
            v = kv[:, D:2 * D]

        outs = []
        for b in range(B):
            qb = q[b * S_TGT:(b + 1) * S_TGT, :]       # aligned 8-row slice
            kb = k[b * S_MEM:(b + 1) * S_MEM, :]
            vb = v[b * S_MEM:(b + 1) * S_MEM, :]
            # per-head scores, stacked along sublanes -> one softmax reduction
            s_rows = []
            for h in range(H):
                s_rows.append(jax.lax.dot_general(
                    qb[:, h * DH:(h + 1) * DH], kb[:, h * DH:(h + 1) * DH],
                    (((1,), (1,)), ((), ())),
                    preferred_element_type=jnp.float32))
            s = jnp.concatenate(s_rows, axis=0)        # (H*S_TGT, S_MEM)
            if add_mask is not None:
                s = s + add_mask
            m = jnp.max(s, axis=-1, keepdims=True)
            e = jnp.exp(s - m)
            p = e * pl.reciprocal(jnp.sum(e, axis=-1, keepdims=True),
                                  approx=True)
            # per-head P@V, lane-concatenated back to (S_TGT, D)
            o_cols = []
            for h in range(H):
                o_cols.append(jnp.dot(p[h * S_TGT:(h + 1) * S_TGT, :],
                                      vb[:, h * DH:(h + 1) * DH],
                                      preferred_element_type=jnp.float32))
            outs.append(jnp.concatenate(o_cols, axis=-1))
        heads = jnp.concatenate(outs, axis=0)          # (B*S_TGT, D)
        # single fused output projection (bias added from `tab` by the caller)
        return jnp.dot(heads, wo_ref[idx], preferred_element_type=jnp.float32)

    for blk in range(NBLK):
        vbase = VOCAB + BS + blk * N_VEC
        row = lambda r: tab[vbase + r:vbase + r + 1, :]      # (1, D)

        # masked self-attention + residual(LayerNorm(.))
        sa = attention(x, x, blk * 2 + 0, True, mask_h) + row(0)
        x = x + _layernorm(sa, row(1), row(2))
        # cross-attention over encoder memory + residual(LayerNorm(.))
        ca = attention(x, mem, blk * 2 + 1, False, None) + row(3)
        x = x + _layernorm(ca, row(4), row(5))
        # position-wise feed-forward + residual(LayerNorm(.))
        h1 = jnp.maximum(
            jnp.dot(x, ff_ref[2 * blk],
                    preferred_element_type=jnp.float32) + row(6), 0.0)
        ff = jnp.dot(h1, ff_ref[2 * blk + 1],
                     preferred_element_type=jnp.float32) + row(7)
        x = x + _layernorm(ff, row(8), row(9))

    out_ref[...] = x


# --------------------------------- wrapper ----------------------------------
def decoder_forward(ids, memory, tgt_mask, tab, qkv_w, qkv_b, wo_w, ff_w):
    """ids: (B, S_TGT) int32, memory: (B, S_MEM, D) f32,
    tgt_mask: (S_TGT, S_TGT) additive f32 mask."""
    ids2 = ids.reshape(BS, 1).astype(jnp.int32)
    mem2 = memory.reshape(B * S_MEM, D).astype(jnp.float32)
    vmem_spec = lambda: pl.BlockSpec(memory_space=pltpu.MemorySpace.VMEM)
    out = pl.pallas_call(
        decoder_kernel,
        out_shape=jax.ShapeDtypeStruct((BS, D), jnp.float32),
        in_specs=[vmem_spec() for _ in range(8)],
        out_specs=vmem_spec(),
    )(ids2, mem2, tgt_mask, tab, qkv_w, qkv_b, wo_w, ff_w)
    return out.reshape(B, S_TGT, D)


# ---------------------- host-side parameter construction --------------------
def init_params(key):
    keys = jax.random.split(key, 64)
    kit = iter(keys)

    def lin(fan_in, fan_out):
        kw, kb = jax.random.split(next(kit))
        bound = 1.0 / math.sqrt(fan_in)
        w = jax.random.uniform(kw, (fan_in, fan_out), jnp.float32, -bound, bound)
        bvec = jax.random.uniform(kb, (fan_out,), jnp.float32, -bound, bound)
        return w, bvec

    emb = jax.random.normal(next(kit), (VOCAB, D), jnp.float32)
    emb = emb.at[0].set(0.0)           # nn.Embedding(padding_idx=0)

    blocks = []
    for _ in range(NBLK):
        p = {}
        for att in ("sa", "ca"):
            ap = {}
            for nm in ("q", "k", "v", "o"):
                w, bvec = lin(D, D)
                ap["w" + nm], ap["b" + nm] = w, bvec
            p[att] = ap
        for ln_name in ("ln1", "ln2", "ln3"):
            p[ln_name + "_g"] = 1.0 + 0.1 * jax.random.normal(next(kit), (D,), jnp.float32)
            p[ln_name + "_b"] = 0.1 * jax.random.normal(next(kit), (D,), jnp.float32)
        p["wf1"], p["bf1"] = lin(D, D_FF)
        p["wf2"], p["bf2"] = lin(D_FF, D)
        blocks.append(p)

    # sinusoidal positional encoding (first S_TGT rows of the PE buffer)
    position = jnp.arange(S_TGT, dtype=jnp.float32)[:, None]
    div_term = jnp.exp(jnp.arange(0, D, 2, dtype=jnp.float32)
                       * (-math.log(10000.0) / D))
    pe = jnp.zeros((S_TGT, D), jnp.float32)
    pe = pe.at[:, 0::2].set(jnp.sin(position * div_term))
    pe = pe.at[:, 1::2].set(jnp.cos(position * div_term))
    return emb, pe, blocks


def pack_params(emb, pe, blocks):
    """Pack all parameters into 5 lane-dense buffers (see header comment)."""
    scale = 1.0 / math.sqrt(DH)
    tab = jnp.zeros((ROWS, D), jnp.float32)
    tab = tab.at[0:VOCAB].set(emb)
    tab = tab.at[VOCAB:VOCAB + BS].set(jnp.tile(pe, (B, 1)))   # PE tiled per batch
    qkv = jnp.zeros((NBLK * 2, D, 3 * D), jnp.float32)
    qkvb = jnp.zeros((NBLK * 2, 1, 3 * D), jnp.float32)
    wo = jnp.zeros((NBLK * 2, D, D), jnp.float32)
    ffw = jnp.zeros((NBLK * 2, D, D_FF), jnp.float32)   # fc1 and fc2 (D_FF == D)
    for bi, p in enumerate(blocks):
        for ai, att in enumerate(("sa", "ca")):
            ap = p[att]
            idx = bi * 2 + ai
            # fold 1/sqrt(DH) into the Q part at pack time (no runtime scale)
            qkv = qkv.at[idx].set(jnp.concatenate(
                [ap["wq"] * scale, ap["wk"], ap["wv"]], axis=1))
            qkvb = qkvb.at[idx, 0].set(jnp.concatenate(
                [ap["bq"] * scale, ap["bk"], ap["bv"]], axis=0))
            wo = wo.at[idx].set(ap["wo"])
        vbase = VOCAB + BS + bi * N_VEC
        rows = [p["sa"]["bo"], p["ln1_g"], p["ln1_b"],
                p["ca"]["bo"], p["ln2_g"], p["ln2_b"],
                p["bf1"], p["bf2"], p["ln3_g"], p["ln3_b"]]
        for r, v in enumerate(rows):
            tab = tab.at[vbase + r].set(v)
        ffw = ffw.at[2 * bi].set(p["wf1"])
        ffw = ffw.at[2 * bi + 1].set(p["wf2"])
    return tab, qkv, qkvb, wo, ffw


# ------------------------- pure-JAX reference (sanity check) -----------------
def ref_forward(ids, memory, tgt_mask, emb, pe, blocks):
    def ln(y, g, b):
        mu = y.mean(-1, keepdims=True)
        var = ((y - mu) ** 2).mean(-1, keepdims=True)
        return (y - mu) / jnp.sqrt(var + EPS) * g + b

    def mha(q, k, v, ap, m):
        Bq, Sq, _ = q.shape
        Sk = k.shape[1]
        Q = (q @ ap["wq"] + ap["bq"]).reshape(Bq, Sq, H, DH).transpose(0, 2, 1, 3)
        K = (k @ ap["wk"] + ap["bk"]).reshape(Bq, Sk, H, DH).transpose(0, 2, 1, 3)
        V = (v @ ap["wv"] + ap["bv"]).reshape(Bq, Sk, H, DH).transpose(0, 2, 1, 3)
        s = jnp.einsum("bhqd,bhkd->bhqk", Q, K) / math.sqrt(DH)
        if m is not None:
            s = s + m[None, None]
        p = jax.nn.softmax(s, axis=-1)
        o = jnp.einsum("bhqk,bhkd->bhqd", p, V).transpose(0, 2, 1, 3)
        return o.reshape(Bq, Sq, D) @ ap["wo"] + ap["bo"]

    x = emb[ids] + pe[None]
    for p in blocks:
        sa = mha(x, x, x, p["sa"], tgt_mask)
        x = x + ln(sa, p["ln1_g"], p["ln1_b"])
        ca = mha(x, memory, memory, p["ca"], None)
        x = x + ln(ca, p["ln2_g"], p["ln2_b"])
        ff = jnp.maximum(x @ p["wf1"] + p["bf1"], 0.0) @ p["wf2"] + p["bf2"]
        x = x + ln(ff, p["ln3_g"], p["ln3_b"])
    return x


# ----------------------------------- main ------------------------------------
if __name__ == "__main__":
    key = jax.random.PRNGKey(0)
    k_ids, k_mem, k_par = jax.random.split(key, 3)

    ids = jax.random.randint(k_ids, (B, S_TGT), 0, VOCAB).astype(jnp.int32)
    memory = jax.random.normal(k_mem, (B, S_MEM, D), jnp.float32)
    causal = jnp.tril(jnp.ones((S_TGT, S_TGT), jnp.bool_))
    tgt_mask = jnp.where(causal, 0.0, -1e9).astype(jnp.float32)
    # TODO(synk): tgt/memory key-padding masks are assumed None (as in the
    # default call of the reference module).

    emb, pe, blocks = init_params(k_par)
    tab, qkv_w, qkv_b, wo_w, ff_w = pack_params(emb, pe, blocks)

    out = decoder_forward(ids, memory, tgt_mask, tab, qkv_w, qkv_b, wo_w, ff_w)
    out = jax.block_until_ready(out)

    ref = ref_forward(ids, memory, tgt_mask, emb, pe, blocks)
    max_err = float(jnp.max(jnp.abs(out - ref)))
    # tolerance absorbs the EUP approx-reciprocal softmax and MXU f32 rounding
    assert jnp.allclose(out, ref, atol=2e-2, rtol=2e-2), (
        f"mismatch vs JAX reference (max abs err {max_err})")

    print("KERNEL_OK")
</pallas_src>

<mosaic_0001>
module attributes {stable_mosaic.version = 11 : i64} {
  func.func @decoder_kernel(%arg0: memref<16x1xi32, #tpu.memory_space<vmem>>, %arg1: memref<16x32xf32, #tpu.memory_space<vmem>>, %arg2: memref<8x8xf32, #tpu.memory_space<vmem>>, %arg3: memref<68x32xf32, #tpu.memory_space<vmem>>, %arg4: memref<4x32x96xf32, #tpu.memory_space<vmem>>, %arg5: memref<4x1x96xf32, #tpu.memory_space<vmem>>, %arg6: memref<4x32x32xf32, #tpu.memory_space<vmem>>, %arg7: memref<4x32x32xf32, #tpu.memory_space<vmem>>, %arg8: memref<16x32xf32, #tpu.memory_space<vmem>>) attributes {dimension_semantics = [], scalar_prefetch = 0 : i64, scratch_operands = 0 : i64, tpu.core_type = #tpu.core_type<tc>} {
    %c0 = arith.constant 0 : index
    %c0_0 = arith.constant 0 : index
    %0 = vector.load %arg0[%c0, %c0_0] : memref<16x1xi32, #tpu.memory_space<vmem>>, vector<16x1xi32>
    %c0_1 = arith.constant 0 : index
    %c0_2 = arith.constant 0 : index
    %1 = vector.load %arg1[%c0_1, %c0_2] : memref<16x32xf32, #tpu.memory_space<vmem>>, vector<16x32xf32>
    %c0_3 = arith.constant 0 : index
    %c0_4 = arith.constant 0 : index
    %2 = vector.load %arg2[%c0_3, %c0_4] : memref<8x8xf32, #tpu.memory_space<vmem>>, vector<8x8xf32>
    %c0_5 = arith.constant 0 : index
    %c0_6 = arith.constant 0 : index
    %3 = vector.load %arg3[%c0_5, %c0_6] : memref<68x32xf32, #tpu.memory_space<vmem>>, vector<68x32xf32>
    %4 = tpu.concatenate %2, %2, %2, %2 in 0 : vector<8x8xf32>, vector<8x8xf32>, vector<8x8xf32>, vector<8x8xf32> -> vector<32x8xf32>
    %5 = tpu.iota {dimensions = array<i32: 1>} : vector<16x32xi32>
    %6 = vector.broadcast %0 : vector<16x1xi32> to vector<16x32xi32>
    %7 = arith.cmpi eq, %5, %6 : vector<16x32xi32>
    %8 = arith.extui %7 : vector<16x32xi1> to vector<16x32xi32>
    %9 = arith.sitofp %8 : vector<16x32xi32> to vector<16x32xf32>
    %10 = vector.extract_strided_slice %3 {offsets = [0, 0], sizes = [32, 32], strides = [1, 1]} : vector<68x32xf32> to vector<32x32xf32>
    %cst = arith.constant dense<0.000000e+00> : vector<16x32xf32>
    %11 = tpu.matmul %9, %10, %cst {dimension_numbers = #tpu.dot_dimension_numbers<[1], [0], [0], [1], [0, 0, 1, 1], [], []>} : vector<16x32xf32>, vector<32x32xf32>, vector<16x32xf32> -> vector<16x32xf32>
    %12 = vector.extract_strided_slice %3 {offsets = [32, 0], sizes = [16, 32], strides = [1, 1]} : vector<68x32xf32> to vector<16x32xf32>
    %13 = arith.addf %11, %12 : vector<16x32xf32>
    %c0_7 = arith.constant 0 : index
    %c0_8 = arith.constant 0 : index
    %c0_9 = arith.constant 0 : index
    %14 = vector.load %arg4[%c0_7, %c0_8, %c0_9] : memref<4x32x96xf32, #tpu.memory_space<vmem>>, vector<1x32x96xf32>
    %15 = vector.shape_cast %14 : vector<1x32x96xf32> to vector<32x96xf32>
    %c0_10 = arith.constant 0 : index
    %c0_11 = arith.constant 0 : index
    %c0_12 = arith.constant 0 : index
    %16 = vector.load %arg5[%c0_10, %c0_11, %c0_12] : memref<4x1x96xf32, #tpu.memory_space<vmem>>, vector<1x1x96xf32>
    %17 = vector.shape_cast %16 : vector<1x1x96xf32> to vector<1x96xf32>
    %cst_13 = arith.constant dense<0.000000e+00> : vector<16x96xf32>
    %18 = tpu.matmul %13, %15, %cst_13 {dimension_numbers = #tpu.dot_dimension_numbers<[1], [0], [0], [1], [0, 0, 1, 1], [], []>} : vector<16x32xf32>, vector<32x96xf32>, vector<16x96xf32> -> vector<16x96xf32>
    %19 = vector.broadcast %17 : vector<1x96xf32> to vector<16x96xf32>
    %20 = arith.addf %18, %19 : vector<16x96xf32>
    %21 = vector.extract_strided_slice %20 {offsets = [0, 0], sizes = [16, 32], strides = [1, 1]} : vector<16x96xf32> to vector<16x32xf32>
    %22 = vector.extract_strided_slice %20 {offsets = [0, 32], sizes = [16, 32], strides = [1, 1]} : vector<16x96xf32> to vector<16x32xf32>
    %23 = vector.extract_strided_slice %20 {offsets = [0, 64], sizes = [16, 32], strides = [1, 1]} : vector<16x96xf32> to vector<16x32xf32>
    %24 = vector.extract_strided_slice %21 {offsets = [0, 0], sizes = [8, 32], strides = [1, 1]} : vector<16x32xf32> to vector<8x32xf32>
    %25 = vector.extract_strided_slice %22 {offsets = [0, 0], sizes = [8, 32], strides = [1, 1]} : vector<16x32xf32> to vector<8x32xf32>
    %26 = vector.extract_strided_slice %23 {offsets = [0, 0], sizes = [8, 32], strides = [1, 1]} : vector<16x32xf32> to vector<8x32xf32>
    %27 = vector.extract_strided_slice %24 {offsets = [0, 0], sizes = [8, 8], strides = [1, 1]} : vector<8x32xf32> to vector<8x8xf32>
    %28 = vector.extract_strided_slice %25 {offsets = [0, 0], sizes = [8, 8], strides = [1, 1]} : vector<8x32xf32> to vector<8x8xf32>
    %cst_14 = arith.constant dense<0.000000e+00> : vector<8x8xf32>
    %29 = tpu.matmul %27, %28, %cst_14 {dimension_numbers = #tpu.dot_dimension_numbers<[1], [1], [0], [0], [0, 0, 1, 0], [], []>} : vector<8x8xf32>, vector<8x8xf32>, vector<8x8xf32> -> vector<8x8xf32>
    %30 = vector.extract_strided_slice %24 {offsets = [0, 8], sizes = [8, 8], strides = [1, 1]} : vector<8x32xf32> to vector<8x8xf32>
    %31 = vector.extract_strided_slice %25 {offsets = [0, 8], sizes = [8, 8], strides = [1, 1]} : vector<8x32xf32> to vector<8x8xf32>
    %cst_15 = arith.constant dense<0.000000e+00> : vector<8x8xf32>
    %32 = tpu.matmul %30, %31, %cst_15 {dimension_numbers = #tpu.dot_dimension_numbers<[1], [1], [0], [0], [0, 0, 1, 0], [], []>} : vector<8x8xf32>, vector<8x8xf32>, vector<8x8xf32> -> vector<8x8xf32>
    %33 = vector.extract_strided_slice %24 {offsets = [0, 16], sizes = [8, 8], strides = [1, 1]} : vector<8x32xf32> to vector<8x8xf32>
    %34 = vector.extract_strided_slice %25 {offsets = [0, 16], sizes = [8, 8], strides = [1, 1]} : vector<8x32xf32> to vector<8x8xf32>
    %cst_16 = arith.constant dense<0.000000e+00> : vector<8x8xf32>
    %35 = tpu.matmul %33, %34, %cst_16 {dimension_numbers = #tpu.dot_dimension_numbers<[1], [1], [0], [0], [0, 0, 1, 0], [], []>} : vector<8x8xf32>, vector<8x8xf32>, vector<8x8xf32> -> vector<8x8xf32>
    %36 = vector.extract_strided_slice %24 {offsets = [0, 24], sizes = [8, 8], strides = [1, 1]} : vector<8x32xf32> to vector<8x8xf32>
    %37 = vector.extract_strided_slice %25 {offsets = [0, 24], sizes = [8, 8], strides = [1, 1]} : vector<8x32xf32> to vector<8x8xf32>
    %cst_17 = arith.constant dense<0.000000e+00> : vector<8x8xf32>
    %38 = tpu.matmul %36, %37, %cst_17 {dimension_numbers = #tpu.dot_dimension_numbers<[1], [1], [0], [0], [0, 0, 1, 0], [], []>} : vector<8x8xf32>, vector<8x8xf32>, vector<8x8xf32> -> vector<8x8xf32>
    %39 = tpu.concatenate %29, %32, %35, %38 in 0 : vector<8x8xf32>, vector<8x8xf32>, vector<8x8xf32>, vector<8x8xf32> -> vector<32x8xf32>
    %40 = arith.addf %39, %4 : vector<32x8xf32>
    %cst_18 = arith.constant dense<0xFF800000> : vector<32xf32>
    %41 = vector.multi_reduction <maximumf>, %40, %cst_18 [1] : vector<32x8xf32> to vector<32xf32>
    %42 = vector.shape_cast %41 : vector<32xf32> to vector<32x1xf32>
    %43 = vector.broadcast %42 : vector<32x1xf32> to vector<32x8xf32>
    %44 = arith.subf %40, %43 : vector<32x8xf32>
    %45 = math.exp %44 : vector<32x8xf32>
    %cst_19 = arith.constant dense<0.000000e+00> : vector<32xf32>
    %46 = vector.multi_reduction <add>, %45, %cst_19 [1] : vector<32x8xf32> to vector<32xf32>
    %47 = vector.shape_cast %46 : vector<32xf32> to vector<32x1xf32>
    %48 = tpu.reciprocal %47 {approx = true} : vector<32x1xf32> -> vector<32x1xf32>
    %49 = vector.broadcast %48 : vector<32x1xf32> to vector<32x8xf32>
    %50 = arith.mulf %45, %49 : vector<32x8xf32>
    %51 = vector.extract_strided_slice %50 {offsets = [0, 0], sizes = [8, 8], strides = [1, 1]} : vector<32x8xf32> to vector<8x8xf32>
    %52 = vector.extract_strided_slice %26 {offsets = [0, 0], sizes = [8, 8], strides = [1, 1]} : vector<8x32xf32> to vector<8x8xf32>
    %cst_20 = arith.constant dense<0.000000e+00> : vector<8x8xf32>
    %53 = tpu.matmul %51, %52, %cst_20 {dimension_numbers = #tpu.dot_dimension_numbers<[1], [0], [0], [1], [0, 0, 1, 1], [], []>} : vector<8x8xf32>, vector<8x8xf32>, vector<8x8xf32> -> vector<8x8xf32>
    %54 = vector.extract_strided_slice %50 {offsets = [8, 0], sizes = [8, 8], strides = [1, 1]} : vector<32x8xf32> to vector<8x8xf32>
    %55 = vector.extract_strided_slice %26 {offsets = [0, 8], sizes = [8, 8], strides = [1, 1]} : vector<8x32xf32> to vector<8x8xf32>
    %cst_21 = arith.constant dense<0.000000e+00> : vector<8x8xf32>
    %56 = tpu.matmul %54, %55, %cst_21 {dimension_numbers = #tpu.dot_dimension_numbers<[1], [0], [0], [1], [0, 0, 1, 1], [], []>} : vector<8x8xf32>, vector<8x8xf32>, vector<8x8xf32> -> vector<8x8xf32>
    %57 = vector.extract_strided_slice %50 {offsets = [16, 0], sizes = [8, 8], strides = [1, 1]} : vector<32x8xf32> to vector<8x8xf32>
    %58 = vector.extract_strided_slice %26 {offsets = [0, 16], sizes = [8, 8], strides = [1, 1]} : vector<8x32xf32> to vector<8x8xf32>
    %cst_22 = arith.constant dense<0.000000e+00> : vector<8x8xf32>
    %59 = tpu.matmul %57, %58, %cst_22 {dimension_numbers = #tpu.dot_dimension_numbers<[1], [0], [0], [1], [0, 0, 1, 1], [], []>} : vector<8x8xf32>, vector<8x8xf32>, vector<8x8xf32> -> vector<8x8xf32>
    %60 = vector.extract_strided_slice %50 {offsets = [24, 0], sizes = [8, 8], strides = [1, 1]} : vector<32x8xf32> to vector<8x8xf32>
    %61 = vector.extract_strided_slice %26 {offsets = [0, 24], sizes = [8, 8], strides = [1, 1]} : vector<8x32xf32> to vector<8x8xf32>
    %cst_23 = arith.constant dense<0.000000e+00> : vector<8x8xf32>
    %62 = tpu.matmul %60, %61, %cst_23 {dimension_numbers = #tpu.dot_dimension_numbers<[1], [0], [0], [1], [0, 0, 1, 1], [], []>} : vector<8x8xf32>, vector<8x8xf32>, vector<8x8xf32> -> vector<8x8xf32>
    %63 = tpu.concatenate %53, %56, %59, %62 in 1 : vector<8x8xf32>, vector<8x8xf32>, vector<8x8xf32>, vector<8x8xf32> -> vector<8x32xf32>
    %64 = vector.extract_strided_slice %21 {offsets = [8, 0], sizes = [8, 32], strides = [1, 1]} : vector<16x32xf32> to vector<8x32xf32>
    %65 = vector.extract_strided_slice %22 {offsets = [8, 0], sizes = [8, 32], strides = [1, 1]} : vector<16x32xf32> to vector<8x32xf32>
    %66 = vector.extract_strided_slice %23 {offsets = [8, 0], sizes = [8, 32], strides = [1, 1]} : vector<16x32xf32> to vector<8x32xf32>
    %67 = vector.extract_strided_slice %64 {offsets = [0, 0], sizes = [8, 8], strides = [1, 1]} : vector<8x32xf32> to vector<8x8xf32>
    %68 = vector.extract_strided_slice %65 {offsets = [0, 0], sizes = [8, 8], strides = [1, 1]} : vector<8x32xf32> to vector<8x8xf32>
    %cst_24 = arith.constant dense<0.000000e+00> : vector<8x8xf32>
    %69 = tpu.matmul %67, %68, %cst_24 {dimension_numbers = #tpu.dot_dimension_numbers<[1], [1], [0], [0], [0, 0, 1, 0], [], []>} : vector<8x8xf32>, vector<8x8xf32>, vector<8x8xf32> -> vector<8x8xf32>
    %70 = vector.extract_strided_slice %64 {offsets = [0, 8], sizes = [8, 8], strides = [1, 1]} : vector<8x32xf32> to vector<8x8xf32>
    %71 = vector.extract_strided_slice %65 {offsets = [0, 8], sizes = [8, 8], strides = [1, 1]} : vector<8x32xf32> to vector<8x8xf32>
    %cst_25 = arith.constant dense<0.000000e+00> : vector<8x8xf32>
    %72 = tpu.matmul %70, %71, %cst_25 {dimension_numbers = #tpu.dot_dimension_numbers<[1], [1], [0], [0], [0, 0, 1, 0], [], []>} : vector<8x8xf32>, vector<8x8xf32>, vector<8x8xf32> -> vector<8x8xf32>
    %73 = vector.extract_strided_slice %64 {offsets = [0, 16], sizes = [8, 8], strides = [1, 1]} : vector<8x32xf32> to vector<8x8xf32>
    %74 = vector.extract_strided_slice %65 {offsets = [0, 16], sizes = [8, 8], strides = [1, 1]} : vector<8x32xf32> to vector<8x8xf32>
    %cst_26 = arith.constant dense<0.000000e+00> : vector<8x8xf32>
    %75 = tpu.matmul %73, %74, %cst_26 {dimension_numbers = #tpu.dot_dimension_numbers<[1], [1], [0], [0], [0, 0, 1, 0], [], []>} : vector<8x8xf32>, vector<8x8xf32>, vector<8x8xf32> -> vector<8x8xf32>
    %76 = vector.extract_strided_slice %64 {offsets = [0, 24], sizes = [8, 8], strides = [1, 1]} : vector<8x32xf32> to vector<8x8xf32>
    %77 = vector.extract_strided_slice %65 {offsets = [0, 24], sizes = [8, 8], strides = [1, 1]} : vector<8x32xf32> to vector<8x8xf32>
    %cst_27 = arith.constant dense<0.000000e+00> : vector<8x8xf32>
    %78 = tpu.matmul %76, %77, %cst_27 {dimension_numbers = #tpu.dot_dimension_numbers<[1], [1], [0], [0], [0, 0, 1, 0], [], []>} : vector<8x8xf32>, vector<8x8xf32>, vector<8x8xf32> -> vector<8x8xf32>
    %79 = tpu.concatenate %69, %72, %75, %78 in 0 : vector<8x8xf32>, vector<8x8xf32>, vector<8x8xf32>, vector<8x8xf32> -> vector<32x8xf32>
    %80 = arith.addf %79, %4 : vector<32x8xf32>
    %cst_28 = arith.constant dense<0xFF800000> : vector<32xf32>
    %81 = vector.multi_reduction <maximumf>, %80, %cst_28 [1] : vector<32x8xf32> to vector<32xf32>
    %82 = vector.shape_cast %81 : vector<32xf32> to vector<32x1xf32>
    %83 = vector.broadcast %82 : vector<32x1xf32> to vector<32x8xf32>
    %84 = arith.subf %80, %83 : vector<32x8xf32>
    %85 = math.exp %84 : vector<32x8xf32>
    %cst_29 = arith.constant dense<0.000000e+00> : vector<32xf32>
    %86 = vector.multi_reduction <add>, %85, %cst_29 [1] : vector<32x8xf32> to vector<32xf32>
    %87 = vector.shape_cast %86 : vector<32xf32> to vector<32x1xf32>
    %88 = tpu.reciprocal %87 {approx = true} : vector<32x1xf32> -> vector<32x1xf32>
    %89 = vector.broadcast %88 : vector<32x1xf32> to vector<32x8xf32>
    %90 = arith.mulf %85, %89 : vector<32x8xf32>
    %91 = vector.extract_strided_slice %90 {offsets = [0, 0], sizes = [8, 8], strides = [1, 1]} : vector<32x8xf32> to vector<8x8xf32>
    %92 = vector.extract_strided_slice %66 {offsets = [0, 0], sizes = [8, 8], strides = [1, 1]} : vector<8x32xf32> to vector<8x8xf32>
    %cst_30 = arith.constant dense<0.000000e+00> : vector<8x8xf32>
    %93 = tpu.matmul %91, %92, %cst_30 {dimension_numbers = #tpu.dot_dimension_numbers<[1], [0], [0], [1], [0, 0, 1, 1], [], []>} : vector<8x8xf32>, vector<8x8xf32>, vector<8x8xf32> -> vector<8x8xf32>
    %94 = vector.extract_strided_slice %90 {offsets = [8, 0], sizes = [8, 8], strides = [1, 1]} : vector<32x8xf32> to vector<8x8xf32>
    %95 = vector.extract_strided_slice %66 {offsets = [0, 8], sizes = [8, 8], strides = [1, 1]} : vector<8x32xf32> to vector<8x8xf32>
    %cst_31 = arith.constant dense<0.000000e+00> : vector<8x8xf32>
    %96 = tpu.matmul %94, %95, %cst_31 {dimension_numbers = #tpu.dot_dimension_numbers<[1], [0], [0], [1], [0, 0, 1, 1], [], []>} : vector<8x8xf32>, vector<8x8xf32>, vector<8x8xf32> -> vector<8x8xf32>
    %97 = vector.extract_strided_slice %90 {offsets = [16, 0], sizes = [8, 8], strides = [1, 1]} : vector<32x8xf32> to vector<8x8xf32>
    %98 = vector.extract_strided_slice %66 {offsets = [0, 16], sizes = [8, 8], strides = [1, 1]} : vector<8x32xf32> to vector<8x8xf32>
    %cst_32 = arith.constant dense<0.000000e+00> : vector<8x8xf32>
    %99 = tpu.matmul %97, %98, %cst_32 {dimension_numbers = #tpu.dot_dimension_numbers<[1], [0], [0], [1], [0, 0, 1, 1], [], []>} : vector<8x8xf32>, vector<8x8xf32>, vector<8x8xf32> -> vector<8x8xf32>
    %100 = vector.extract_strided_slice %90 {offsets = [24, 0], sizes = [8, 8], strides = [1, 1]} : vector<32x8xf32> to vector<8x8xf32>
    %101 = vector.extract_strided_slice %66 {offsets = [0, 24], sizes = [8, 8], strides = [1, 1]} : vector<8x32xf32> to vector<8x8xf32>
    %cst_33 = arith.constant dense<0.000000e+00> : vector<8x8xf32>
    %102 = tpu.matmul %100, %101, %cst_33 {dimension_numbers = #tpu.dot_dimension_numbers<[1], [0], [0], [1], [0, 0, 1, 1], [], []>} : vector<8x8xf32>, vector<8x8xf32>, vector<8x8xf32> -> vector<8x8xf32>
    %103 = tpu.concatenate %93, %96, %99, %102 in 1 : vector<8x8xf32>, vector<8x8xf32>, vector<8x8xf32>, vector<8x8xf32> -> vector<8x32xf32>
    %104 = tpu.concatenate %63, %103 in 0 : vector<8x32xf32>, vector<8x32xf32> -> vector<16x32xf32>
    %c0_34 = arith.constant 0 : index
    %c0_35 = arith.constant 0 : index
    %c0_36 = arith.constant 0 : index
    %105 = vector.load %arg6[%c0_34, %c0_35, %c0_36] : memref<4x32x32xf32, #tpu.memory_space<vmem>>, vector<1x32x32xf32>
    %106 = vector.shape_cast %105 : vector<1x32x32xf32> to vector<32x32xf32>
    %cst_37 = arith.constant dense<0.000000e+00> : vector<16x32xf32>
    %107 = tpu.matmul %104, %106, %cst_37 {dimension_numbers = #tpu.dot_dimension_numbers<[1], [0], [0], [1], [0, 0, 1, 1], [], []>} : vector<16x32xf32>, vector<32x32xf32>, vector<16x32xf32> -> vector<16x32xf32>
    %108 = vector.extract_strided_slice %3 {offsets = [48, 0], sizes = [1, 32], strides = [1, 1]} : vector<68x32xf32> to vector<1x32xf32>
    %109 = vector.broadcast %108 : vector<1x32xf32> to vector<16x32xf32>
    %110 = arith.addf %107, %109 : vector<16x32xf32>
    %111 = vector.extract_strided_slice %3 {offsets = [49, 0], sizes = [1, 32], strides = [1, 1]} : vector<68x32xf32> to vector<1x32xf32>
    %112 = vector.extract_strided_slice %3 {offsets = [50, 0], sizes = [1, 32], strides = [1, 1]} : vector<68x32xf32> to vector<1x32xf32>
    %cst_38 = arith.constant dense<0.000000e+00> : vector<16xf32>
    %113 = vector.multi_reduction <add>, %110, %cst_38 [1] : vector<16x32xf32> to vector<16xf32>
    %114 = vector.shape_cast %113 : vector<16xf32> to vector<16x1xf32>
    %cst_39 = arith.constant 3.200000e+01 : f32
    %115 = vector.broadcast %cst_39 : f32 to vector<16x1xf32>
    %116 = arith.divf %114, %115 : vector<16x1xf32>
    %117 = arith.mulf %110, %110 : vector<16x32xf32>
    %cst_40 = arith.constant dense<0.000000e+00> : vector<16xf32>
    %118 = vector.multi_reduction <add>, %117, %cst_40 [1] : vector<16x32xf32> to vector<16xf32>
    %119 = vector.shape_cast %118 : vector<16xf32> to vector<16x1xf32>
    %cst_41 = arith.constant 3.200000e+01 : f32
    %120 = vector.broadcast %cst_41 : f32 to vector<16x1xf32>
    %121 = arith.divf %119, %120 : vector<16x1xf32>
    %122 = arith.mulf %116, %116 : vector<16x1xf32>
    %123 = arith.subf %121, %122 : vector<16x1xf32>
    %124 = vector.broadcast %116 : vector<16x1xf32> to vector<16x32xf32>
    %125 = arith.subf %110, %124 : vector<16x32xf32>
    %cst_42 = arith.constant 9.99999974E-6 : f32
    %126 = vector.broadcast %cst_42 : f32 to vector<16x1xf32>
    %127 = arith.addf %123, %126 : vector<16x1xf32>
    %128 = math.rsqrt %127 : vector<16x1xf32>
    %129 = vector.broadcast %128 : vector<16x1xf32> to vector<16x32xf32>
    %130 = arith.mulf %125, %129 : vector<16x32xf32>
    %131 = vector.broadcast %111 : vector<1x32xf32> to vector<16x32xf32>
    %132 = arith.mulf %130, %131 : vector<16x32xf32>
    %133 = vector.broadcast %112 : vector<1x32xf32> to vector<16x32xf32>
    %134 = arith.addf %132, %133 : vector<16x32xf32>
    %135 = arith.addf %13, %134 : vector<16x32xf32>
    %c1 = arith.constant 1 : index
    %c0_43 = arith.constant 0 : index
    %c0_44 = arith.constant 0 : index
    %136 = vector.load %arg4[%c1, %c0_43, %c0_44] : memref<4x32x96xf32, #tpu.memory_space<vmem>>, vector<1x32x96xf32>
    %137 = vector.shape_cast %136 : vector<1x32x96xf32> to vector<32x96xf32>
    %c1_45 = arith.constant 1 : index
    %c0_46 = arith.constant 0 : index
    %c0_47 = arith.constant 0 : index
    %138 = vector.load %arg5[%c1_45, %c0_46, %c0_47] : memref<4x1x96xf32, #tpu.memory_space<vmem>>, vector<1x1x96xf32>
    %139 = vector.shape_cast %138 : vector<1x1x96xf32> to vector<1x96xf32>
    %140 = vector.extract_strided_slice %137 {offsets = [0, 0], sizes = [32, 32], strides = [1, 1]} : vector<32x96xf32> to vector<32x32xf32>
    %cst_48 = arith.constant dense<0.000000e+00> : vector<16x32xf32>
    %141 = tpu.matmul %135, %140, %cst_48 {dimension_numbers = #tpu.dot_dimension_numbers<[1], [0], [0], [1], [0, 0, 1, 1], [], []>} : vector<16x32xf32>, vector<32x32xf32>, vector<16x32xf32> -> vector<16x32xf32>
    %142 = vector.extract_strided_slice %139 {offsets = [0, 0], sizes = [1, 32], strides = [1, 1]} : vector<1x96xf32> to vector<1x32xf32>
    %143 = vector.broadcast %142 : vector<1x32xf32> to vector<16x32xf32>
    %144 = arith.addf %141, %143 : vector<16x32xf32>
    %145 = vector.extract_strided_slice %137 {offsets = [0, 32], sizes = [32, 64], strides = [1, 1]} : vector<32x96xf32> to vector<32x64xf32>
    %cst_49 = arith.constant dense<0.000000e+00> : vector<16x64xf32>
    %146 = tpu.matmul %1, %145, %cst_49 {dimension_numbers = #tpu.dot_dimension_numbers<[1], [0], [0], [1], [0, 0, 1, 1], [], []>} : vector<16x32xf32>, vector<32x64xf32>, vector<16x64xf32> -> vector<16x64xf32>
    %147 = vector.extract_strided_slice %139 {offsets = [0, 32], sizes = [1, 64], strides = [1, 1]} : vector<1x96xf32> to vector<1x64xf32>
    %148 = vector.broadcast %147 : vector<1x64xf32> to vector<16x64xf32>
    %149 = arith.addf %146, %148 : vector<16x64xf32>
    %150 = vector.extract_strided_slice %149 {offsets = [0, 0], sizes = [16, 32], strides = [1, 1]} : vector<16x64xf32> to vector<16x32xf32>
    %151 = vector.extract_strided_slice %149 {offsets = [0, 32], sizes = [16, 32], strides = [1, 1]} : vector<16x64xf32> to vector<16x32xf32>
    %152 = vector.extract_strided_slice %144 {offsets = [0, 0], sizes = [8, 32], strides = [1, 1]} : vector<16x32xf32> to vector<8x32xf32>
    %153 = vector.extract_strided_slice %150 {offsets = [0, 0], sizes = [8, 32], strides = [1, 1]} : vector<16x32xf32> to vector<8x32xf32>
    %154 = vector.extract_strided_slice %151 {offsets = [0, 0], sizes = [8, 32], strides = [1, 1]} : vector<16x32xf32> to vector<8x32xf32>
    %155 = vector.extract_strided_slice %152 {offsets = [0, 0], sizes = [8, 8], strides = [1, 1]} : vector<8x32xf32> to vector<8x8xf32>
    %156 = vector.extract_strided_slice %153 {offsets = [0, 0], sizes = [8, 8], strides = [1, 1]} : vector<8x32xf32> to vector<8x8xf32>
    %cst_50 = arith.constant dense<0.000000e+00> : vector<8x8xf32>
    %157 = tpu.matmul %155, %156, %cst_50 {dimension_numbers = #tpu.dot_dimension_numbers<[1], [1], [0], [0], [0, 0, 1, 0], [], []>} : vector<8x8xf32>, vector<8x8xf32>, vector<8x8xf32> -> vector<8x8xf32>
    %158 = vector.extract_strided_slice %152 {offsets = [0, 8], sizes = [8, 8], strides = [1, 1]} : vector<8x32xf32> to vector<8x8xf32>
    %159 = vector.extract_strided_slice %153 {offsets = [0, 8], sizes = [8, 8], strides = [1, 1]} : vector<8x32xf32> to vector<8x8xf32>
    %cst_51 = arith.constant dense<0.000000e+00> : vector<8x8xf32>
    %160 = tpu.matmul %158, %159, %cst_51 {dimension_numbers = #tpu.dot_dimension_numbers<[1], [1], [0], [0], [0, 0, 1, 0], [], []>} : vector<8x8xf32>, vector<8x8xf32>, vector<8x8xf32> -> vector<8x8xf32>
    %161 = vector.extract_strided_slice %152 {offsets = [0, 16], sizes = [8, 8], strides = [1, 1]} : vector<8x32xf32> to vector<8x8xf32>
    %162 = vector.extract_strided_slice %153 {offsets = [0, 16], sizes = [8, 8], strides = [1, 1]} : vector<8x32xf32> to vector<8x8xf32>
    %cst_52 = arith.constant dense<0.000000e+00> : vector<8x8xf32>
    %163 = tpu.matmul %161, %162, %cst_52 {dimension_numbers = #tpu.dot_dimension_numbers<[1], [1], [0], [0], [0, 0, 1, 0], [], []>} : vector<8x8xf32>, vector<8x8xf32>, vector<8x8xf32> -> vector<8x8xf32>
    %164 = vector.extract_strided_slice %152 {offsets = [0, 24], sizes = [8, 8], strides = [1, 1]} : vector<8x32xf32> to vector<8x8xf32>
    %165 = vector.extract_strided_slice %153 {offsets = [0, 24], sizes = [8, 8], strides = [1, 1]} : vector<8x32xf32> to vector<8x8xf32>
    %cst_53 = arith.constant dense<0.000000e+00> : vector<8x8xf32>
    %166 = tpu.matmul %164, %165, %cst_53 {dimension_numbers = #tpu.dot_dimension_numbers<[1], [1], [0], [0], [0, 0, 1, 0], [], []>} : vector<8x8xf32>, vector<8x8xf32>, vector<8x8xf32> -> vector<8x8xf32>
    %167 = tpu.concatenate %157, %160, %163, %166 in 0 : vector<8x8xf32>, vector<8x8xf32>, vector<8x8xf32>, vector<8x8xf32> -> vector<32x8xf32>
    %cst_54 = arith.constant dense<0xFF800000> : vector<32xf32>
    %168 = vector.multi_reduction <maximumf>, %167, %cst_54 [1] : vector<32x8xf32> to vector<32xf32>
    %169 = vector.shape_cast %168 : vector<32xf32> to vector<32x1xf32>
    %170 = vector.broadcast %169 : vector<32x1xf32> to vector<32x8xf32>
    %171 = arith.subf %167, %170 : vector<32x8xf32>
    %172 = math.exp %171 : vector<32x8xf32>
    %cst_55 = arith.constant dense<0.000000e+00> : vector<32xf32>
    %173 = vector.multi_reduction <add>, %172, %cst_55 [1] : vector<32x8xf32> to vector<32xf32>
    %174 = vector.shape_cast %173 : vector<32xf32> to vector<32x1xf32>
    %175 = tpu.reciprocal %174 {approx = true} : vector<32x1xf32> -> vector<32x1xf32>
    %176 = vector.broadcast %175 : vector<32x1xf32> to vector<32x8xf32>
    %177 = arith.mulf %172, %176 : vector<32x8xf32>
    %178 = vector.extract_strided_slice %177 {offsets = [0, 0], sizes = [8, 8], strides = [1, 1]} : vector<32x8xf32> to vector<8x8xf32>
    %179 = vector.extract_strided_slice %154 {offsets = [0, 0], sizes = [8, 8], strides = [1, 1]} : vector<8x32xf32> to vector<8x8xf32>
    %cst_56 = arith.constant dense<0.000000e+00> : vector<8x8xf32>
    %180 = tpu.matmul %178, %179, %cst_56 {dimension_numbers = #tpu.dot_dimension_numbers<[1], [0], [0], [1], [0, 0, 1, 1], [], []>} : vector<8x8xf32>, vector<8x8xf32>, vector<8x8xf32> -> vector<8x8xf32>
    %181 = vector.extract_strided_slice %177 {offsets = [8, 0], sizes = [8, 8], strides = [1, 1]} : vector<32x8xf32> to vector<8x8xf32>
    %182 = vector.extract_strided_slice %154 {offsets = [0, 8], sizes = [8, 8], strides = [1, 1]} : vector<8x32xf32> to vector<8x8xf32>
    %cst_57 = arith.constant dense<0.000000e+00> : vector<8x8xf32>
    %183 = tpu.matmul %181, %182, %cst_57 {dimension_numbers = #tpu.dot_dimension_numbers<[1], [0], [0], [1], [0, 0, 1, 1], [], []>} : vector<8x8xf32>, vector<8x8xf32>, vector<8x8xf32> -> vector<8x8xf32>
    %184 = vector.extract_strided_slice %177 {offsets = [16, 0], sizes = [8, 8], strides = [1, 1]} : vector<32x8xf32> to vector<8x8xf32>
    %185 = vector.extract_strided_slice %154 {offsets = [0, 16], sizes = [8, 8], strides = [1, 1]} : vector<8x32xf32> to vector<8x8xf32>
    %cst_58 = arith.constant dense<0.000000e+00> : vector<8x8xf32>
    %186 = tpu.matmul %184, %185, %cst_58 {dimension_numbers = #tpu.dot_dimension_numbers<[1], [0], [0], [1], [0, 0, 1, 1], [], []>} : vector<8x8xf32>, vector<8x8xf32>, vector<8x8xf32> -> vector<8x8xf32>
    %187 = vector.extract_strided_slice %177 {offsets = [24, 0], sizes = [8, 8], strides = [1, 1]} : vector<32x8xf32> to vector<8x8xf32>
    %188 = vector.extract_strided_slice %154 {offsets = [0, 24], sizes = [8, 8], strides = [1, 1]} : vector<8x32xf32> to vector<8x8xf32>
    %cst_59 = arith.constant dense<0.000000e+00> : vector<8x8xf32>
    %189 = tpu.matmul %187, %188, %cst_59 {dimension_numbers = #tpu.dot_dimension_numbers<[1], [0], [0], [1], [0, 0, 1, 1], [], []>} : vector<8x8xf32>, vector<8x8xf32>, vector<8x8xf32> -> vector<8x8xf32>
    %190 = tpu.concatenate %180, %183, %186, %189 in 1 : vector<8x8xf32>, vector<8x8xf32>, vector<8x8xf32>, vector<8x8xf32> -> vector<8x32xf32>
    %191 = vector.extract_strided_slice %144 {offsets = [8, 0], sizes = [8, 32], strides = [1, 1]} : vector<16x32xf32> to vector<8x32xf32>
    %192 = vector.extract_strided_slice %150 {offsets = [8, 0], sizes = [8, 32], strides = [1, 1]} : vector<16x32xf32> to vector<8x32xf32>
    %193 = vector.extract_strided_slice %151 {offsets = [8, 0], sizes = [8, 32], strides = [1, 1]} : vector<16x32xf32> to vector<8x32xf32>
    %194 = vector.extract_strided_slice %191 {offsets = [0, 0], sizes = [8, 8], strides = [1, 1]} : vector<8x32xf32> to vector<8x8xf32>
    %195 = vector.extract_strided_slice %192 {offsets = [0, 0], sizes = [8, 8], strides = [1, 1]} : vector<8x32xf32> to vector<8x8xf32>
    %cst_60 = arith.constant dense<0.000000e+00> : vector<8x8xf32>
    %196 = tpu.matmul %194, %195, %cst_60 {dimension_numbers = #tpu.dot_dimension_numbers<[1], [1], [0], [0], [0, 0, 1, 0], [], []>} : vector<8x8xf32>, vector<8x8xf32>, vector<8x8xf32> -> vector<8x8xf32>
    %197 = vector.extract_strided_slice %191 {offsets = [0, 8], sizes = [8, 8], strides = [1, 1]} : vector<8x32xf32> to vector<8x8xf32>
    %198 = vector.extract_strided_slice %192 {offsets = [0, 8], sizes = [8, 8], strides = [1, 1]} : vector<8x32xf32> to vector<8x8xf32>
    %cst_61 = arith.constant dense<0.000000e+00> : vector<8x8xf32>
    %199 = tpu.matmul %197, %198, %cst_61 {dimension_numbers = #tpu.dot_dimension_numbers<[1], [1], [0], [0], [0, 0, 1, 0], [], []>} : vector<8x8xf32>, vector<8x8xf32>, vector<8x8xf32> -> vector<8x8xf32>
    %200 = vector.extract_strided_slice %191 {offsets = [0, 16], sizes = [8, 8], strides = [1, 1]} : vector<8x32xf32> to vector<8x8xf32>
    %201 = vector.extract_strided_slice %192 {offsets = [0, 16], sizes = [8, 8], strides = [1, 1]} : vector<8x32xf32> to vector<8x8xf32>
    %cst_62 = arith.constant dense<0.000000e+00> : vector<8x8xf32>
    %202 = tpu.matmul %200, %201, %cst_62 {dimension_numbers = #tpu.dot_dimension_numbers<[1], [1], [0], [0], [0, 0, 1, 0], [], []>} : vector<8x8xf32>, vector<8x8xf32>, vector<8x8xf32> -> vector<8x8xf32>
    %203 = vector.extract_strided_slice %191 {offsets = [0, 24], sizes = [8, 8], strides = [1, 1]} : vector<8x32xf32> to vector<8x8xf32>
    %204 = vector.extract_strided_slice %192 {offsets = [0, 24], sizes = [8, 8], strides = [1, 1]} : vector<8x32xf32> to vector<8x8xf32>
    %cst_63 = arith.constant dense<0.000000e+00> : vector<8x8xf32>
    %205 = tpu.matmul %203, %204, %cst_63 {dimension_numbers = #tpu.dot_dimension_numbers<[1], [1], [0], [0], [0, 0, 1, 0], [], []>} : vector<8x8xf32>, vector<8x8xf32>, vector<8x8xf32> -> vector<8x8xf32>
    %206 = tpu.concatenate %196, %199, %202, %205 in 0 : vector<8x8xf32>, vector<8x8xf32>, vector<8x8xf32>, vector<8x8xf32> -> vector<32x8xf32>
    %cst_64 = arith.constant dense<0xFF800000> : vector<32xf32>
    %207 = vector.multi_reduction <maximumf>, %206, %cst_64 [1] : vector<32x8xf32> to vector<32xf32>
    %208 = vector.shape_cast %207 : vector<32xf32> to vector<32x1xf32>
    %209 = vector.broadcast %208 : vector<32x1xf32> to vector<32x8xf32>
    %210 = arith.subf %206, %209 : vector<32x8xf32>
    %211 = math.exp %210 : vector<32x8xf32>
    %cst_65 = arith.constant dense<0.000000e+00> : vector<32xf32>
    %212 = vector.multi_reduction <add>, %211, %cst_65 [1] : vector<32x8xf32> to vector<32xf32>
    %213 = vector.shape_cast %212 : vector<32xf32> to vector<32x1xf32>
    %214 = tpu.reciprocal %213 {approx = true} : vector<32x1xf32> -> vector<32x1xf32>
    %215 = vector.broadcast %214 : vector<32x1xf32> to vector<32x8xf32>
    %216 = arith.mulf %211, %215 : vector<32x8xf32>
    %217 = vector.extract_strided_slice %216 {offsets = [0, 0], sizes = [8, 8], strides = [1, 1]} : vector<32x8xf32> to vector<8x8xf32>
    %218 = vector.extract_strided_slice %193 {offsets = [0, 0], sizes = [8, 8], strides = [1, 1]} : vector<8x32xf32> to vector<8x8xf32>
    %cst_66 = arith.constant dense<0.000000e+00> : vector<8x8xf32>
    %219 = tpu.matmul %217, %218, %cst_66 {dimension_numbers = #tpu.dot_dimension_numbers<[1], [0], [0], [1], [0, 0, 1, 1], [], []>} : vector<8x8xf32>, vector<8x8xf32>, vector<8x8xf32> -> vector<8x8xf32>
    %220 = vector.extract_strided_slice %216 {offsets = [8, 0], sizes = [8, 8], strides = [1, 1]} : vector<32x8xf32> to vector<8x8xf32>
    %221 = vector.extract_strided_slice %193 {offsets = [0, 8], sizes = [8, 8], strides = [1, 1]} : vector<8x32xf32> to vector<8x8xf32>
    %cst_67 = arith.constant dense<0.000000e+00> : vector<8x8xf32>
    %222 = tpu.matmul %220, %221, %cst_67 {dimension_numbers = #tpu.dot_dimension_numbers<[1], [0], [0], [1], [0, 0, 1, 1], [], []>} : vector<8x8xf32>, vector<8x8xf32>, vector<8x8xf32> -> vector<8x8xf32>
    %223 = vector.extract_strided_slice %216 {offsets = [16, 0], sizes = [8, 8], strides = [1, 1]} : vector<32x8xf32> to vector<8x8xf32>
    %224 = vector.extract_strided_slice %193 {offsets = [0, 16], sizes = [8, 8], strides = [1, 1]} : vector<8x32xf32> to vector<8x8xf32>
    %cst_68 = arith.constant dense<0.000000e+00> : vector<8x8xf32>
    %225 = tpu.matmul %223, %224, %cst_68 {dimension_numbers = #tpu.dot_dimension_numbers<[1], [0], [0], [1], [0, 0, 1, 1], [], []>} : vector<8x8xf32>, vector<8x8xf32>, vector<8x8xf32> -> vector<8x8xf32>
    %226 = vector.extract_strided_slice %216 {offsets = [24, 0], sizes = [8, 8], strides = [1, 1]} : vector<32x8xf32> to vector<8x8xf32>
    %227 = vector.extract_strided_slice %193 {offsets = [0, 24], sizes = [8, 8], strides = [1, 1]} : vector<8x32xf32> to vector<8x8xf32>
    %cst_69 = arith.constant dense<0.000000e+00> : vector<8x8xf32>
    %228 = tpu.matmul %226, %227, %cst_69 {dimension_numbers = #tpu.dot_dimension_numbers<[1], [0], [0], [1], [0, 0, 1, 1], [], []>} : vector<8x8xf32>, vector<8x8xf32>, vector<8x8xf32> -> vector<8x8xf32>
    %229 = tpu.concatenate %219, %222, %225, %228 in 1 : vector<8x8xf32>, vector<8x8xf32>, vector<8x8xf32>, vector<8x8xf32> -> vector<8x32xf32>
    %230 = tpu.concatenate %190, %229 in 0 : vector<8x32xf32>, vector<8x32xf32> -> vector<16x32xf32>
    %c1_70 = arith.constant 1 : index
    %c0_71 = arith.constant 0 : index
    %c0_72 = arith.constant 0 : index
    %231 = vector.load %arg6[%c1_70, %c0_71, %c0_72] : memref<4x32x32xf32, #tpu.memory_space<vmem>>, vector<1x32x32xf32>
    %232 = vector.shape_cast %231 : vector<1x32x32xf32> to vector<32x32xf32>
    %cst_73 = arith.constant dense<0.000000e+00> : vector<16x32xf32>
    %233 = tpu.matmul %230, %232, %cst_73 {dimension_numbers = #tpu.dot_dimension_numbers<[1], [0], [0], [1], [0, 0, 1, 1], [], []>} : vector<16x32xf32>, vector<32x32xf32>, vector<16x32xf32> -> vector<16x32xf32>
    %234 = vector.extract_strided_slice %3 {offsets = [51, 0], sizes = [1, 32], strides = [1, 1]} : vector<68x32xf32> to vector<1x32xf32>
    %235 = vector.broadcast %234 : vector<1x32xf32> to vector<16x32xf32>
    %236 = arith.addf %233, %235 : vector<16x32xf32>
    %237 = vector.extract_strided_slice %3 {offsets = [52, 0], sizes = [1, 32], strides = [1, 1]} : vector<68x32xf32> to vector<1x32xf32>
    %238 = vector.extract_strided_slice %3 {offsets = [53, 0], sizes = [1, 32], strides = [1, 1]} : vector<68x32xf32> to vector<1x32xf32>
    %cst_74 = arith.constant dense<0.000000e+00> : vector<16xf32>
    %239 = vector.multi_reduction <add>, %236, %cst_74 [1] : vector<16x32xf32> to vector<16xf32>
    %240 = vector.shape_cast %239 : vector<16xf32> to vector<16x1xf32>
    %cst_75 = arith.constant 3.200000e+01 : f32
    %241 = vector.broadcast %cst_75 : f32 to vector<16x1xf32>
    %242 = arith.divf %240, %241 : vector<16x1xf32>
    %243 = arith.mulf %236, %236 : vector<16x32xf32>
    %cst_76 = arith.constant dense<0.000000e+00> : vector<16xf32>
    %244 = vector.multi_reduction <add>, %243, %cst_76 [1] : vector<16x32xf32> to vector<16xf32>
    %245 = vector.shape_cast %244 : vector<16xf32> to vector<16x1xf32>
    %cst_77 = arith.constant 3.200000e+01 : f32
    %246 = vector.broadcast %cst_77 : f32 to vector<16x1xf32>
    %247 = arith.divf %245, %246 : vector<16x1xf32>
    %248 = arith.mulf %242, %242 : vector<16x1xf32>
    %249 = arith.subf %247, %248 : vector<16x1xf32>
    %250 = vector.broadcast %242 : vector<16x1xf32> to vector<16x32xf32>
    %251 = arith.subf %236, %250 : vector<16x32xf32>
    %cst_78 = arith.constant 9.99999974E-6 : f32
    %252 = vector.broadcast %cst_78 : f32 to vector<16x1xf32>
    %253 = arith.addf %249, %252 : vector<16x1xf32>
    %254 = math.rsqrt %253 : vector<16x1xf32>
    %255 = vector.broadcast %254 : vector<16x1xf32> to vector<16x32xf32>
    %256 = arith.mulf %251, %255 : vector<16x32xf32>
    %257 = vector.broadcast %237 : vector<1x32xf32> to vector<16x32xf32>
    %258 = arith.mulf %256, %257 : vector<16x32xf32>
    %259 = vector.broadcast %238 : vector<1x32xf32> to vector<16x32xf32>
    %260 = arith.addf %258, %259 : vector<16x32xf32>
    %261 = arith.addf %135, %260 : vector<16x32xf32>
    %c0_79 = arith.constant 0 : index
    %c0_80 = arith.constant 0 : index
    %c0_81 = arith.constant 0 : index
    %262 = vector.load %arg7[%c0_79, %c0_80, %c0_81] : memref<4x32x32xf32, #tpu.memory_space<vmem>>, vector<1x32x32xf32>
    %263 = vector.shape_cast %262 : vector<1x32x32xf32> to vector<32x32xf32>
    %cst_82 = arith.constant dense<0.000000e+00> : vector<16x32xf32>
    %264 = tpu.matmul %261, %263, %cst_82 {dimension_numbers = #tpu.dot_dimension_numbers<[1], [0], [0], [1], [0, 0, 1, 1], [], []>} : vector<16x32xf32>, vector<32x32xf32>, vector<16x32xf32> -> vector<16x32xf32>
    %265 = vector.extract_strided_slice %3 {offsets = [54, 0], sizes = [1, 32], strides = [1, 1]} : vector<68x32xf32> to vector<1x32xf32>
    %266 = vector.broadcast %265 : vector<1x32xf32> to vector<16x32xf32>
    %267 = arith.addf %264, %266 : vector<16x32xf32>
    %cst_83 = arith.constant 0.000000e+00 : f32
    %268 = vector.broadcast %cst_83 : f32 to vector<16x32xf32>
    %269 = arith.maximumf %267, %268 : vector<16x32xf32>
    %c1_84 = arith.constant 1 : index
    %c0_85 = arith.constant 0 : index
    %c0_86 = arith.constant 0 : index
    %270 = vector.load %arg7[%c1_84, %c0_85, %c0_86] : memref<4x32x32xf32, #tpu.memory_space<vmem>>, vector<1x32x32xf32>
    %271 = vector.shape_cast %270 : vector<1x32x32xf32> to vector<32x32xf32>
    %cst_87 = arith.constant dense<0.000000e+00> : vector<16x32xf32>
    %272 = tpu.matmul %269, %271, %cst_87 {dimension_numbers = #tpu.dot_dimension_numbers<[1], [0], [0], [1], [0, 0, 1, 1], [], []>} : vector<16x32xf32>, vector<32x32xf32>, vector<16x32xf32> -> vector<16x32xf32>
    %273 = vector.extract_strided_slice %3 {offsets = [55, 0], sizes = [1, 32], strides = [1, 1]} : vector<68x32xf32> to vector<1x32xf32>
    %274 = vector.broadcast %273 : vector<1x32xf32> to vector<16x32xf32>
    %275 = arith.addf %272, %274 : vector<16x32xf32>
    %276 = vector.extract_strided_slice %3 {offsets = [56, 0], sizes = [1, 32], strides = [1, 1]} : vector<68x32xf32> to vector<1x32xf32>
    %277 = vector.extract_strided_slice %3 {offsets = [57, 0], sizes = [1, 32], strides = [1, 1]} : vector<68x32xf32> to vector<1x32xf32>
    %cst_88 = arith.constant dense<0.000000e+00> : vector<16xf32>
    %278 = vector.multi_reduction <add>, %275, %cst_88 [1] : vector<16x32xf32> to vector<16xf32>
    %279 = vector.shape_cast %278 : vector<16xf32> to vector<16x1xf32>
    %cst_89 = arith.constant 3.200000e+01 : f32
    %280 = vector.broadcast %cst_89 : f32 to vector<16x1xf32>
    %281 = arith.divf %279, %280 : vector<16x1xf32>
    %282 = arith.mulf %275, %275 : vector<16x32xf32>
    %cst_90 = arith.constant dense<0.000000e+00> : vector<16xf32>
    %283 = vector.multi_reduction <add>, %282, %cst_90 [1] : vector<16x32xf32> to vector<16xf32>
    %284 = vector.shape_cast %283 : vector<16xf32> to vector<16x1xf32>
    %cst_91 = arith.constant 3.200000e+01 : f32
    %285 = vector.broadcast %cst_91 : f32 to vector<16x1xf32>
    %286 = arith.divf %284, %285 : vector<16x1xf32>
    %287 = arith.mulf %281, %281 : vector<16x1xf32>
    %288 = arith.subf %286, %287 : vector<16x1xf32>
    %289 = vector.broadcast %281 : vector<16x1xf32> to vector<16x32xf32>
    %290 = arith.subf %275, %289 : vector<16x32xf32>
    %cst_92 = arith.constant 9.99999974E-6 : f32
    %291 = vector.broadcast %cst_92 : f32 to vector<16x1xf32>
    %292 = arith.addf %288, %291 : vector<16x1xf32>
    %293 = math.rsqrt %292 : vector<16x1xf32>
    %294 = vector.broadcast %293 : vector<16x1xf32> to vector<16x32xf32>
    %295 = arith.mulf %290, %294 : vector<16x32xf32>
    %296 = vector.broadcast %276 : vector<1x32xf32> to vector<16x32xf32>
    %297 = arith.mulf %295, %296 : vector<16x32xf32>
    %298 = vector.broadcast %277 : vector<1x32xf32> to vector<16x32xf32>
    %299 = arith.addf %297, %298 : vector<16x32xf32>
    %300 = arith.addf %261, %299 : vector<16x32xf32>
    %c2 = arith.constant 2 : index
    %c0_93 = arith.constant 0 : index
    %c0_94 = arith.constant 0 : index
    %301 = vector.load %arg4[%c2, %c0_93, %c0_94] : memref<4x32x96xf32, #tpu.memory_space<vmem>>, vector<1x32x96xf32>
    %302 = vector.shape_cast %301 : vector<1x32x96xf32> to vector<32x96xf32>
    %c2_95 = arith.constant 2 : index
    %c0_96 = arith.constant 0 : index
    %c0_97 = arith.constant 0 : index
    %303 = vector.load %arg5[%c2_95, %c0_96, %c0_97] : memref<4x1x96xf32, #tpu.memory_space<vmem>>, vector<1x1x96xf32>
    %304 = vector.shape_cast %303 : vector<1x1x96xf32> to vector<1x96xf32>
    %cst_98 = arith.constant dense<0.000000e+00> : vector<16x96xf32>
    %305 = tpu.matmul %300, %302, %cst_98 {dimension_numbers = #tpu.dot_dimension_numbers<[1], [0], [0], [1], [0, 0, 1, 1], [], []>} : vector<16x32xf32>, vector<32x96xf32>, vector<16x96xf32> -> vector<16x96xf32>
    %306 = vector.broadcast %304 : vector<1x96xf32> to vector<16x96xf32>
    %307 = arith.addf %305, %306 : vector<16x96xf32>
    %308 = vector.extract_strided_slice %307 {offsets = [0, 0], sizes = [16, 32], strides = [1, 1]} : vector<16x96xf32> to vector<16x32xf32>
    %309 = vector.extract_strided_slice %307 {offsets = [0, 32], sizes = [16, 32], strides = [1, 1]} : vector<16x96xf32> to vector<16x32xf32>
    %310 = vector.extract_strided_slice %307 {offsets = [0, 64], sizes = [16, 32], strides = [1, 1]} : vector<16x96xf32> to vector<16x32xf32>
    %311 = vector.extract_strided_slice %308 {offsets = [0, 0], sizes = [8, 32], strides = [1, 1]} : vector<16x32xf32> to vector<8x32xf32>
    %312 = vector.extract_strided_slice %309 {offsets = [0, 0], sizes = [8, 32], strides = [1, 1]} : vector<16x32xf32> to vector<8x32xf32>
    %313 = vector.extract_strided_slice %310 {offsets = [0, 0], sizes = [8, 32], strides = [1, 1]} : vector<16x32xf32> to vector<8x32xf32>
    %314 = vector.extract_strided_slice %311 {offsets = [0, 0], sizes = [8, 8], strides = [1, 1]} : vector<8x32xf32> to vector<8x8xf32>
    %315 = vector.extract_strided_slice %312 {offsets = [0, 0], sizes = [8, 8], strides = [1, 1]} : vector<8x32xf32> to vector<8x8xf32>
    %cst_99 = arith.constant dense<0.000000e+00> : vector<8x8xf32>
    %316 = tpu.matmul %314, %315, %cst_99 {dimension_numbers = #tpu.dot_dimension_numbers<[1], [1], [0], [0], [0, 0, 1, 0], [], []>} : vector<8x8xf32>, vector<8x8xf32>, vector<8x8xf32> -> vector<8x8xf32>
    %317 = vector.extract_strided_slice %311 {offsets = [0, 8], sizes = [8, 8], strides = [1, 1]} : vector<8x32xf32> to vector<8x8xf32>
    %318 = vector.extract_strided_slice %312 {offsets = [0, 8], sizes = [8, 8], strides = [1, 1]} : vector<8x32xf32> to vector<8x8xf32>
    %cst_100 = arith.constant dense<0.000000e+00> : vector<8x8xf32>
    %319 = tpu.matmul %317, %318, %cst_100 {dimension_numbers = #tpu.dot_dimension_numbers<[1], [1], [0], [0], [0, 0, 1, 0], [], []>} : vector<8x8xf32>, vector<8x8xf32>, vector<8x8xf32> -> vector<8x8xf32>
    %320 = vector.extract_strided_slice %311 {offsets = [0, 16], sizes = [8, 8], strides = [1, 1]} : vector<8x32xf32> to vector<8x8xf32>
    %321 = vector.extract_strided_slice %312 {offsets = [0, 16], sizes = [8, 8], strides = [1, 1]} : vector<8x32xf32> to vector<8x8xf32>
    %cst_101 = arith.constant dense<0.000000e+00> : vector<8x8xf32>
    %322 = tpu.matmul %320, %321, %cst_101 {dimension_numbers = #tpu.dot_dimension_numbers<[1], [1], [0], [0], [0, 0, 1, 0], [], []>} : vector<8x8xf32>, vector<8x8xf32>, vector<8x8xf32> -> vector<8x8xf32>
    %323 = vector.extract_strided_slice %311 {offsets = [0, 24], sizes = [8, 8], strides = [1, 1]} : vector<8x32xf32> to vector<8x8xf32>
    %324 = vector.extract_strided_slice %312 {offsets = [0, 24], sizes = [8, 8], strides = [1, 1]} : vector<8x32xf32> to vector<8x8xf32>
    %cst_102 = arith.constant dense<0.000000e+00> : vector<8x8xf32>
    %325 = tpu.matmul %323, %324, %cst_102 {dimension_numbers = #tpu.dot_dimension_numbers<[1], [1], [0], [0], [0, 0, 1, 0], [], []>} : vector<8x8xf32>, vector<8x8xf32>, vector<8x8xf32> -> vector<8x8xf32>
    %326 = tpu.concatenate %316, %319, %322, %325 in 0 : vector<8x8xf32>, vector<8x8xf32>, vector<8x8xf32>, vector<8x8xf32> -> vector<32x8xf32>
    %327 = arith.addf %326, %4 : vector<32x8xf32>
    %cst_103 = arith.constant dense<0xFF800000> : vector<32xf32>
    %328 = vector.multi_reduction <maximumf>, %327, %cst_103 [1] : vector<32x8xf32> to vector<32xf32>
    %329 = vector.shape_cast %328 : vector<32xf32> to vector<32x1xf32>
    %330 = vector.broadcast %329 : vector<32x1xf32> to vector<32x8xf32>
    %331 = arith.subf %327, %330 : vector<32x8xf32>
    %332 = math.exp %331 : vector<32x8xf32>
    %cst_104 = arith.constant dense<0.000000e+00> : vector<32xf32>
    %333 = vector.multi_reduction <add>, %332, %cst_104 [1] : vector<32x8xf32> to vector<32xf32>
    %334 = vector.shape_cast %333 : vector<32xf32> to vector<32x1xf32>
    %335 = tpu.reciprocal %334 {approx = true} : vector<32x1xf32> -> vector<32x1xf32>
    %336 = vector.broadcast %335 : vector<32x1xf32> to vector<32x8xf32>
    %337 = arith.mulf %332, %336 : vector<32x8xf32>
    %338 = vector.extract_strided_slice %337 {offsets = [0, 0], sizes = [8, 8], strides = [1, 1]} : vector<32x8xf32> to vector<8x8xf32>
    %339 = vector.extract_strided_slice %313 {offsets = [0, 0], sizes = [8, 8], strides = [1, 1]} : vector<8x32xf32> to vector<8x8xf32>
    %cst_105 = arith.constant dense<0.000000e+00> : vector<8x8xf32>
    %340 = tpu.matmul %338, %339, %cst_105 {dimension_numbers = #tpu.dot_dimension_numbers<[1], [0], [0], [1], [0, 0, 1, 1], [], []>} : vector<8x8xf32>, vector<8x8xf32>, vector<8x8xf32> -> vector<8x8xf32>
    %341 = vector.extract_strided_slice %337 {offsets = [8, 0], sizes = [8, 8], strides = [1, 1]} : vector<32x8xf32> to vector<8x8xf32>
    %342 = vector.extract_strided_slice %313 {offsets = [0, 8], sizes = [8, 8], strides = [1, 1]} : vector<8x32xf32> to vector<8x8xf32>
    %cst_106 = arith.constant dense<0.000000e+00> : vector<8x8xf32>
    %343 = tpu.matmul %341, %342, %cst_106 {dimension_numbers = #tpu.dot_dimension_numbers<[1], [0], [0], [1], [0, 0, 1, 1], [], []>} : vector<8x8xf32>, vector<8x8xf32>, vector<8x8xf32> -> vector<8x8xf32>
    %344 = vector.extract_strided_slice %337 {offsets = [16, 0], sizes = [8, 8], strides = [1, 1]} : vector<32x8xf32> to vector<8x8xf32>
    %345 = vector.extract_strided_slice %313 {offsets = [0, 16], sizes = [8, 8], strides = [1, 1]} : vector<8x32xf32> to vector<8x8xf32>
    %cst_107 = arith.constant dense<0.000000e+00> : vector<8x8xf32>
    %346 = tpu.matmul %344, %345, %cst_107 {dimension_numbers = #tpu.dot_dimension_numbers<[1], [0], [0], [1], [0, 0, 1, 1], [], []>} : vector<8x8xf32>, vector<8x8xf32>, vector<8x8xf32> -> vector<8x8xf32>
    %347 = vector.extract_strided_slice %337 {offsets = [24, 0], sizes = [8, 8], strides = [1, 1]} : vector<32x8xf32> to vector<8x8xf32>
    %348 = vector.extract_strided_slice %313 {offsets = [0, 24], sizes = [8, 8], strides = [1, 1]} : vector<8x32xf32> to vector<8x8xf32>
    %cst_108 = arith.constant dense<0.000000e+00> : vector<8x8xf32>
    %349 = tpu.matmul %347, %348, %cst_108 {dimension_numbers = #tpu.dot_dimension_numbers<[1], [0], [0], [1], [0, 0, 1, 1], [], []>} : vector<8x8xf32>, vector<8x8xf32>, vector<8x8xf32> -> vector<8x8xf32>
    %350 = tpu.concatenate %340, %343, %346, %349 in 1 : vector<8x8xf32>, vector<8x8xf32>, vector<8x8xf32>, vector<8x8xf32> -> vector<8x32xf32>
    %351 = vector.extract_strided_slice %308 {offsets = [8, 0], sizes = [8, 32], strides = [1, 1]} : vector<16x32xf32> to vector<8x32xf32>
    %352 = vector.extract_strided_slice %309 {offsets = [8, 0], sizes = [8, 32], strides = [1, 1]} : vector<16x32xf32> to vector<8x32xf32>
    %353 = vector.extract_strided_slice %310 {offsets = [8, 0], sizes = [8, 32], strides = [1, 1]} : vector<16x32xf32> to vector<8x32xf32>
    %354 = vector.extract_strided_slice %351 {offsets = [0, 0], sizes = [8, 8], strides = [1, 1]} : vector<8x32xf32> to vector<8x8xf32>
    %355 = vector.extract_strided_slice %352 {offsets = [0, 0], sizes = [8, 8], strides = [1, 1]} : vector<8x32xf32> to vector<8x8xf32>
    %cst_109 = arith.constant dense<0.000000e+00> : vector<8x8xf32>
    %356 = tpu.matmul %354, %355, %cst_109 {dimension_numbers = #tpu.dot_dimension_numbers<[1], [1], [0], [0], [0, 0, 1, 0], [], []>} : vector<8x8xf32>, vector<8x8xf32>, vector<8x8xf32> -> vector<8x8xf32>
    %357 = vector.extract_strided_slice %351 {offsets = [0, 8], sizes = [8, 8], strides = [1, 1]} : vector<8x32xf32> to vector<8x8xf32>
    %358 = vector.extract_strided_slice %352 {offsets = [0, 8], sizes = [8, 8], strides = [1, 1]} : vector<8x32xf32> to vector<8x8xf32>
    %cst_110 = arith.constant dense<0.000000e+00> : vector<8x8xf32>
    %359 = tpu.matmul %357, %358, %cst_110 {dimension_numbers = #tpu.dot_dimension_numbers<[1], [1], [0], [0], [0, 0, 1, 0], [], []>} : vector<8x8xf32>, vector<8x8xf32>, vector<8x8xf32> -> vector<8x8xf32>
    %360 = vector.extract_strided_slice %351 {offsets = [0, 16], sizes = [8, 8], strides = [1, 1]} : vector<8x32xf32> to vector<8x8xf32>
    %361 = vector.extract_strided_slice %352 {offsets = [0, 16], sizes = [8, 8], strides = [1, 1]} : vector<8x32xf32> to vector<8x8xf32>
    %cst_111 = arith.constant dense<0.000000e+00> : vector<8x8xf32>
    %362 = tpu.matmul %360, %361, %cst_111 {dimension_numbers = #tpu.dot_dimension_numbers<[1], [1], [0], [0], [0, 0, 1, 0], [], []>} : vector<8x8xf32>, vector<8x8xf32>, vector<8x8xf32> -> vector<8x8xf32>
    %363 = vector.extract_strided_slice %351 {offsets = [0, 24], sizes = [8, 8], strides = [1, 1]} : vector<8x32xf32> to vector<8x8xf32>
    %364 = vector.extract_strided_slice %352 {offsets = [0, 24], sizes = [8, 8], strides = [1, 1]} : vector<8x32xf32> to vector<8x8xf32>
    %cst_112 = arith.constant dense<0.000000e+00> : vector<8x8xf32>
    %365 = tpu.matmul %363, %364, %cst_112 {dimension_numbers = #tpu.dot_dimension_numbers<[1], [1], [0], [0], [0, 0, 1, 0], [], []>} : vector<8x8xf32>, vector<8x8xf32>, vector<8x8xf32> -> vector<8x8xf32>
    %366 = tpu.concatenate %356, %359, %362, %365 in 0 : vector<8x8xf32>, vector<8x8xf32>, vector<8x8xf32>, vector<8x8xf32> -> vector<32x8xf32>
    %367 = arith.addf %366, %4 : vector<32x8xf32>
    %cst_113 = arith.constant dense<0xFF800000> : vector<32xf32>
    %368 = vector.multi_reduction <maximumf>, %367, %cst_113 [1] : vector<32x8xf32> to vector<32xf32>
    %369 = vector.shape_cast %368 : vector<32xf32> to vector<32x1xf32>
    %370 = vector.broadcast %369 : vector<32x1xf32> to vector<32x8xf32>
    %371 = arith.subf %367, %370 : vector<32x8xf32>
    %372 = math.exp %371 : vector<32x8xf32>
    %cst_114 = arith.constant dense<0.000000e+00> : vector<32xf32>
    %373 = vector.multi_reduction <add>, %372, %cst_114 [1] : vector<32x8xf32> to vector<32xf32>
    %374 = vector.shape_cast %373 : vector<32xf32> to vector<32x1xf32>
    %375 = tpu.reciprocal %374 {approx = true} : vector<32x1xf32> -> vector<32x1xf32>
    %376 = vector.broadcast %375 : vector<32x1xf32> to vector<32x8xf32>
    %377 = arith.mulf %372, %376 : vector<32x8xf32>
    %378 = vector.extract_strided_slice %377 {offsets = [0, 0], sizes = [8, 8], strides = [1, 1]} : vector<32x8xf32> to vector<8x8xf32>
    %379 = vector.extract_strided_slice %353 {offsets = [0, 0], sizes = [8, 8], strides = [1, 1]} : vector<8x32xf32> to vector<8x8xf32>
    %cst_115 = arith.constant dense<0.000000e+00> : vector<8x8xf32>
    %380 = tpu.matmul %378, %379, %cst_115 {dimension_numbers = #tpu.dot_dimension_numbers<[1], [0], [0], [1], [0, 0, 1, 1], [], []>} : vector<8x8xf32>, vector<8x8xf32>, vector<8x8xf32> -> vector<8x8xf32>
    %381 = vector.extract_strided_slice %377 {offsets = [8, 0], sizes = [8, 8], strides = [1, 1]} : vector<32x8xf32> to vector<8x8xf32>
    %382 = vector.extract_strided_slice %353 {offsets = [0, 8], sizes = [8, 8], strides = [1, 1]} : vector<8x32xf32> to vector<8x8xf32>
    %cst_116 = arith.constant dense<0.000000e+00> : vector<8x8xf32>
    %383 = tpu.matmul %381, %382, %cst_116 {dimension_numbers = #tpu.dot_dimension_numbers<[1], [0], [0], [1], [0, 0, 1, 1], [], []>} : vector<8x8xf32>, vector<8x8xf32>, vector<8x8xf32> -> vector<8x8xf32>
    %384 = vector.extract_strided_slice %377 {offsets = [16, 0], sizes = [8, 8], strides = [1, 1]} : vector<32x8xf32> to vector<8x8xf32>
    %385 = vector.extract_strided_slice %353 {offsets = [0, 16], sizes = [8, 8], strides = [1, 1]} : vector<8x32xf32> to vector<8x8xf32>
    %cst_117 = arith.constant dense<0.000000e+00> : vector<8x8xf32>
    %386 = tpu.matmul %384, %385, %cst_117 {dimension_numbers = #tpu.dot_dimension_numbers<[1], [0], [0], [1], [0, 0, 1, 1], [], []>} : vector<8x8xf32>, vector<8x8xf32>, vector<8x8xf32> -> vector<8x8xf32>
    %387 = vector.extract_strided_slice %377 {offsets = [24, 0], sizes = [8, 8], strides = [1, 1]} : vector<32x8xf32> to vector<8x8xf32>
    %388 = vector.extract_strided_slice %353 {offsets = [0, 24], sizes = [8, 8], strides = [1, 1]} : vector<8x32xf32> to vector<8x8xf32>
    %cst_118 = arith.constant dense<0.000000e+00> : vector<8x8xf32>
    %389 = tpu.matmul %387, %388, %cst_118 {dimension_numbers = #tpu.dot_dimension_numbers<[1], [0], [0], [1], [0, 0, 1, 1], [], []>} : vector<8x8xf32>, vector<8x8xf32>, vector<8x8xf32> -> vector<8x8xf32>
    %390 = tpu.concatenate %380, %383, %386, %389 in 1 : vector<8x8xf32>, vector<8x8xf32>, vector<8x8xf32>, vector<8x8xf32> -> vector<8x32xf32>
    %391 = tpu.concatenate %350, %390 in 0 : vector<8x32xf32>, vector<8x32xf32> -> vector<16x32xf32>
    %c2_119 = arith.constant 2 : index
    %c0_120 = arith.constant 0 : index
    %c0_121 = arith.constant 0 : index
    %392 = vector.load %arg6[%c2_119, %c0_120, %c0_121] : memref<4x32x32xf32, #tpu.memory_space<vmem>>, vector<1x32x32xf32>
    %393 = vector.shape_cast %392 : vector<1x32x32xf32> to vector<32x32xf32>
    %cst_122 = arith.constant dense<0.000000e+00> : vector<16x32xf32>
    %394 = tpu.matmul %391, %393, %cst_122 {dimension_numbers = #tpu.dot_dimension_numbers<[1], [0], [0], [1], [0, 0, 1, 1], [], []>} : vector<16x32xf32>, vector<32x32xf32>, vector<16x32xf32> -> vector<16x32xf32>
    %395 = vector.extract_strided_slice %3 {offsets = [58, 0], sizes = [1, 32], strides = [1, 1]} : vector<68x32xf32> to vector<1x32xf32>
    %396 = vector.broadcast %395 : vector<1x32xf32> to vector<16x32xf32>
    %397 = arith.addf %394, %396 : vector<16x32xf32>
    %398 = vector.extract_strided_slice %3 {offsets = [59, 0], sizes = [1, 32], strides = [1, 1]} : vector<68x32xf32> to vector<1x32xf32>
    %399 = vector.extract_strided_slice %3 {offsets = [60, 0], sizes = [1, 32], strides = [1, 1]} : vector<68x32xf32> to vector<1x32xf32>
    %cst_123 = arith.constant dense<0.000000e+00> : vector<16xf32>
    %400 = vector.multi_reduction <add>, %397, %cst_123 [1] : vector<16x32xf32> to vector<16xf32>
    %401 = vector.shape_cast %400 : vector<16xf32> to vector<16x1xf32>
    %cst_124 = arith.constant 3.200000e+01 : f32
    %402 = vector.broadcast %cst_124 : f32 to vector<16x1xf32>
    %403 = arith.divf %401, %402 : vector<16x1xf32>
    %404 = arith.mulf %397, %397 : vector<16x32xf32>
    %cst_125 = arith.constant dense<0.000000e+00> : vector<16xf32>
    %405 = vector.multi_reduction <add>, %404, %cst_125 [1] : vector<16x32xf32> to vector<16xf32>
    %406 = vector.shape_cast %405 : vector<16xf32> to vector<16x1xf32>
    %cst_126 = arith.constant 3.200000e+01 : f32
    %407 = vector.broadcast %cst_126 : f32 to vector<16x1xf32>
    %408 = arith.divf %406, %407 : vector<16x1xf32>
    %409 = arith.mulf %403, %403 : vector<16x1xf32>
    %410 = arith.subf %408, %409 : vector<16x1xf32>
    %411 = vector.broadcast %403 : vector<16x1xf32> to vector<16x32xf32>
    %412 = arith.subf %397, %411 : vector<16x32xf32>
    %cst_127 = arith.constant 9.99999974E-6 : f32
    %413 = vector.broadcast %cst_127 : f32 to vector<16x1xf32>
    %414 = arith.addf %410, %413 : vector<16x1xf32>
    %415 = math.rsqrt %414 : vector<16x1xf32>
    %416 = vector.broadcast %415 : vector<16x1xf32> to vector<16x32xf32>
    %417 = arith.mulf %412, %416 : vector<16x32xf32>
    %418 = vector.broadcast %398 : vector<1x32xf32> to vector<16x32xf32>
    %419 = arith.mulf %417, %418 : vector<16x32xf32>
    %420 = vector.broadcast %399 : vector<1x32xf32> to vector<16x32xf32>
    %421 = arith.addf %419, %420 : vector<16x32xf32>
    %422 = arith.addf %300, %421 : vector<16x32xf32>
    %c3 = arith.constant 3 : index
    %c0_128 = arith.constant 0 : index
    %c0_129 = arith.constant 0 : index
    %423 = vector.load %arg4[%c3, %c0_128, %c0_129] : memref<4x32x96xf32, #tpu.memory_space<vmem>>, vector<1x32x96xf32>
    %424 = vector.shape_cast %423 : vector<1x32x96xf32> to vector<32x96xf32>
    %c3_130 = arith.constant 3 : index
    %c0_131 = arith.constant 0 : index
    %c0_132 = arith.constant 0 : index
    %425 = vector.load %arg5[%c3_130, %c0_131, %c0_132] : memref<4x1x96xf32, #tpu.memory_space<vmem>>, vector<1x1x96xf32>
    %426 = vector.shape_cast %425 : vector<1x1x96xf32> to vector<1x96xf32>
    %427 = vector.extract_strided_slice %424 {offsets = [0, 0], sizes = [32, 32], strides = [1, 1]} : vector<32x96xf32> to vector<32x32xf32>
    %cst_133 = arith.constant dense<0.000000e+00> : vector<16x32xf32>
    %428 = tpu.matmul %422, %427, %cst_133 {dimension_numbers = #tpu.dot_dimension_numbers<[1], [0], [0], [1], [0, 0, 1, 1], [], []>} : vector<16x32xf32>, vector<32x32xf32>, vector<16x32xf32> -> vector<16x32xf32>
    %429 = vector.extract_strided_slice %426 {offsets = [0, 0], sizes = [1, 32], strides = [1, 1]} : vector<1x96xf32> to vector<1x32xf32>
    %430 = vector.broadcast %429 : vector<1x32xf32> to vector<16x32xf32>
    %431 = arith.addf %428, %430 : vector<16x32xf32>
    %432 = vector.extract_strided_slice %424 {offsets = [0, 32], sizes = [32, 64], strides = [1, 1]} : vector<32x96xf32> to vector<32x64xf32>
    %cst_134 = arith.constant dense<0.000000e+00> : vector<16x64xf32>
    %433 = tpu.matmul %1, %432, %cst_134 {dimension_numbers = #tpu.dot_dimension_numbers<[1], [0], [0], [1], [0, 0, 1, 1], [], []>} : vector<16x32xf32>, vector<32x64xf32>, vector<16x64xf32> -> vector<16x64xf32>
    %434 = vector.extract_strided_slice %426 {offsets = [0, 32], sizes = [1, 64], strides = [1, 1]} : vector<1x96xf32> to vector<1x64xf32>
    %435 = vector.broadcast %434 : vector<1x64xf32> to vector<16x64xf32>
    %436 = arith.addf %433, %435 : vector<16x64xf32>
    %437 = vector.extract_strided_slice %436 {offsets = [0, 0], sizes = [16, 32], strides = [1, 1]} : vector<16x64xf32> to vector<16x32xf32>
    %438 = vector.extract_strided_slice %436 {offsets = [0, 32], sizes = [16, 32], strides = [1, 1]} : vector<16x64xf32> to vector<16x32xf32>
    %439 = vector.extract_strided_slice %431 {offsets = [0, 0], sizes = [8, 32], strides = [1, 1]} : vector<16x32xf32> to vector<8x32xf32>
    %440 = vector.extract_strided_slice %437 {offsets = [0, 0], sizes = [8, 32], strides = [1, 1]} : vector<16x32xf32> to vector<8x32xf32>
    %441 = vector.extract_strided_slice %438 {offsets = [0, 0], sizes = [8, 32], strides = [1, 1]} : vector<16x32xf32> to vector<8x32xf32>
    %442 = vector.extract_strided_slice %439 {offsets = [0, 0], sizes = [8, 8], strides = [1, 1]} : vector<8x32xf32> to vector<8x8xf32>
    %443 = vector.extract_strided_slice %440 {offsets = [0, 0], sizes = [8, 8], strides = [1, 1]} : vector<8x32xf32> to vector<8x8xf32>
    %cst_135 = arith.constant dense<0.000000e+00> : vector<8x8xf32>
    %444 = tpu.matmul %442, %443, %cst_135 {dimension_numbers = #tpu.dot_dimension_numbers<[1], [1], [0], [0], [0, 0, 1, 0], [], []>} : vector<8x8xf32>, vector<8x8xf32>, vector<8x8xf32> -> vector<8x8xf32>
    %445 = vector.extract_strided_slice %439 {offsets = [0, 8], sizes = [8, 8], strides = [1, 1]} : vector<8x32xf32> to vector<8x8xf32>
    %446 = vector.extract_strided_slice %440 {offsets = [0, 8], sizes = [8, 8], strides = [1, 1]} : vector<8x32xf32> to vector<8x8xf32>
    %cst_136 = arith.constant dense<0.000000e+00> : vector<8x8xf32>
    %447 = tpu.matmul %445, %446, %cst_136 {dimension_numbers = #tpu.dot_dimension_numbers<[1], [1], [0], [0], [0, 0, 1, 0], [], []>} : vector<8x8xf32>, vector<8x8xf32>, vector<8x8xf32> -> vector<8x8xf32>
    %448 = vector.extract_strided_slice %439 {offsets = [0, 16], sizes = [8, 8], strides = [1, 1]} : vector<8x32xf32> to vector<8x8xf32>
    %449 = vector.extract_strided_slice %440 {offsets = [0, 16], sizes = [8, 8], strides = [1, 1]} : vector<8x32xf32> to vector<8x8xf32>
    %cst_137 = arith.constant dense<0.000000e+00> : vector<8x8xf32>
    %450 = tpu.matmul %448, %449, %cst_137 {dimension_numbers = #tpu.dot_dimension_numbers<[1], [1], [0], [0], [0, 0, 1, 0], [], []>} : vector<8x8xf32>, vector<8x8xf32>, vector<8x8xf32> -> vector<8x8xf32>
    %451 = vector.extract_strided_slice %439 {offsets = [0, 24], sizes = [8, 8], strides = [1, 1]} : vector<8x32xf32> to vector<8x8xf32>
    %452 = vector.extract_strided_slice %440 {offsets = [0, 24], sizes = [8, 8], strides = [1, 1]} : vector<8x32xf32> to vector<8x8xf32>
    %cst_138 = arith.constant dense<0.000000e+00> : vector<8x8xf32>
    %453 = tpu.matmul %451, %452, %cst_138 {dimension_numbers = #tpu.dot_dimension_numbers<[1], [1], [0], [0], [0, 0, 1, 0], [], []>} : vector<8x8xf32>, vector<8x8xf32>, vector<8x8xf32> -> vector<8x8xf32>
    %454 = tpu.concatenate %444, %447, %450, %453 in 0 : vector<8x8xf32>, vector<8x8xf32>, vector<8x8xf32>, vector<8x8xf32> -> vector<32x8xf32>
    %cst_139 = arith.constant dense<0xFF800000> : vector<32xf32>
    %455 = vector.multi_reduction <maximumf>, %454, %cst_139 [1] : vector<32x8xf32> to vector<32xf32>
    %456 = vector.shape_cast %455 : vector<32xf32> to vector<32x1xf32>
    %457 = vector.broadcast %456 : vector<32x1xf32> to vector<32x8xf32>
    %458 = arith.subf %454, %457 : vector<32x8xf32>
    %459 = math.exp %458 : vector<32x8xf32>
    %cst_140 = arith.constant dense<0.000000e+00> : vector<32xf32>
    %460 = vector.multi_reduction <add>, %459, %cst_140 [1] : vector<32x8xf32> to vector<32xf32>
    %461 = vector.shape_cast %460 : vector<32xf32> to vector<32x1xf32>
    %462 = tpu.reciprocal %461 {approx = true} : vector<32x1xf32> -> vector<32x1xf32>
    %463 = vector.broadcast %462 : vector<32x1xf32> to vector<32x8xf32>
    %464 = arith.mulf %459, %463 : vector<32x8xf32>
    %465 = vector.extract_strided_slice %464 {offsets = [0, 0], sizes = [8, 8], strides = [1, 1]} : vector<32x8xf32> to vector<8x8xf32>
    %466 = vector.extract_strided_slice %441 {offsets = [0, 0], sizes = [8, 8], strides = [1, 1]} : vector<8x32xf32> to vector<8x8xf32>
    %cst_141 = arith.constant dense<0.000000e+00> : vector<8x8xf32>
    %467 = tpu.matmul %465, %466, %cst_141 {dimension_numbers = #tpu.dot_dimension_numbers<[1], [0], [0], [1], [0, 0, 1, 1], [], []>} : vector<8x8xf32>, vector<8x8xf32>, vector<8x8xf32> -> vector<8x8xf32>
    %468 = vector.extract_strided_slice %464 {offsets = [8, 0], sizes = [8, 8], strides = [1, 1]} : vector<32x8xf32> to vector<8x8xf32>
    %469 = vector.extract_strided_slice %441 {offsets = [0, 8], sizes = [8, 8], strides = [1, 1]} : vector<8x32xf32> to vector<8x8xf32>
    %cst_142 = arith.constant dense<0.000000e+00> : vector<8x8xf32>
    %470 = tpu.matmul %468, %469, %cst_142 {dimension_numbers = #tpu.dot_dimension_numbers<[1], [0], [0], [1], [0, 0, 1, 1], [], []>} : vector<8x8xf32>, vector<8x8xf32>, vector<8x8xf32> -> vector<8x8xf32>
    %471 = vector.extract_strided_slice %464 {offsets = [16, 0], sizes = [8, 8], strides = [1, 1]} : vector<32x8xf32> to vector<8x8xf32>
    %472 = vector.extract_strided_slice %441 {offsets = [0, 16], sizes = [8, 8], strides = [1, 1]} : vector<8x32xf32> to vector<8x8xf32>
    %cst_143 = arith.constant dense<0.000000e+00> : vector<8x8xf32>
    %473 = tpu.matmul %471, %472, %cst_143 {dimension_numbers = #tpu.dot_dimension_numbers<[1], [0], [0], [1], [0, 0, 1, 1], [], []>} : vector<8x8xf32>, vector<8x8xf32>, vector<8x8xf32> -> vector<8x8xf32>
    %474 = vector.extract_strided_slice %464 {offsets = [24, 0], sizes = [8, 8], strides = [1, 1]} : vector<32x8xf32> to vector<8x8xf32>
    %475 = vector.extract_strided_slice %441 {offsets = [0, 24], sizes = [8, 8], strides = [1, 1]} : vector<8x32xf32> to vector<8x8xf32>
    %cst_144 = arith.constant dense<0.000000e+00> : vector<8x8xf32>
    %476 = tpu.matmul %474, %475, %cst_144 {dimension_numbers = #tpu.dot_dimension_numbers<[1], [0], [0], [1], [0, 0, 1, 1], [], []>} : vector<8x8xf32>, vector<8x8xf32>, vector<8x8xf32> -> vector<8x8xf32>
    %477 = tpu.concatenate %467, %470, %473, %476 in 1 : vector<8x8xf32>, vector<8x8xf32>, vector<8x8xf32>, vector<8x8xf32> -> vector<8x32xf32>
    %478 = vector.extract_strided_slice %431 {offsets = [8, 0], sizes = [8, 32], strides = [1, 1]} : vector<16x32xf32> to vector<8x32xf32>
    %479 = vector.extract_strided_slice %437 {offsets = [8, 0], sizes = [8, 32], strides = [1, 1]} : vector<16x32xf32> to vector<8x32xf32>
    %480 = vector.extract_strided_slice %438 {offsets = [8, 0], sizes = [8, 32], strides = [1, 1]} : vector<16x32xf32> to vector<8x32xf32>
    %481 = vector.extract_strided_slice %478 {offsets = [0, 0], sizes = [8, 8], strides = [1, 1]} : vector<8x32xf32> to vector<8x8xf32>
    %482 = vector.extract_strided_slice %479 {offsets = [0, 0], sizes = [8, 8], strides = [1, 1]} : vector<8x32xf32> to vector<8x8xf32>
    %cst_145 = arith.constant dense<0.000000e+00> : vector<8x8xf32>
    %483 = tpu.matmul %481, %482, %cst_145 {dimension_numbers = #tpu.dot_dimension_numbers<[1], [1], [0], [0], [0, 0, 1, 0], [], []>} : vector<8x8xf32>, vector<8x8xf32>, vector<8x8xf32> -> vector<8x8xf32>
    %484 = vector.extract_strided_slice %478 {offsets = [0, 8], sizes = [8, 8], strides = [1, 1]} : vector<8x32xf32> to vector<8x8xf32>
    %485 = vector.extract_strided_slice %479 {offsets = [0, 8], sizes = [8, 8], strides = [1, 1]} : vector<8x32xf32> to vector<8x8xf32>
    %cst_146 = arith.constant dense<0.000000e+00> : vector<8x8xf32>
    %486 = tpu.matmul %484, %485, %cst_146 {dimension_numbers = #tpu.dot_dimension_numbers<[1], [1], [0], [0], [0, 0, 1, 0], [], []>} : vector<8x8xf32>, vector<8x8xf32>, vector<8x8xf32> -> vector<8x8xf32>
    %487 = vector.extract_strided_slice %478 {offsets = [0, 16], sizes = [8, 8], strides = [1, 1]} : vector<8x32xf32> to vector<8x8xf32>
    %488 = vector.extract_strided_slice %479 {offsets = [0, 16], sizes = [8, 8], strides = [1, 1]} : vector<8x32xf32> to vector<8x8xf32>
    %cst_147 = arith.constant dense<0.000000e+00> : vector<8x8xf32>
    %489 = tpu.matmul %487, %488, %cst_147 {dimension_numbers = #tpu.dot_dimension_numbers<[1], [1], [0], [0], [0, 0, 1, 0], [], []>} : vector<8x8xf32>, vector<8x8xf32>, vector<8x8xf32> -> vector<8x8xf32>
    %490 = vector.extract_strided_slice %478 {offsets = [0, 24], sizes = [8, 8], strides = [1, 1]} : vector<8x32xf32> to vector<8x8xf32>
    %491 = vector.extract_strided_slice %479 {offsets = [0, 24], sizes = [8, 8], strides = [1, 1]} : vector<8x32xf32> to vector<8x8xf32>
    %cst_148 = arith.constant dense<0.000000e+00> : vector<8x8xf32>
    %492 = tpu.matmul %490, %491, %cst_148 {dimension_numbers = #tpu.dot_dimension_numbers<[1], [1], [0], [0], [0, 0, 1, 0], [], []>} : vector<8x8xf32>, vector<8x8xf32>, vector<8x8xf32> -> vector<8x8xf32>
    %493 = tpu.concatenate %483, %486, %489, %492 in 0 : vector<8x8xf32>, vector<8x8xf32>, vector<8x8xf32>, vector<8x8xf32> -> vector<32x8xf32>
    %cst_149 = arith.constant dense<0xFF800000> : vector<32xf32>
    %494 = vector.multi_reduction <maximumf>, %493, %cst_149 [1] : vector<32x8xf32> to vector<32xf32>
    %495 = vector.shape_cast %494 : vector<32xf32> to vector<32x1xf32>
    %496 = vector.broadcast %495 : vector<32x1xf32> to vector<32x8xf32>
    %497 = arith.subf %493, %496 : vector<32x8xf32>
    %498 = math.exp %497 : vector<32x8xf32>
    %cst_150 = arith.constant dense<0.000000e+00> : vector<32xf32>
    %499 = vector.multi_reduction <add>, %498, %cst_150 [1] : vector<32x8xf32> to vector<32xf32>
    %500 = vector.shape_cast %499 : vector<32xf32> to vector<32x1xf32>
    %501 = tpu.reciprocal %500 {approx = true} : vector<32x1xf32> -> vector<32x1xf32>
    %502 = vector.broadcast %501 : vector<32x1xf32> to vector<32x8xf32>
    %503 = arith.mulf %498, %502 : vector<32x8xf32>
    %504 = vector.extract_strided_slice %503 {offsets = [0, 0], sizes = [8, 8], strides = [1, 1]} : vector<32x8xf32> to vector<8x8xf32>
    %505 = vector.extract_strided_slice %480 {offsets = [0, 0], sizes = [8, 8], strides = [1, 1]} : vector<8x32xf32> to vector<8x8xf32>
    %cst_151 = arith.constant dense<0.000000e+00> : vector<8x8xf32>
    %506 = tpu.matmul %504, %505, %cst_151 {dimension_numbers = #tpu.dot_dimension_numbers<[1], [0], [0], [1], [0, 0, 1, 1], [], []>} : vector<8x8xf32>, vector<8x8xf32>, vector<8x8xf32> -> vector<8x8xf32>
    %507 = vector.extract_strided_slice %503 {offsets = [8, 0], sizes = [8, 8], strides = [1, 1]} : vector<32x8xf32> to vector<8x8xf32>
    %508 = vector.extract_strided_slice %480 {offsets = [0, 8], sizes = [8, 8], strides = [1, 1]} : vector<8x32xf32> to vector<8x8xf32>
    %cst_152 = arith.constant dense<0.000000e+00> : vector<8x8xf32>
    %509 = tpu.matmul %507, %508, %cst_152 {dimension_numbers = #tpu.dot_dimension_numbers<[1], [0], [0], [1], [0, 0, 1, 1], [], []>} : vector<8x8xf32>, vector<8x8xf32>, vector<8x8xf32> -> vector<8x8xf32>
    %510 = vector.extract_strided_slice %503 {offsets = [16, 0], sizes = [8, 8], strides = [1, 1]} : vector<32x8xf32> to vector<8x8xf32>
    %511 = vector.extract_strided_slice %480 {offsets = [0, 16], sizes = [8, 8], strides = [1, 1]} : vector<8x32xf32> to vector<8x8xf32>
    %cst_153 = arith.constant dense<0.000000e+00> : vector<8x8xf32>
    %512 = tpu.matmul %510, %511, %cst_153 {dimension_numbers = #tpu.dot_dimension_numbers<[1], [0], [0], [1], [0, 0, 1, 1], [], []>} : vector<8x8xf32>, vector<8x8xf32>, vector<8x8xf32> -> vector<8x8xf32>
    %513 = vector.extract_strided_slice %503 {offsets = [24, 0], sizes = [8, 8], strides = [1, 1]} : vector<32x8xf32> to vector<8x8xf32>
    %514 = vector.extract_strided_slice %480 {offsets = [0, 24], sizes = [8, 8], strides = [1, 1]} : vector<8x32xf32> to vector<8x8xf32>
    %cst_154 = arith.constant dense<0.000000e+00> : vector<8x8xf32>
    %515 = tpu.matmul %513, %514, %cst_154 {dimension_numbers = #tpu.dot_dimension_numbers<[1], [0], [0], [1], [0, 0, 1, 1], [], []>} : vector<8x8xf32>, vector<8x8xf32>, vector<8x8xf32> -> vector<8x8xf32>
    %516 = tpu.concatenate %506, %509, %512, %515 in 1 : vector<8x8xf32>, vector<8x8xf32>, vector<8x8xf32>, vector<8x8xf32> -> vector<8x32xf32>
    %517 = tpu.concatenate %477, %516 in 0 : vector<8x32xf32>, vector<8x32xf32> -> vector<16x32xf32>
    %c3_155 = arith.constant 3 : index
    %c0_156 = arith.constant 0 : index
    %c0_157 = arith.constant 0 : index
    %518 = vector.load %arg6[%c3_155, %c0_156, %c0_157] : memref<4x32x32xf32, #tpu.memory_space<vmem>>, vector<1x32x32xf32>
    %519 = vector.shape_cast %518 : vector<1x32x32xf32> to vector<32x32xf32>
    %cst_158 = arith.constant dense<0.000000e+00> : vector<16x32xf32>
    %520 = tpu.matmul %517, %519, %cst_158 {dimension_numbers = #tpu.dot_dimension_numbers<[1], [0], [0], [1], [0, 0, 1, 1], [], []>} : vector<16x32xf32>, vector<32x32xf32>, vector<16x32xf32> -> vector<16x32xf32>
    %521 = vector.extract_strided_slice %3 {offsets = [61, 0], sizes = [1, 32], strides = [1, 1]} : vector<68x32xf32> to vector<1x32xf32>
    %522 = vector.broadcast %521 : vector<1x32xf32> to vector<16x32xf32>
    %523 = arith.addf %520, %522 : vector<16x32xf32>
    %524 = vector.extract_strided_slice %3 {offsets = [62, 0], sizes = [1, 32], strides = [1, 1]} : vector<68x32xf32> to vector<1x32xf32>
    %525 = vector.extract_strided_slice %3 {offsets = [63, 0], sizes = [1, 32], strides = [1, 1]} : vector<68x32xf32> to vector<1x32xf32>
    %cst_159 = arith.constant dense<0.000000e+00> : vector<16xf32>
    %526 = vector.multi_reduction <add>, %523, %cst_159 [1] : vector<16x32xf32> to vector<16xf32>
    %527 = vector.shape_cast %526 : vector<16xf32> to vector<16x1xf32>
    %cst_160 = arith.constant 3.200000e+01 : f32
    %528 = vector.broadcast %cst_160 : f32 to vector<16x1xf32>
    %529 = arith.divf %527, %528 : vector<16x1xf32>
    %530 = arith.mulf %523, %523 : vector<16x32xf32>
    %cst_161 = arith.constant dense<0.000000e+00> : vector<16xf32>
    %531 = vector.multi_reduction <add>, %530, %cst_161 [1] : vector<16x32xf32> to vector<16xf32>
    %532 = vector.shape_cast %531 : vector<16xf32> to vector<16x1xf32>
    %cst_162 = arith.constant 3.200000e+01 : f32
    %533 = vector.broadcast %cst_162 : f32 to vector<16x1xf32>
    %534 = arith.divf %532, %533 : vector<16x1xf32>
    %535 = arith.mulf %529, %529 : vector<16x1xf32>
    %536 = arith.subf %534, %535 : vector<16x1xf32>
    %537 = vector.broadcast %529 : vector<16x1xf32> to vector<16x32xf32>
    %538 = arith.subf %523, %537 : vector<16x32xf32>
    %cst_163 = arith.constant 9.99999974E-6 : f32
    %539 = vector.broadcast %cst_163 : f32 to vector<16x1xf32>
    %540 = arith.addf %536, %539 : vector<16x1xf32>
    %541 = math.rsqrt %540 : vector<16x1xf32>
    %542 = vector.broadcast %541 : vector<16x1xf32> to vector<16x32xf32>
    %543 = arith.mulf %538, %542 : vector<16x32xf32>
    %544 = vector.broadcast %524 : vector<1x32xf32> to vector<16x32xf32>
    %545 = arith.mulf %543, %544 : vector<16x32xf32>
    %546 = vector.broadcast %525 : vector<1x32xf32> to vector<16x32xf32>
    %547 = arith.addf %545, %546 : vector<16x32xf32>
    %548 = arith.addf %422, %547 : vector<16x32xf32>
    %c2_164 = arith.constant 2 : index
    %c0_165 = arith.constant 0 : index
    %c0_166 = arith.constant 0 : index
    %549 = vector.load %arg7[%c2_164, %c0_165, %c0_166] : memref<4x32x32xf32, #tpu.memory_space<vmem>>, vector<1x32x32xf32>
    %550 = vector.shape_cast %549 : vector<1x32x32xf32> to vector<32x32xf32>
    %cst_167 = arith.constant dense<0.000000e+00> : vector<16x32xf32>
    %551 = tpu.matmul %548, %550, %cst_167 {dimension_numbers = #tpu.dot_dimension_numbers<[1], [0], [0], [1], [0, 0, 1, 1], [], []>} : vector<16x32xf32>, vector<32x32xf32>, vector<16x32xf32> -> vector<16x32xf32>
    %552 = vector.extract_strided_slice %3 {offsets = [64, 0], sizes = [1, 32], strides = [1, 1]} : vector<68x32xf32> to vector<1x32xf32>
    %553 = vector.broadcast %552 : vector<1x32xf32> to vector<16x32xf32>
    %554 = arith.addf %551, %553 : vector<16x32xf32>
    %cst_168 = arith.constant 0.000000e+00 : f32
    %555 = vector.broadcast %cst_168 : f32 to vector<16x32xf32>
    %556 = arith.maximumf %554, %555 : vector<16x32xf32>
    %c3_169 = arith.constant 3 : index
    %c0_170 = arith.constant 0 : index
    %c0_171 = arith.constant 0 : index
    %557 = vector.load %arg7[%c3_169, %c0_170, %c0_171] : memref<4x32x32xf32, #tpu.memory_space<vmem>>, vector<1x32x32xf32>
    %558 = vector.shape_cast %557 : vector<1x32x32xf32> to vector<32x32xf32>
    %cst_172 = arith.constant dense<0.000000e+00> : vector<16x32xf32>
    %559 = tpu.matmul %556, %558, %cst_172 {dimension_numbers = #tpu.dot_dimension_numbers<[1], [0], [0], [1], [0, 0, 1, 1], [], []>} : vector<16x32xf32>, vector<32x32xf32>, vector<16x32xf32> -> vector<16x32xf32>
    %560 = vector.extract_strided_slice %3 {offsets = [65, 0], sizes = [1, 32], strides = [1, 1]} : vector<68x32xf32> to vector<1x32xf32>
    %561 = vector.broadcast %560 : vector<1x32xf32> to vector<16x32xf32>
    %562 = arith.addf %559, %561 : vector<16x32xf32>
    %563 = vector.extract_strided_slice %3 {offsets = [66, 0], sizes = [1, 32], strides = [1, 1]} : vector<68x32xf32> to vector<1x32xf32>
    %564 = vector.extract_strided_slice %3 {offsets = [67, 0], sizes = [1, 32], strides = [1, 1]} : vector<68x32xf32> to vector<1x32xf32>
    %cst_173 = arith.constant dense<0.000000e+00> : vector<16xf32>
    %565 = vector.multi_reduction <add>, %562, %cst_173 [1] : vector<16x32xf32> to vector<16xf32>
    %566 = vector.shape_cast %565 : vector<16xf32> to vector<16x1xf32>
    %cst_174 = arith.constant 3.200000e+01 : f32
    %567 = vector.broadcast %cst_174 : f32 to vector<16x1xf32>
    %568 = arith.divf %566, %567 : vector<16x1xf32>
    %569 = arith.mulf %562, %562 : vector<16x32xf32>
    %cst_175 = arith.constant dense<0.000000e+00> : vector<16xf32>
    %570 = vector.multi_reduction <add>, %569, %cst_175 [1] : vector<16x32xf32> to vector<16xf32>
    %571 = vector.shape_cast %570 : vector<16xf32> to vector<16x1xf32>
    %cst_176 = arith.constant 3.200000e+01 : f32
    %572 = vector.broadcast %cst_176 : f32 to vector<16x1xf32>
    %573 = arith.divf %571, %572 : vector<16x1xf32>
    %574 = arith.mulf %568, %568 : vector<16x1xf32>
    %575 = arith.subf %573, %574 : vector<16x1xf32>
    %576 = vector.broadcast %568 : vector<16x1xf32> to vector<16x32xf32>
    %577 = arith.subf %562, %576 : vector<16x32xf32>
    %cst_177 = arith.constant 9.99999974E-6 : f32
    %578 = vector.broadcast %cst_177 : f32 to vector<16x1xf32>
    %579 = arith.addf %575, %578 : vector<16x1xf32>
    %580 = math.rsqrt %579 : vector<16x1xf32>
    %581 = vector.broadcast %580 : vector<16x1xf32> to vector<16x32xf32>
    %582 = arith.mulf %577, %581 : vector<16x32xf32>
    %583 = vector.broadcast %563 : vector<1x32xf32> to vector<16x32xf32>
    %584 = arith.mulf %582, %583 : vector<16x32xf32>
    %585 = vector.broadcast %564 : vector<1x32xf32> to vector<16x32xf32>
    %586 = arith.addf %584, %585 : vector<16x32xf32>
    %587 = arith.addf %548, %586 : vector<16x32xf32>
    %c0_178 = arith.constant 0 : index
    %c0_179 = arith.constant 0 : index
    %588 = vector.load %arg8[%c0_178, %c0_179] : memref<16x32xf32, #tpu.memory_space<vmem>>, vector<16x32xf32>
    tpu.vector_store %arg8[%c0_178, %c0_179], %587 {strides = array<i32>} : memref<16x32xf32, #tpu.memory_space<vmem>>, vector<16x32xf32>,
    return
  }
}

</mosaic_0001>

<bundles_post_ra>
// kernel: tpu_custom_call.1
= control target key start
LH: loop header
LB: loop body
LE: loop exit
PB: predicated region body
PF: predicated region fallthrough
CT: control target
= control target key end

     0   :  { %13 = vsyncpa [#allocation3], 0  ;;  %s4457_s0 = inlined_call_operand.vmem [shape: s32[16,1], index: 0, kind: input, shape index: {}]   ;;  %s4458_s1 = inlined_call_operand.vmem [shape: f32[16,32], index: 1, kind: input, shape index: {}]   ;;  %s4459_s2 = inlined_call_operand.vmem [shape: f32[8,8], index: 2, kind: input, shape index: {}]   ;;  %s4460_s3 = inlined_call_operand.vmem [shape: f32[68,32], index: 3, kind: input, shape index: {}]   ;;  %s4461_s4 = inlined_call_operand.hbm [shape: f32[4,32,96], index: 4, kind: input, shape index: {}]   ;;  %s4462_s5 = inlined_call_operand.vmem [shape: f32[4,1,96], index: 5, kind: input, shape index: {}]   ;;  %s4463_s6 = inlined_call_operand.hbm [shape: f32[4,32,32], index: 6, kind: input, shape index: {}]   ;;  %s4464_s7 = inlined_call_operand.hbm [shape: f32[4,32,32], index: 7, kind: input, shape index: {}]   ;;  %s4465_s8 = inlined_call_operand.hbm [shape: f32[16,32], index: 8, kind: output, shape index: {}]  }
   0x1   :  { %14 = vsyncpa [#allocation6], 0 }
   0x2   :  { %15 = vsyncpa [#allocation4], 0  ;;  %s43_s29 = sshll.u32 %s4463_s6, 4  ;;  %s3675_s30 = smov [#allocation5]   ;;  %s44_s29 = int_to_ptr.hbm [resolvable:$true] %s43_s29 }
   0x3   :  { %s45_s9 = sshll.u32 %s3675_s30, 4  ;;  %s28_s12 = sshll.u32 %s4461_s4, 4  ;;  %s46_s9 = int_to_ptr.vmem [resolvable:$true] %s45_s9  ;;  %s29_s12 = int_to_ptr.hbm [resolvable:$true] %s28_s12 }
   0x4   :  { %s3676_s13 = smov 128   ;;  %s3677_s14 = smov 8  }
   0x5   :  { %51 = dma.hbm_to_vmem [thread:$0]  %s44_s29, 2048, %s46_s9, [#allocation6], %s3676_s13, %s3676_s13, %s3677_s14  }
   0x6   :  { %s3678_s15 = smov [#allocation2]   ;;  %s56_s6 = sshll.u32 %s4464_s7, 4  ;;  %s57_s6 = int_to_ptr.hbm [resolvable:$true] %s56_s6 }
   0x7   :  { %s30_s16 = sshll.u32 %s3678_s15, 4  ;;  %s3679_s4 = smov [#allocation7]   ;;  %s31_s16 = int_to_ptr.vmem [resolvable:$true] %s30_s16 }
   0x8   :  { %36 = dma.hbm_to_vmem [thread:$0]  %s29_s12, 2048, %s31_s16, [#allocation3], %s3676_s13, %s3676_s13, %s3677_s14  }
   0x9   :  { %s58_s19 = sshll.u32 %s3679_s4, 4  ;;  %s59_s19 = int_to_ptr.vmem [resolvable:$true] %s58_s19 }
   0xa   :  { %64 = dma.hbm_to_vmem [thread:$0]  %s57_s6, 2048, %s59_s19, [#allocation6], %s3676_s13, %s3676_s13, %s3677_s14  }
   0xb   :  { %3669 = dma.done.wait [#allocation3], 2048  }
   0xc   :  { %3670 = vsyncadd [#allocation3], 4294965248 }
   0xd   :  { %3671 = dma.done.wait [#allocation6], 4096  }
   0xe   :  { %3672 = vsyncadd [#allocation6], 4294963200  ;;  %v3680_v0 = vmov 0   ;;  %v77_v1 = vld [vmem:[%s4457_s0] sm:$0xff]  ;;  %v85_v2 = vld [vmem:[%s4460_s3 + $0x18] sm:$0xff]  ;;  %v91_v9 = vlaneseq  ;;  %vm105_vm0 = vcmask 261120  }
   0xf   :  { %3390 = vset.pattern.permute.xlu0 %v3680_v0  ;;  %124 = vmatpush.msra.mxu0 %v85_v2  ;;  %v84_v3 = vld [vmem:[%s4460_s3 + $0x10] sm:$0xff]  ;;  %v83_v4 = vld [vmem:[%s4460_s3 + $0x8] sm:$0xff]  ;;  %v82_v6 = vld [vmem:[%s4460_s3] sm:$0xff]  ;;  %v3681_v12 = vmov 0.0   ;;  %s3682_s16 = smov 72   ;;  %s3683_s17 = smov 120  }
  0x10   :  { %94 = vperm.xlu0 %3390, %v77_v1   ;;  %3364 = vmatpush.msra.mxu1 %v85_v2  ;;  %v78_v5 = vld [vmem:[%s4457_s0 + $0x8] sm:$0xff]  ;;  %v138_v7 = vld [vmem:[#allocation2 + $0x18] sm:$0xff]  ;;  %v137_v8 = vld [vmem:[#allocation2 + $0x10] sm:$0xff]  ;;  %v92_v10 = vand.u32 127, %v91_v9  ;;  %s3684_s18 = smov 96   ;;  %s3685_s6 = smov 80  }
  0x11   :  { %125 = vmatpush.msra.mxu0 %v84_v3  ;;  %v136_v16 = vld [vmem:[#allocation2 + $0x8] sm:$0xff]  ;;  %v135_v17 = vld [vmem:[#allocation2] sm:$0xff]  ;;  %s3686_s4 = smov 88   ;;  %s3687_s19 = smov 104   ;;  %vm175_vm3 = vcmask 64512   ;;  %vm449_vm4 = vcmask 130048  }
  0x12   :  { %3365 = vmatpush.msra.mxu1 %v84_v3  ;;  %v86_v18 = vld [vmem:[%s4460_s3 + $0x20] sm:$0xff]  ;;  %v87_v21 = vld [vmem:[%s4460_s3 + $0x28] sm:$0xff]  ;;  %s3688_s7 = smov 112   ;;  %s3689_s22 = smov 56   ;;  %vm451_vm5 = vcmask 195584  }
  0x13   :  { %126 = vmatpush.msra.mxu0 %v83_v4  ;;  %v3411_v24 = vld [vmem:[%s4462_s5] ss:$0 sm:$0xff]  ;;  %s3690_s23 = smov 48   ;;  %s3691_s24 = smov 64  }
  0x14   :  { %3366 = vmatpush.msra.mxu1 %v83_v4  ;;  %v3815_v34 = vld [vmem:[%s4459_s2] sm:$0xff]  ;;  %s3692_s25 = smov 40   ;;  %s3693_s26 = smov 16  }
  0x15   :  { %127 = vmatpush.msra.mxu0 %v82_v6  ;;  %s3694_s27 = smov 24  }
  0x16   :  { %3367 = vmatpush.msra.mxu1 %v82_v6 }
  0x18   :  { %97 = vperm.xlu0 %3390, %v78_v5   ;;  %161 = vmatpush.msrb.mxu1 %v138_v7 }
  0x1a   :  { %162 = vmatpush.msrb.mxu1 %v137_v8 }
  0x1c   :  { %163 = vmatpush.msrb.mxu1 %v136_v16 }
  0x1e   :  { %164 = vmatpush.msrb.mxu1 %v135_v17 }
  0x82   :  { %v95_v11 = vpop.permute.xlu0 %94 }
  0x83   :  { %vm99_vm1 = vcmp.eq.s32.totalorder %v92_v10, %v95_v11 }
  0x84   :  { %v3233_v13 = vsel %vm99_vm1, 1.0, %v3681_v12 }
  0x85   :  { %3235 = vmatmul.msk.f32.vlgmr.msra.gmra.mxu0 %vm105_vm0, %v3233_v13 }
  0x8a   :  { %v98_v14 = vpop.permute.xlu0 %97 }
  0x8b   :  { %vm100_vm2 = vcmp.eq.s32.totalorder %v92_v10, %v98_v14 }
  0x8c   :  { %v3234_v15 = vsel %vm100_vm2, 1.0, %v3681_v12 }
  0x8d   :  { %3236 = vmatmul.msk.f32.vlgmr.msra.gmra.mxu1 %vm105_vm0, %v3234_v15 }
 0x102   :  { %v129_v19 = vpop.f32.mrf.mxu0 }
 0x103   :  { %v3783_v20 = vadd.f32 %v129_v19, %v86_v18 }
 0x105   :  { %3237 = vmatmul.msk.f32.vlgmr.msrb.gmra.mxu1 %vm105_vm0, %v3783_v20 }
 0x10a   :  { %v132_v22 = vpop.f32.mrf.mxu1 }
 0x10b   :  { %v3790_v23 = vadd.f32 %v132_v22, %v87_v21 }
 0x10d   :  { %3238 = vmatmul.msk.f32.gmra.mxu1 %vm105_vm0, %v3790_v23 }
 0x182   :  { %v166_v25 = vpop.f32.mrf.mxu1 }
 0x183   :  { %v167_v26 = vadd.f32 %v3411_v24, %v166_v25 }
 0x185   :  { %258 = vrot.lane.b32.xlu0 %v167_v26, %s3682_s16  ;;  %200 = vrot.lane.b32.xlu2 %v167_v26, %s3683_s17 }
 0x186   :  { %173 = vrot.lane.b32.xlu1 %v167_v26, %s3684_s18 }
 0x18a   :  { %v169_v47 = vpop.f32.mrf.mxu1 }
 0x18b   :  { %v3826_v48 = vadd.f32 %v3411_v24, %v169_v47 }
 0x18d   :  { %230 = vrot.lane.b32.xlu2 %v167_v26, %s3685_s6 }
 0x18e   :  { %202 = vrot.lane.b32.xlu1 %v167_v26, %s3686_s4 }
 0x195   :  { %256 = vrot.lane.b32.xlu2 %v167_v26, %s3687_s19 }
 0x196   :  { %228 = vrot.lane.b32.xlu1 %v167_v26, %s3688_s7 }
 0x1df   :  { %v201_v27 = vpop.permute.xlu2 %200 }
 0x1e7   :  { %v231_v29 = vpop.permute.xlu2 %230 }
 0x1ef   :  { %v257_v33 = vpop.permute.xlu2 %256 }
 0x1f7   :  { %v259_v31 = vpop.permute.xlu0 %258 }
 0x1f8   :  { %v174_v28 = vpop.permute.xlu1 %173 }
 0x1f9   :  { %3239 = vmatpush.xpose.msk.msra.mxu2 %vm175_vm3, %v174_v28 }
 0x1fc   :  { %3240 = vmatmul.msk.f32.vlgmr.msra.gmra.mxu2 %vm175_vm3, %v167_v26 }
 0x1fd   :  { %3243 = vmatpush.xpose.msk.msrb.mxu2 %vm175_vm3, %v231_v29 }
 0x200   :  { %v203_v30 = vpop.permute.xlu1 %202 }
 0x201   :  { %3241 = vmatpush.xpose.msk.msra.mxu3 %vm175_vm3, %v203_v30 }
 0x204   :  { %3242 = vmatmul.msk.f32.vlgmr.msra.gmra.mxu3 %vm175_vm3, %v201_v27 }
 0x205   :  { %3245 = vmatpush.xpose.msk.msrb.mxu3 %vm175_vm3, %v259_v31 }
 0x208   :  { %v229_v32 = vpop.permute.xlu1 %228 }
 0x209   :  { %3244 = vmatmul.msk.f32.vlgmr.msrb.gmra.mxu2 %vm175_vm3, %v229_v32 }
 0x20c   :  { %3246 = vmatmul.msk.f32.vlgmr.msrb.gmra.mxu3 %vm175_vm3, %v257_v33 }
 0x27f   :  { %v197_v35 = vpop.f32.mrf.mxu2 }
 0x280   :  { %v284_v36 = vadd.f32 %v197_v35, %v3815_v34 }
 0x282   :  { %v288_v37 = vsel %vm175_vm3, %v284_v36, -inf }
 0x283   :  { %289 = vmax.xlane.f32.xlu0 %v288_v37 }
 0x287   :  { %v225_v38 = vpop.f32.mrf.mxu3 }
 0x288   :  { %v285_v39 = vadd.f32 %v225_v38, %v3815_v34 }
 0x28a   :  { %v291_v40 = vsel %vm175_vm3, %v285_v39, -inf }
 0x28b   :  { %292 = vmax.xlane.f32.xlu1 %v291_v40 }
 0x28c   :  { %v253_v41 = vpop.f32.mrf.mxu2 }
 0x28d   :  { %v286_v42 = vadd.f32 %v253_v41, %v3815_v34 }
 0x28f   :  { %v294_v43 = vsel %vm175_vm3, %v286_v42, -inf  ;;  %v281_v44 = vpop.f32.mrf.mxu3 }
 0x290   :  { %295 = vmax.xlane.f32.xlu2 %v294_v43  ;;  %v287_v45 = vadd.f32 %v281_v44, %v3815_v34 }
 0x292   :  { %v297_v46 = vsel %vm175_vm3, %v287_v45, -inf }
 0x297   :  { %358 = vrot.lane.b32.xlu0 %v167_v26, %s3689_s22 }
 0x298   :  { %298 = vmax.xlane.f32.xlu2 %v297_v46 }
 0x29f   :  { %482 = vrot.lane.b32.xlu0 %v3826_v48, %s3686_s4 }
 0x2a4   :  { %454 = vrot.lane.b32.xlu1 %v3826_v48, %s3684_s18 }
 0x2a7   :  { %384 = vrot.lane.b32.xlu0 %v167_v26, %s3690_s23 }
 0x2af   :  { %510 = vrot.lane.b32.xlu0 %v3826_v48, %s3685_s6 }
 0x2b0   :  { %332 = vrot.lane.b32.xlu2 %v167_v26, %s3691_s24 }
 0x2b8   :  { %480 = vrot.lane.b32.xlu2 %v3826_v48, %s3683_s17 }
 0x2c0   :  { %410 = vrot.lane.b32.xlu2 %v167_v26, %s3692_s25 }
 0x2c8   :  { %538 = vrot.lane.b32.xlu2 %v3826_v48, %s3682_s16 }
 0x2f6   :  { %v290_v49 = vpop.xlane.xlu0 %289 }
 0x2f7   :  { %v300_v50 = vsub.f32 %v284_v36, %v290_v49 }
 0x2f9   :  { %v304_v51 = vmul.f32 1.442695, %v300_v50 }
 0x2fb   :  { %3415 = vpow2.f32 %v304_v51 }
 0x2fe   :  { %v293_v52 = vpop.xlane.xlu1 %292 }
 0x2ff   :  { %v301_v53 = vsub.f32 %v285_v39, %v293_v52 }
 0x301   :  { %v3416_v54 = vpop.eup %3415  ;;  %v306_v55 = vmul.f32 1.442695, %v301_v53 }
 0x302   :  { %v312_v56 = vsel %vm175_vm3, %v3416_v54, 0.0 }
 0x303   :  { %3417 = vpow2.f32 %v306_v55  ;;  %v296_v57 = vpop.xlane.xlu2 %295  ;;  %313 = vadd.xlane.f32.xlu0 %v312_v56 }
 0x304   :  { %v302_v58 = vsub.f32 %v286_v42, %v296_v57 }
 0x306   :  { %v308_v59 = vmul.f32 1.442695, %v302_v58 }
 0x308   :  { %3419 = vpow2.f32 %v308_v59 }
 0x309   :  { %v3418_v60 = vpop.eup %3417  ;;  %v359_v61 = vpop.permute.xlu0 %358 }
 0x30a   :  { %379 = vmatpush.msra.mxu3 %v359_v61  ;;  %v315_v62 = vsel %vm175_vm3, %v3418_v60, 0.0 }
 0x30b   :  { %v299_v63 = vpop.xlane.xlu2 %298  ;;  %316 = vadd.xlane.f32.xlu1 %v315_v62 }
 0x30c   :  { %v303_v0 = vsub.f32 %v287_v45, %v299_v63 }
 0x30e   :  { %v310_v1 = vmul.f32 1.442695, %v303_v0  ;;  %v3420_v2 = vpop.eup %3419 }
 0x30f   :  { %v318_v4 = vsel %vm175_vm3, %v3420_v2, 0.0 }
 0x310   :  { %3421 = vpow2.f32 %v310_v1 }
 0x311   :  { %v483_v3 = vpop.permute.xlu0 %482 }
 0x312   :  { %3253 = vmatpush.xpose.msk.msrb.mxu3 %vm175_vm3, %v483_v3 }
 0x313   :  { %v333_v5 = vpop.permute.xlu2 %332  ;;  %319 = vadd.xlane.f32.xlu1 %v318_v4 }
 0x314   :  { %353 = vmatpush.msra.mxu2 %v333_v5  ;;  %v734_v5 = vld [vmem:[#allocation5 + $0x18] sm:$0xff] }
 0x316   :  { %v455_v6 = vpop.permute.xlu1 %454  ;;  %v3422_v7 = vpop.eup %3421 }
 0x317   :  { %536 = vrot.lane.b32.xlu0 %v3826_v48, %s3687_s19  ;;  %3251 = vmatpush.xpose.msk.msrb.mxu2 %vm175_vm3, %v455_v6  ;;  %v321_v9 = vsel %vm175_vm3, %v3422_v7, 0.0  ;;  %v733_v6 = vld [vmem:[#allocation5 + $0x10] sm:$0xff] }
 0x319   :  { %v385_v8 = vpop.permute.xlu0 %384 }
 0x31a   :  { %405 = vmatpush.msrb.mxu0 %v385_v8  ;;  %v732_v8 = vld [vmem:[#allocation5 + $0x8] sm:$0xff] }
 0x31b   :  { %v481_v10 = vpop.permute.xlu2 %480  ;;  %322 = vadd.xlane.f32.xlu1 %v321_v9  ;;  %v731_v9 = vld [vmem:[#allocation5] sm:$0xff] }
 0x31f   :  { %612 = vrot.lane.b32.xlu0 %v3826_v48, %s3691_s24 }
 0x321   :  { %v511_v11 = vpop.permute.xlu0 %510 }
 0x322   :  { %3255 = vmatpush.xpose.msk.msra.mxu0 %vm175_vm3, %v511_v11 }
 0x323   :  { %v411_v12 = vpop.permute.xlu2 %410 }
 0x324   :  { %431 = vmatpush.msra.mxu1 %v411_v12 }
 0x32b   :  { %v539_v13 = vpop.permute.xlu2 %538 }
 0x32c   :  { %3257 = vmatpush.xpose.msk.msrb.mxu1 %vm175_vm3, %v539_v13 }
 0x334   :  { %508 = vrot.lane.b32.xlu1 %v3826_v48, %s3688_s7 }
 0x376   :  { %v314_v14 = vpop.xlane.xlu0 %313 }
 0x377   :  { %3423 = vrcp.f32 %v314_v14 }
 0x37d   :  { %v3424_v15 = vpop.eup %3423 }
 0x37e   :  { %v328_v16 = vmul.f32 %v3424_v15, %v3416_v54  ;;  %v317_v17 = vpop.xlane.xlu1 %316 }
 0x37f   :  { %3425 = vrcp.f32 %v317_v17 }
 0x380   :  { %3247 = vmatmul.msk.f32.vlgmr.msra.gmra.mxu2 %vm175_vm3, %v328_v16 }
 0x385   :  { %v3426_v18 = vpop.eup %3425 }
 0x386   :  { %v329_v19 = vmul.f32 %v3426_v18, %v3418_v60  ;;  %v320_v21 = vpop.xlane.xlu1 %319 }
 0x387   :  { %3427 = vrcp.f32 %v320_v21 }
 0x388   :  { %3248 = vmatmul.msk.f32.vlgmr.msra.gmra.mxu3 %vm175_vm3, %v329_v19  ;;  %3252 = vmatmul.msk.f32.vlgmr.msrb.gmra.mxu2 %vm175_vm3, %v3826_v48 }
 0x389   :  { %v537_v22 = vpop.permute.xlu0 %536 }
 0x38d   :  { %v3428_v24 = vpop.eup %3427 }
 0x38e   :  { %v323_v25 = vpop.xlane.xlu1 %322  ;;  %v330_v26 = vmul.f32 %v3428_v24, %v3420_v2 }
 0x38f   :  { %3429 = vrcp.f32 %v323_v25 }
 0x390   :  { %3249 = vmatmul.msk.f32.vlgmr.msrb.gmra.mxu0 %vm175_vm3, %v330_v26  ;;  %3254 = vmatmul.msk.f32.vlgmr.msrb.gmra.mxu3 %vm175_vm3, %v481_v10 }
 0x391   :  { %v613_v27 = vpop.permute.xlu0 %612 }
 0x392   :  { %633 = vmatpush.msra.mxu2 %v613_v27 }
 0x394   :  { %754 = vmatpush.msrb.mxu2 %v734_v5  ;;  %v80_v5 = vld [vmem:[%s4458_s1 + $0x8] sm:$0xff] }
 0x395   :  { %v3430_v28 = vpop.eup %3429 }
 0x396   :  { %v331_v29 = vmul.f32 %v3430_v28, %v3422_v7  ;;  %755 = vmatpush.msrb.mxu2 %v733_v6 }
 0x398   :  { %3250 = vmatmul.msk.f32.vlgmr.msra.gmra.mxu1 %vm175_vm3, %v331_v29  ;;  %756 = vmatpush.msrb.mxu2 %v732_v8 }
 0x39a   :  { %757 = vmatpush.msrb.mxu2 %v731_v9 }
 0x3a0   :  { %3258 = vmatmul.msk.f32.vlgmr.msrb.gmra.mxu1 %vm175_vm3, %v537_v22 }
 0x3a6   :  { %v509_v30 = vpop.permute.xlu1 %508 }
 0x3a7   :  { %3256 = vmatmul.msk.f32.vlgmr.msra.gmra.mxu0 %vm175_vm3, %v509_v30 }
 0x403   :  { %v3864_v31 = vpop.f32.mrf.mxu2 }
 0x40b   :  { %v381_v32 = vpop.f32.mrf.mxu3  ;;  %v477_v33 = vpop.f32.mrf.mxu2 }
 0x40c   :  { %v564_v35 = vadd.f32 %v477_v33, %v3815_v34  ;;  %v831_v33 = vld [vmem:[#allocation2 + $0x30] sm:$0xff] }
 0x40d   :  { %v407_v41 = vpop.f32.mrf.mxu0 }
 0x40e   :  { %v568_v36 = vsel %vm175_vm3, %v564_v35, -inf }
 0x40f   :  { %569 = vmax.xlane.f32.xlu2 %v568_v36 }
 0x413   :  { %v505_v37 = vpop.f32.mrf.mxu3 }
 0x414   :  { %v565_v38 = vadd.f32 %v505_v37, %v3815_v34 }
 0x415   :  { %v433_v39 = vpop.f32.mrf.mxu1 }
 0x416   :  { %v571_v40 = vsel %vm175_vm3, %v565_v38, -inf }
 0x417   :  { %572 = vmax.xlane.f32.xlu1 %v571_v40  ;;  %v3903_v40 = vld [vmem:[%s4460_s3 + $0x30] sm:$0xff] }
 0x41d   :  { %v561_v42 = vpop.f32.mrf.mxu1 }
 0x41e   :  { %v567_v43 = vadd.f32 %v561_v42, %v3815_v34 }
 0x420   :  { %v577_v44 = vsel %vm175_vm3, %v567_v43, -inf }
 0x421   :  { %578 = vmax.xlane.f32.xlu2 %v577_v44 }
 0x424   :  { %v533_v45 = vpop.f32.mrf.mxu0 }
 0x425   :  { %v566_v46 = vadd.f32 %v533_v45, %v3815_v34 }
 0x427   :  { %v574_v47 = vsel %vm175_vm3, %v566_v46, -inf }
 0x428   :  { %575 = vmax.xlane.f32.xlu0 %v574_v47 }
 0x430   :  { %437 = vrot.lane.b32.xlu1 %v381_v32, %s3677_s14 }
 0x439   :  { %638 = vrot.lane.b32.xlu2 %v3826_v48, %s3689_s22 }
 0x43c   :  { %441 = vrot.lane.b32.xlu0 %v407_v41, %s3693_s26  ;;  %v735_v41 = vperm.slane %v3903_v40, 0 }
 0x482   :  { %v570_v49 = vpop.xlane.xlu2 %569 }
 0x483   :  { %v580_v50 = vsub.f32 %v564_v35, %v570_v49  ;;  %v832_v35 = vld [vmem:[#allocation2 + $0x38] sm:$0xff] }
 0x484   :  { %v3391_v36 = vpack.i.bf16 %v831_v33, %v832_v35 }
 0x485   :  { %v584_v51 = vmul.f32 1.442695, %v580_v50 }
 0x487   :  { %3431 = vpow2.f32 %v584_v51 }
 0x48a   :  { %v573_v52 = vpop.xlane.xlu1 %572 }
 0x48b   :  { %v581_v53 = vsub.f32 %v565_v38, %v573_v52  ;;  %v830_v38 = vld [vmem:[#allocation2 + $0x28] sm:$0xff] }
 0x48d   :  { %v3432_v54 = vpop.eup %3431  ;;  %v586_v55 = vmul.f32 1.442695, %v581_v53 }
 0x48e   :  { %v592_v34 = vsel %vm175_vm3, %v3432_v54, 0.0 }
 0x48f   :  { %3433 = vpow2.f32 %v586_v55  ;;  %593 = vadd.xlane.f32.xlu1 %v592_v34  ;;  %v3695_v55 = vmov 32.0  }
 0x494   :  { %v579_v56 = vpop.xlane.xlu2 %578 }
 0x495   :  { %v3434_v57 = vpop.eup %3433  ;;  %v583_v58 = vsub.f32 %v567_v43, %v579_v56 }
 0x496   :  { %v595_v59 = vsel %vm175_vm3, %v3434_v57, 0.0 }
 0x497   :  { %v590_v60 = vmul.f32 1.442695, %v583_v58  ;;  %596 = vadd.xlane.f32.xlu0 %v595_v59 }
 0x499   :  { %3435 = vpow2.f32 %v590_v60 }
 0x49b   :  { %v576_v61 = vpop.xlane.xlu0 %575 }
 0x49c   :  { %v582_v62 = vsub.f32 %v566_v46, %v576_v61  ;;  %v639_v63 = vpop.permute.xlu2 %638 }
 0x49d   :  { %659 = vmatpush.msra.mxu3 %v639_v63 }
 0x49e   :  { %v588_v0 = vmul.f32 1.442695, %v582_v62 }
 0x49f   :  { %v3436_v1 = vpop.eup %3435  ;;  %856 = vmatpush.msrb.mxu3 %v832_v35 }
 0x4a0   :  { %3437 = vpow2.f32 %v588_v0  ;;  %v601_v2 = vsel %vm175_vm3, %v3436_v1, 0.0 }
 0x4a1   :  { %602 = vadd.xlane.f32.xlu1 %v601_v2  ;;  %857 = vmatpush.msrb.mxu3 %v831_v33  ;;  %v79_v2 = vld [vmem:[%s4458_s1] sm:$0xff] }
 0x4a2   :  { %v438_v7 = vpop.permute.xlu1 %437 }
 0x4a3   :  { %v448_v17 = vsel %vm175_vm3, %v3864_v31, %v438_v7  ;;  %858 = vmatpush.msrb.mxu3 %v830_v38 }
 0x4a6   :  { %v3438_v3 = vpop.eup %3437 }
 0x4a7   :  { %v598_v4 = vsel %vm175_vm3, %v3438_v3, 0.0 }
 0x4a8   :  { %599 = vadd.xlane.f32.xlu2 %v598_v4 }
 0x4ab   :  { %445 = vrot.lane.b32.xlu0 %v433_v39, %s3694_s27  ;;  %v829_v39 = vld [vmem:[#allocation2 + $0x20] sm:$0xff] }
 0x4ac   :  { %859 = vmatpush.msrb.mxu3 %v829_v39  ;;  %v3396_v42 = vpack.i.bf16 %v829_v39, %v830_v38 }
 0x4ae   :  { %v442_v10 = vpop.permute.xlu0 %441 }
 0x4af   :  { %v450_v18 = vsel %vm449_vm4, %v448_v17, %v442_v10  ;;  %v3930_v10 = vld [vmem:[%s4462_s5 + $0x1] ss:$0 sm:$0xff] }
 0x4ba   :  { %690 = vrot.lane.b32.xlu1 %v3826_v48, %s3692_s25 }
 0x4c0   :  { %664 = vrot.lane.b32.xlu2 %v3826_v48, %s3690_s23 }
 0x502   :  { %v594_v11 = vpop.xlane.xlu1 %593 }
 0x503   :  { %3439 = vrcp.f32 %v594_v11 }
 0x509   :  { %v3440_v12 = vpop.eup %3439 }
 0x50a   :  { %v608_v13 = vmul.f32 %v3440_v12, %v3432_v54  ;;  %v597_v14 = vpop.xlane.xlu0 %596 }
 0x50b   :  { %3441 = vrcp.f32 %v597_v14 }
 0x50c   :  { %3259 = vmatmul.msk.f32.vlgmr.msra.gmra.mxu2 %vm175_vm3, %v608_v13 }
 0x511   :  { %v3442_v15 = vpop.eup %3441 }
 0x512   :  { %v609_v48 = vmul.f32 %v3442_v15, %v3434_v57 }
 0x514   :  { %3260 = vmatmul.msk.f32.vlgmr.msra.gmra.mxu3 %vm175_vm3, %v609_v48  ;;  %v603_v22 = vpop.xlane.xlu1 %602 }
 0x51b   :  { %v600_v16 = vpop.xlane.xlu2 %599 }
 0x51c   :  { %3443 = vrcp.f32 %v600_v16 }
 0x51d   :  { %v446_v19 = vpop.permute.xlu0 %445  ;;  %3445 = vrcp.f32 %v603_v22 }
 0x51e   :  { %v452_v21 = vsel %vm451_vm5, %v450_v18, %v446_v19  ;;  %3447 = vrcp.f32 %v3695_v55  ;;  %v820_v19 = vperm.slane %v3903_v40, 1 }
 0x51f   :  { %3263 = vmatmul.msk.f32.vlgmr.msrb.gmra.mxu2 %vm105_vm0, %v452_v21 }
 0x522   :  { %v3444_v24 = vpop.eup %3443 }
 0x523   :  { %v610_v25 = vmul.f32 %v3444_v24, %v3438_v3  ;;  %v665_v26 = vpop.permute.xlu2 %664  ;;  %v3446_v27 = vpop.eup %3445  ;;  %v823_v24 = vperm.slane %v3903_v40, 2 }
 0x524   :  { %685 = vmatpush.msrb.mxu0 %v665_v26  ;;  %v611_v28 = vmul.f32 %v3446_v27, %v3436_v1  ;;  %v3448_v34 = vpop.eup %3447 }
 0x525   :  { %3261 = vmatmul.msk.f32.vlgmr.msrb.gmra.mxu0 %vm175_vm3, %v610_v25  ;;  %v772_v57 = vmul.f32 32.0, %v3448_v34  ;;  %vm776_vm6 = vweird.f32 %v3448_v34 }
 0x527   :  { %v773_v58 = vsub.f32 1.0, %v772_v57 }
 0x529   :  { %v774_v62 = vmul.f32 %v3448_v34, %v773_v58 }
 0x52b   :  { %v775_v1 = vadd.f32 %v3448_v34, %v774_v62 }
 0x52c   :  { %v691_v29 = vpop.permute.xlu1 %690 }
 0x52d   :  { %711 = vmatpush.msra.mxu1 %v691_v29  ;;  %v3919_v3 = vsel %vm776_vm6, %v3448_v34, %v775_v1 }
 0x52e   :  { %3262 = vmatmul.msk.f32.vlgmr.msra.gmra.mxu1 %vm175_vm3, %v611_v28 }
 0x58f   :  { %v635_v37 = vpop.f32.mrf.mxu2 }
 0x597   :  { %v661_v30 = vpop.f32.mrf.mxu3 }
 0x598   :  { %717 = vrot.lane.b32.xlu2 %v661_v30, %s3677_s14 }
 0x5a2   :  { %v687_v31 = vpop.f32.mrf.mxu0  ;;  %v759_v43 = vpop.f32.mrf.mxu2 }
 0x5a3   :  { %721 = vrot.lane.b32.xlu0 %v687_v31, %s3693_s26  ;;  %v760_v44 = vadd.f32 %v759_v43, %v735_v41 }
 0x5a5   :  { %v765_v45 = vsel %vm105_vm0, %v760_v44, 0.0  ;;  %v780_v46 = vmul.f32 %v760_v44, %v760_v44 }
 0x5a7   :  { %v782_v47 = vsel %vm105_vm0, %v780_v46, 0.0 }
 0x5ab   :  { %v713_v32 = vpop.f32.mrf.mxu1 }
 0x5ac   :  { %725 = vrot.lane.b32.xlu1 %v713_v32, %s3694_s27 }
 0x5b4   :  { %3392 = vrot.lane.b32.xlu1 %v3391_v36, %s3684_s18 }
 0x5bc   :  { %3397 = vrot.lane.b32.xlu1 %v3396_v42, %s3684_s18 }
 0x5c1   :  { %766 = vadd.xlane.f32.xlu2 %v765_v45 }
 0x5c4   :  { %883 = vrot.lane.b32.xlu1 %v3930_v10, %s3684_s18 }
 0x5cd   :  { %783 = vadd.xlane.f32.xlu0 %v782_v47 }
 0x5f2   :  { %v718_v49 = vpop.permute.xlu2 %717 }
 0x5f3   :  { %v728_v51 = vsel %vm175_vm3, %v635_v37, %v718_v49 }
 0x615   :  { %v722_v50 = vpop.permute.xlu0 %721 }
 0x616   :  { %v729_v52 = vsel %vm449_vm4, %v728_v51, %v722_v50 }
 0x61e   :  { %v726_v53 = vpop.permute.xlu1 %725 }
 0x61f   :  { %v730_v54 = vsel %vm451_vm5, %v729_v52, %v726_v53 }
 0x620   :  { %3264 = vmatmul.msk.f32.gmra.mxu2 %vm105_vm0, %v730_v54 }
 0x626   :  { %v3393_v56 = vpop.permute.xlu1 %3392 }
 0x627   :  { %v3394_v59 = vunpack.i.l.bf16 %v3393_v56  ;;  %v3395_v60 = vunpack.i.h.bf16 %v3393_v56 }
 0x629   :  { %904 = vmatpush.msra.mxu0 %v3394_v59 }
 0x62b   :  { %905 = vmatpush.msra.mxu0 %v3395_v60 }
 0x62e   :  { %v3398_v61 = vpop.permute.xlu1 %3397 }
 0x62f   :  { %v3399_v63 = vunpack.i.l.bf16 %v3398_v61  ;;  %v3400_v0 = vunpack.i.h.bf16 %v3398_v61 }
 0x631   :  { %906 = vmatpush.msra.mxu0 %v3399_v63 }
 0x633   :  { %907 = vmatpush.msra.mxu0 %v3400_v0 }
 0x634   :  { %3268 = vmatmul.msk.f32.vlgmr.msra.gmra.mxu0 %vm105_vm0, %v79_v2  ;;  %v767_v4 = vpop.xlane.xlu2 %766 }
 0x635   :  { %v778_v6 = vmul.f32 %v3919_v3, %v767_v4 }
 0x636   :  { %v3945_v35 = vpop.permute.xlu1 %883 }
 0x637   :  { %v790_v8 = vmul.f32 %v778_v6, %v778_v6  ;;  %v794_v18 = vsub.f32 %v760_v44, %v778_v6 }
 0x63c   :  { %3269 = vmatmul.msk.f32.gmra.mxu0 %vm105_vm0, %v80_v5 }
 0x640   :  { %v784_v7 = vpop.xlane.xlu0 %783 }
 0x641   :  { %v788_v9 = vmul.f32 %v784_v7, %v3919_v3 }
 0x643   :  { %v792_v11 = vsub.f32 %v788_v9, %v790_v8 }
 0x645   :  { %v796_v12 = vadd.f32 1e-05, %v792_v11 }
 0x647   :  { %3449 = vrsqrt.f32 %v796_v12  ;;  %vm804_vm8 = vweird.f32 %v796_v12 }
 0x64d   :  { %v3450_v13 = vpop.eup %3449 }
 0x64e   :  { %v799_v14 = vmul.f32 %v3450_v13, %v796_v12  ;;  %vm805_vm7 = vweird.f32 %v3450_v13 }
 0x64f   :  { %vm806_vm9 = vmor %vm804_vm8, %vm805_vm7 }
 0x650   :  { %v800_v15 = vmul.f32 %v3450_v13, %v799_v14 }
 0x652   :  { %v801_v48 = vmul.f32 0.5, %v800_v15 }
 0x654   :  { %v802_v16 = vsub.f32 1.5, %v801_v48 }
 0x656   :  { %v803_v17 = vmul.f32 %v3450_v13, %v802_v16 }
 0x658   :  { %v807_v21 = vsel %vm806_vm9, %v3450_v13, %v803_v17 }
 0x659   :  { %v818_v22 = vmul.f32 %v807_v21, %v794_v18 }
 0x65b   :  { %v821_v25 = vmul.f32 %v820_v19, %v818_v22 }
 0x65d   :  { %v824_v26 = vadd.f32 %v823_v24, %v821_v25 }
 0x65f   :  { %v3937_v27 = vadd.f32 %v824_v26, %v3783_v20 }
 0x661   :  { %3266 = vmatmul.msk.f32.vlgmr.msrb.gmra.mxu3 %vm105_vm0, %v3937_v27 }
 0x6a3   :  { %v762_v28 = vpop.f32.mrf.mxu2 }
 0x6a4   :  { %v763_v29 = vadd.f32 %v762_v28, %v735_v41 }
 0x6a6   :  { %v768_v30 = vsel %vm105_vm0, %v763_v29, 0.0  ;;  %v781_v31 = vmul.f32 %v763_v29, %v763_v29 }
 0x6a7   :  { %769 = vadd.xlane.f32.xlu1 %v768_v30 }
 0x6a8   :  { %v785_v32 = vsel %vm105_vm0, %v781_v31, 0.0 }
 0x6a9   :  { %786 = vadd.xlane.f32.xlu2 %v785_v32 }
 0x6b1   :  { %v909_v33 = vpop.f32.mrf.mxu0 }
 0x6b2   :  { %v3948_v20 = vadd.f32 %v909_v33, %v3945_v35 }
 0x6b4   :  { %971 = vrot.lane.b32.xlu0 %v3948_v20, %s3688_s7  ;;  %3270 = vmatpush.xpose.msk.msrb.mxu1 %vm175_vm3, %v3948_v20 }
 0x6b9   :  { %v912_v15 = vpop.f32.mrf.mxu0 }
 0x6ba   :  { %v3984_v48 = vadd.f32 %v912_v15, %v3945_v35 }
 0x6c1   :  { %999 = vrot.lane.b32.xlu2 %v3948_v20, %s3687_s19 }
 0x6e4   :  { %v861_v36 = vpop.f32.mrf.mxu3 }
 0x6e5   :  { %v862_v37 = vadd.f32 %v3930_v10, %v861_v36 }
 0x6e7   :  { %997 = vrot.lane.b32.xlu1 %v862_v37, %s3687_s19  ;;  %941 = vrot.lane.b32.xlu2 %v862_v37, %s3683_s17 }
 0x6e8   :  { %969 = vrot.lane.b32.xlu0 %v862_v37, %s3688_s7  ;;  %3271 = vmatmul.msk.f32.vlgmr.msrb.gmra.mxu1 %vm175_vm3, %v862_v37 }
 0x6f0   :  { %943 = vrot.lane.b32.xlu0 %v3948_v20, %s3683_s17 }
 0x71a   :  { %v770_v38 = vpop.xlane.xlu1 %769 }
 0x71b   :  { %v779_v39 = vmul.f32 %v3919_v3, %v770_v38 }
 0x71c   :  { %v787_v41 = vpop.xlane.xlu2 %786 }
 0x71d   :  { %v791_v42 = vmul.f32 %v779_v39, %v779_v39  ;;  %v789_v43 = vmul.f32 %v787_v41, %v3919_v3  ;;  %v795_v55 = vsub.f32 %v763_v29, %v779_v39 }
 0x71f   :  { %v793_v44 = vsub.f32 %v789_v43, %v791_v42 }
 0x721   :  { %v797_v45 = vadd.f32 1e-05, %v793_v44 }
 0x723   :  { %3451 = vrsqrt.f32 %v797_v45  ;;  %vm814_vm11 = vweird.f32 %v797_v45 }
 0x724   :  { %v1000_v46 = vpop.permute.xlu2 %999 }
 0x725   :  { %3276 = vmatpush.xpose.msk.msra.mxu3 %vm175_vm3, %v1000_v46 }
 0x726   :  { %v972_v50 = vpop.permute.xlu0 %971 }
 0x727   :  { %3274 = vmatpush.xpose.msk.msra.mxu2 %vm175_vm3, %v972_v50 }
 0x729   :  { %v3452_v47 = vpop.eup %3451 }
 0x72a   :  { %v809_v49 = vmul.f32 %v3452_v47, %v797_v45  ;;  %vm815_vm10 = vweird.f32 %v3452_v47 }
 0x72b   :  { %vm816_vm12 = vmor %vm814_vm11, %vm815_vm10 }
 0x72c   :  { %v810_v51 = vmul.f32 %v3452_v47, %v809_v49 }
 0x72e   :  { %v811_v52 = vmul.f32 0.5, %v810_v51 }
 0x730   :  { %v812_v53 = vsub.f32 1.5, %v811_v52 }
 0x732   :  { %v813_v54 = vmul.f32 %v3452_v47, %v812_v53 }
 0x734   :  { %v817_v34 = vsel %vm816_vm12, %v3452_v47, %v813_v54 }
 0x735   :  { %v819_v56 = vmul.f32 %v817_v34, %v795_v55 }
 0x737   :  { %v822_v57 = vmul.f32 %v820_v19, %v819_v56 }
 0x739   :  { %v825_v58 = vadd.f32 %v823_v24, %v822_v57 }
 0x73b   :  { %v3968_v59 = vadd.f32 %v825_v58, %v3790_v23 }
 0x73d   :  { %3267 = vmatmul.msk.f32.gmra.mxu3 %vm105_vm0, %v3968_v59 }
 0x741   :  { %v942_v63 = vpop.permute.xlu2 %941 }
 0x759   :  { %v998_v60 = vpop.permute.xlu1 %997 }
 0x75a   :  { %v970_v61 = vpop.permute.xlu0 %969  ;;  %3277 = vmatmul.msk.f32.vlgmr.msra.gmra.mxu3 %vm175_vm3, %v998_v60 }
 0x75b   :  { %3275 = vmatmul.msk.f32.vlgmr.msra.gmra.mxu2 %vm175_vm3, %v970_v61 }
 0x762   :  { %v944_v62 = vpop.permute.xlu0 %943 }
 0x763   :  { %3272 = vmatpush.xpose.msk.msra.mxu1 %vm175_vm3, %v944_v62 }
 0x765   :  { %v938_v0 = vpop.f32.mrf.mxu1 }
 0x766   :  { %3273 = vmatmul.msk.f32.vlgmr.msra.gmra.mxu1 %vm175_vm3, %v942_v63  ;;  %v1025_v1 = vsel %vm175_vm3, %v938_v0, -inf }
 0x767   :  { %1026 = vmax.xlane.f32.xlu0 %v1025_v1 }
 0x7c0   :  { %v864_v23 = vpop.f32.mrf.mxu3 }
 0x7c1   :  { %v865_v16 = vadd.f32 %v3930_v10, %v864_v23 }
 0x7da   :  { %v1027_v2 = vpop.xlane.xlu0 %1026 }
 0x7db   :  { %v1037_v4 = vsub.f32 %v938_v0, %v1027_v2 }
 0x7dd   :  { %v1041_v5 = vmul.f32 1.442695, %v1037_v4  ;;  %v1022_v6 = vpop.f32.mrf.mxu3 }
 0x7de   :  { %v994_v7 = vpop.f32.mrf.mxu2  ;;  %v1034_v8 = vsel %vm175_vm3, %v1022_v6, -inf }
 0x7df   :  { %3453 = vpow2.f32 %v1041_v5  ;;  %1035 = vmax.xlane.f32.xlu1 %v1034_v8  ;;  %v1031_v9 = vsel %vm175_vm3, %v994_v7, -inf }
 0x7e0   :  { %1032 = vmax.xlane.f32.xlu2 %v1031_v9 }
 0x7e3   :  { %v966_v11 = vpop.f32.mrf.mxu1 }
 0x7e4   :  { %v1028_v12 = vsel %vm175_vm3, %v966_v11, -inf }
 0x7e5   :  { %v3454_v13 = vpop.eup %3453  ;;  %1029 = vmax.xlane.f32.xlu0 %v1028_v12 }
 0x7e6   :  { %v1049_v14 = vsel %vm175_vm3, %v3454_v13, 0.0 }
 0x7e8   :  { %1050 = vadd.xlane.f32.xlu2 %v1049_v14 }
 0x7f8   :  { %1069 = vrot.lane.b32.xlu1 %v3948_v20, %s3684_s18 }
 0x800   :  { %1147 = vrot.lane.b32.xlu2 %v3948_v20, %s3682_s16  ;;  %1244 = vrot.lane.b32.xlu1 %v3984_v48, %s3688_s7 }
 0x808   :  { %1272 = vrot.lane.b32.xlu2 %v3984_v48, %s3687_s19  ;;  %1242 = vrot.lane.b32.xlu1 %v865_v16, %s3688_s7 }
 0x810   :  { %1270 = vrot.lane.b32.xlu2 %v865_v16, %s3687_s19  ;;  %1095 = vrot.lane.b32.xlu1 %v3948_v20, %s3686_s4 }
 0x818   :  { %1214 = vrot.lane.b32.xlu1 %v865_v16, %s3683_s17 }
 0x852   :  { %v1036_v17 = vpop.xlane.xlu1 %1035 }
 0x853   :  { %v1040_v18 = vsub.f32 %v1022_v6, %v1036_v17  ;;  %v1033_v19 = vpop.xlane.xlu2 %1032 }
 0x854   :  { %v1039_v21 = vsub.f32 %v994_v7, %v1033_v19 }
 0x855   :  { %v1047_v22 = vmul.f32 1.442695, %v1040_v18 }
 0x856   :  { %v1045_v24 = vmul.f32 1.442695, %v1039_v21 }
 0x857   :  { %3455 = vpow2.f32 %v1047_v22 }
 0x858   :  { %3457 = vpow2.f32 %v1045_v24  ;;  %v1030_v39 = vpop.xlane.xlu0 %1029 }
 0x859   :  { %v1038_v41 = vsub.f32 %v966_v11, %v1030_v39 }
 0x85b   :  { %v1051_v10 = vpop.xlane.xlu2 %1050  ;;  %v1043_v42 = vmul.f32 1.442695, %v1038_v41 }
 0x85c   :  { %3459 = vrcp.f32 %v1051_v10 }
 0x85d   :  { %v3456_v25 = vpop.eup %3455  ;;  %3461 = vpow2.f32 %v1043_v42 }
 0x85e   :  { %v3458_v26 = vpop.eup %3457  ;;  %v1058_v28 = vsel %vm175_vm3, %v3456_v25, 0.0 }
 0x85f   :  { %1059 = vadd.xlane.f32.xlu2 %v1058_v28  ;;  %v1055_v29 = vsel %vm175_vm3, %v3458_v26, 0.0 }
 0x860   :  { %1056 = vadd.xlane.f32.xlu0 %v1055_v29 }
 0x862   :  { %v3460_v31 = vpop.eup %3459 }
 0x863   :  { %v1148_v30 = vpop.permute.xlu2 %1147  ;;  %v1065_v32 = vmul.f32 %v3460_v31, %v3454_v13  ;;  %v3462_v43 = vpop.eup %3461  ;;  %v1465_v31 = vld [vmem:[#allocation5 + $0x38] sm:$0xff] }
 0x864   :  { %1168 = vmatpush.msrb.mxu3 %v1148_v30  ;;  %v1052_v44 = vsel %vm175_vm3, %v3462_v43, 0.0 }
 0x86a   :  { %v1070_v33 = vpop.permute.xlu1 %1069 }
 0x86b   :  { %v1273_v35 = vpop.permute.xlu2 %1272  ;;  %1090 = vmatpush.msrb.mxu0 %v1070_v33  ;;  %v1463_v33 = vld [vmem:[#allocation5 + $0x28] sm:$0xff] }
 0x86c   :  { %3288 = vmatpush.xpose.msk.msra.mxu3 %vm175_vm3, %v1273_v35  ;;  %3278 = vmatmul.msk.f32.vlgmr.msrb.gmra.mxu0 %vm175_vm3, %v1065_v32  ;;  %v1464_v32 = vld [vmem:[#allocation5 + $0x30] sm:$0xff]  ;;  %v1462_v35 = vld [vmem:[#allocation5 + $0x20] sm:$0xff] }
 0x86d   :  { %3282 = vmatpush.xpose.msk.msra.mxu0 %vm175_vm3, %v3984_v48 }
 0x872   :  { %v1245_v36 = vpop.permute.xlu1 %1244 }
 0x873   :  { %v1271_v45 = vpop.permute.xlu2 %1270 }
 0x874   :  { %1121 = vrot.lane.b32.xlu0 %v3948_v20, %s3685_s6  ;;  %3283 = vmatmul.msk.f32.vlgmr.msra.gmra.mxu0 %vm175_vm3, %v865_v16 }
 0x877   :  { %1216 = vrot.lane.b32.xlu2 %v3984_v48, %s3683_s17 }
 0x87a   :  { %v1243_v37 = vpop.permute.xlu1 %1242 }
 0x882   :  { %v1096_v38 = vpop.permute.xlu1 %1095 }
 0x883   :  { %1116 = vmatpush.msrb.mxu1 %v1096_v38 }
 0x88a   :  { %v1215_v60 = vpop.permute.xlu1 %1214 }
 0x89e   :  { %1053 = vadd.xlane.f32.xlu0 %v1052_v44 }
 0x8d2   :  { %v1060_v46 = vpop.xlane.xlu2 %1059 }
 0x8d3   :  { %3463 = vrcp.f32 %v1060_v46  ;;  %v1057_v49 = vpop.xlane.xlu0 %1056 }
 0x8d4   :  { %3465 = vrcp.f32 %v1057_v49 }
 0x8d9   :  { %v3464_v20 = vpop.eup %3463 }
 0x8da   :  { %v1068_v47 = vmul.f32 %v3464_v20, %v3456_v25  ;;  %v1217_v50 = vpop.permute.xlu2 %1216  ;;  %v3466_v51 = vpop.eup %3465 }
 0x8db   :  { %3284 = vmatpush.xpose.msk.msra.mxu1 %vm175_vm3, %v1217_v50  ;;  %v1067_v52 = vmul.f32 %v3466_v51, %v3458_v26 }
 0x8dc   :  { %3281 = vmatmul.msk.f32.vlgmr.msrb.gmra.mxu3 %vm175_vm3, %v1068_v47 }
 0x8e4   :  { %3289 = vmatmul.msk.f32.vlgmr.msra.gmra.mxu3 %vm175_vm3, %v1271_v45 }
 0x8e6   :  { %v1122_v53 = vpop.permute.xlu0 %1121 }
 0x8e7   :  { %1142 = vmatpush.msrb.mxu2 %v1122_v53 }
 0x8e8   :  { %3280 = vmatmul.msk.f32.vlgmr.msrb.gmra.mxu2 %vm175_vm3, %v1067_v52 }
 0x8e9   :  { %3286 = vmatpush.xpose.msk.msra.mxu2 %vm175_vm3, %v1245_v36  ;;  %v4015_v54 = vpop.f32.mrf.mxu0 }
 0x8f0   :  { %3287 = vmatmul.msk.f32.vlgmr.msra.gmra.mxu2 %vm175_vm3, %v1243_v37 }
 0x8f1   :  { %v1211_v55 = vpop.f32.mrf.mxu0 }
 0x8f2   :  { %v1298_v34 = vsel %vm175_vm3, %v1211_v55, -inf }
 0x8f3   :  { %1299 = vmax.xlane.f32.xlu2 %v1298_v34 }
 0x90b   :  { %1394 = vrot.lane.b32.xlu2 %v3984_v48, %s3685_s6 }
 0x911   :  { %v1054_v56 = vpop.xlane.xlu0 %1053 }
 0x912   :  { %3467 = vrcp.f32 %v1054_v56  ;;  %v1466_v56 = vperm.slane %v3903_v40, 3 }
 0x918   :  { %v3468_v57 = vpop.eup %3467 }
 0x919   :  { %v1066_v58 = vmul.f32 %v3468_v57, %v3462_v43 }
 0x91b   :  { %3279 = vmatmul.msk.f32.vlgmr.msrb.gmra.mxu1 %vm175_vm3, %v1066_v58 }
 0x923   :  { %3285 = vmatmul.msk.f32.vlgmr.msra.gmra.mxu1 %vm175_vm3, %v1215_v60 }
 0x95f   :  { %v1170_v2 = vpop.f32.mrf.mxu3 }
 0x966   :  { %v1300_v61 = vpop.xlane.xlu2 %1299 }
 0x967   :  { %v1295_v6 = vpop.f32.mrf.mxu3  ;;  %v1310_v8 = vsub.f32 %v1211_v55, %v1300_v61 }
 0x968   :  { %v1307_v7 = vsel %vm175_vm3, %v1295_v6, -inf }
 0x969   :  { %v1314_v9 = vmul.f32 1.442695, %v1310_v8  ;;  %v1552_v8 = vld [vmem:[#allocation7] sm:$0xff] }
 0x96b   :  { %v1144_v62 = vpop.f32.mrf.mxu2  ;;  %3469 = vpow2.f32 %v1314_v9 }
 0x96e   :  { %v1395_v63 = vpop.permute.xlu2 %1394 }
 0x96f   :  { %1415 = vmatpush.msrb.mxu2 %v1395_v63 }
 0x971   :  { %v3470_v17 = vpop.eup %3469 }
 0x972   :  { %v1322_v18 = vsel %vm175_vm3, %v3470_v17, 0.0 }
 0x973   :  { %v1267_v0 = vpop.f32.mrf.mxu2 }
 0x974   :  { %v1304_v1 = vsel %vm175_vm3, %v1267_v0, -inf }
 0x975   :  { %1305 = vmax.xlane.f32.xlu1 %v1304_v1 }
 0x998   :  { %v1118_v23 = vpop.f32.mrf.mxu1 }
 0x999   :  { %1174 = vrot.lane.b32.xlu1 %v1118_v23, %s3677_s14 }
 0x9a0   :  { %v1239_v4 = vpop.f32.mrf.mxu1 }
 0x9a1   :  { %1182 = vrot.lane.b32.xlu1 %v1170_v2, %s3694_s27  ;;  %v1301_v5 = vsel %vm175_vm3, %v1239_v4, -inf }
 0x9a2   :  { %1302 = vmax.xlane.f32.xlu0 %v1301_v5  ;;  %v1554_v5 = vld [vmem:[#allocation7 + $0x10] sm:$0xff] }
 0x9b6   :  { %1342 = vrot.lane.b32.xlu0 %v3984_v48, %s3684_s18 }
 0x9e0   :  { %1308 = vmax.xlane.f32.xlu0 %v1307_v7 }
 0x9e8   :  { %v1306_v11 = vpop.xlane.xlu1 %1305 }
 0x9e9   :  { %v1312_v12 = vsub.f32 %v1267_v0, %v1306_v11 }
 0x9eb   :  { %v1318_v15 = vmul.f32 1.442695, %v1312_v12 }
 0x9f4   :  { %1178 = vrot.lane.b32.xlu0 %v1144_v62, %s3693_s26 }
 0xa0b   :  { %v1175_v38 = vpop.permute.xlu1 %1174 }
 0xa13   :  { %v1183_v45 = vpop.permute.xlu1 %1182 }
 0xa15   :  { %v1303_v13 = vpop.xlane.xlu0 %1302 }
 0xa16   :  { %v1311_v14 = vsub.f32 %v1239_v4, %v1303_v13  ;;  %v1555_v4 = vld [vmem:[#allocation7 + $0x18] sm:$0xff] }
 0xa18   :  { %v1316_v16 = vmul.f32 1.442695, %v1311_v14 }
 0xa1a   :  { %3471 = vpow2.f32 %v1316_v16 }
 0xa1b   :  { %3473 = vpow2.f32 %v1318_v15 }
 0xa1e   :  { %1323 = vadd.xlane.f32.xlu0 %v1322_v18 }
 0xa20   :  { %v3472_v19 = vpop.eup %3471 }
 0xa21   :  { %v1325_v21 = vsel %vm175_vm3, %v3472_v19, 0.0  ;;  %v3474_v22 = vpop.eup %3473 }
 0xa22   :  { %1326 = vadd.xlane.f32.xlu2 %v1325_v21  ;;  %v1328_v24 = vsel %vm175_vm3, %v3474_v22, 0.0 }
 0xa26   :  { %1329 = vadd.xlane.f32.xlu0 %v1328_v24 }
 0xa28   :  { %v1343_v10 = vpop.permute.xlu0 %1342 }
 0xa29   :  { %1363 = vmatpush.msrb.mxu0 %v1343_v10 }
 0xa2b   :  { %1485 = vmatpush.msra.mxu0 %v1465_v31 }
 0xa2d   :  { %1486 = vmatpush.msra.mxu0 %v1464_v32  ;;  %v1547_v32 = vperm.slane %v3903_v40, 5 }
 0xa2f   :  { %1487 = vmatpush.msra.mxu0 %v1463_v33 }
 0xa31   :  { %1488 = vmatpush.msra.mxu0 %v1462_v35 }
 0xa3a   :  { %1420 = vrot.lane.b32.xlu0 %v3984_v48, %s3682_s16 }
 0xa53   :  { %v1309_v25 = vpop.xlane.xlu0 %1308 }
 0xa54   :  { %v1313_v26 = vsub.f32 %v1295_v6, %v1309_v25  ;;  %v1553_v6 = vld [vmem:[#allocation7 + $0x8] sm:$0xff] }
 0xa56   :  { %v1320_v28 = vmul.f32 1.442695, %v1313_v26 }
 0xa58   :  { %3475 = vpow2.f32 %v1320_v28 }
 0xa5e   :  { %v3476_v29 = vpop.eup %3475 }
 0xa5f   :  { %v1331_v30 = vsel %vm175_vm3, %v3476_v29, 0.0 }
 0xa60   :  { %1332 = vadd.xlane.f32.xlu2 %v1331_v30 }
 0xa66   :  { %v1179_v36 = vpop.permute.xlu0 %1178 }
 0xa78   :  { %1368 = vrot.lane.b32.xlu2 %v3984_v48, %s3686_s4  ;;  %v1185_v48 = vsel %vm175_vm3, %v4015_v54, %v1175_v38  ;;  %v1591_v38 = vld [vmem:[#allocation7 + $0x30] sm:$0xff] }
 0xa79   :  { %v1186_v43 = vsel %vm449_vm4, %v1185_v48, %v1179_v36 }
 0xa7a   :  { %v1187_v20 = vsel %vm451_vm5, %v1186_v43, %v1183_v45  ;;  %v1556_v45 = vperm.slane %v3903_v40, 6 }
 0xa91   :  { %v1324_v37 = vpop.xlane.xlu0 %1323 }
 0xa92   :  { %3477 = vrcp.f32 %v1324_v37  ;;  %v1592_v37 = vld [vmem:[#allocation7 + $0x38] sm:$0xff] }
 0xa93   :  { %1612 = vmatpush.msra.mxu2 %v1592_v37 }
 0xa95   :  { %v1327_v49 = vpop.xlane.xlu2 %1326  ;;  %1613 = vmatpush.msra.mxu2 %v1591_v38 }
 0xa98   :  { %v3478_v39 = vpop.eup %3477 }
 0xa99   :  { %v1338_v41 = vmul.f32 %v3478_v39, %v3470_v17  ;;  %v1330_v42 = vpop.xlane.xlu0 %1329  ;;  %v1590_v39 = vld [vmem:[#allocation7 + $0x28] sm:$0xff] }
 0xa9a   :  { %3479 = vrcp.f32 %v1330_v42  ;;  %1614 = vmatpush.msra.mxu2 %v1590_v39 }
 0xa9b   :  { %3290 = vmatmul.msk.f32.vlgmr.msrb.gmra.mxu0 %vm175_vm3, %v1338_v41  ;;  %3481 = vrcp.f32 %v1327_v49  ;;  %v1589_v41 = vld [vmem:[#allocation7 + $0x20] sm:$0xff] }
 0xa9c   :  { %1615 = vmatpush.msra.mxu2 %v1589_v41 }
 0xaa0   :  { %v3480_v44 = vpop.eup %3479 }
 0xaa1   :  { %v1340_v46 = vmul.f32 %v3480_v44, %v3474_v22  ;;  %v3482_v51 = vpop.eup %3481 }
 0xaa2   :  { %v1339_v53 = vmul.f32 %v3482_v51, %v3472_v19 }
 0xaa3   :  { %3292 = vmatmul.msk.f32.vlgmr.msrb.gmra.mxu2 %vm175_vm3, %v1340_v46  ;;  %3294 = vmatmul.msk.f32.vlgmr.msra.gmra.mxu0 %vm105_vm0, %v1187_v20 }
 0xaac   :  { %v1421_v47 = vpop.permute.xlu0 %1420 }
 0xaad   :  { %1441 = vmatpush.msrb.mxu3 %v1421_v47 }
 0xad3   :  { %v1333_v50 = vpop.xlane.xlu2 %1332 }
 0xad4   :  { %3483 = vrcp.f32 %v1333_v50 }
 0xada   :  { %v3484_v52 = vpop.eup %3483 }
 0xadb   :  { %v1341_v54 = vmul.f32 %v3484_v52, %v3476_v29  ;;  %v1369_v55 = vpop.permute.xlu2 %1368  ;;  %v1544_v29 = vperm.slane %v3903_v40, 4 }
 0xadc   :  { %1389 = vmatpush.msrb.mxu1 %v1369_v55 }
 0xadd   :  { %3291 = vmatmul.msk.f32.vlgmr.msrb.gmra.mxu1 %vm175_vm3, %v1339_v53  ;;  %3293 = vmatmul.msk.f32.vlgmr.msrb.gmra.mxu3 %vm175_vm3, %v1341_v54 }
 0xade   :  { %1575 = vmatpush.msra.mxu1 %v1555_v4 }
 0xae0   :  { %1576 = vmatpush.msra.mxu1 %v1554_v5 }
 0xae2   :  { %1577 = vmatpush.msra.mxu1 %v1553_v6 }
 0xae4   :  { %1578 = vmatpush.msra.mxu1 %v1552_v8 }
 0xb18   :  { %v1365_v34 = vpop.f32.mrf.mxu0 }
 0xb20   :  { %v1490_v57 = vpop.f32.mrf.mxu0 }
 0xb21   :  { %v1491_v58 = vadd.f32 %v1490_v57, %v1466_v56 }
 0xb23   :  { %v1496_v60 = vsel %vm105_vm0, %v1491_v58, 0.0  ;;  %v1504_v62 = vmul.f32 %v1491_v58, %v1491_v58 }
 0xb24   :  { %1497 = vadd.xlane.f32.xlu1 %v1496_v60 }
 0xb25   :  { %v1506_v63 = vsel %vm105_vm0, %v1504_v62, 0.0 }
 0xb26   :  { %v1417_v61 = vpop.f32.mrf.mxu2 }
 0xb27   :  { %1451 = vrot.lane.b32.xlu2 %v1417_v61, %s3693_s26 }
 0xb50   :  { %1507 = vadd.xlane.f32.xlu2 %v1506_v63 }
 0xb5a   :  { %v1391_v0 = vpop.f32.mrf.mxu1 }
 0xb5b   :  { %1447 = vrot.lane.b32.xlu0 %v1391_v0, %s3677_s14  ;;  %v1593_v0 = vperm.slane %v3903_v40, 7  ;;  %v1682_v40 = vld [vmem:[#allocation2 + $0x50] sm:$0xff] }
 0xb60   :  { %v1443_v1 = vpop.f32.mrf.mxu3 }
 0xb63   :  { %1455 = vrot.lane.b32.xlu0 %v1443_v1, %s3694_s27 }
 0xb81   :  { %v1452_v23 = vpop.permute.xlu2 %1451 }
 0xb97   :  { %v1498_v2 = vpop.xlane.xlu1 %1497 }
 0xb98   :  { %v1502_v7 = vmul.f32 %v1498_v2, %v3919_v3 }
 0xb9a   :  { %v1514_v11 = vmul.f32 %v1502_v7, %v1502_v7  ;;  %v1518_v28 = vsub.f32 %v1491_v58, %v1502_v7 }
 0xbc3   :  { %v1508_v9 = vpop.xlane.xlu2 %1507 }
 0xbc4   :  { %v1512_v12 = vmul.f32 %v1508_v9, %v3919_v3 }
 0xbc6   :  { %v1516_v13 = vsub.f32 %v1512_v12, %v1514_v11  ;;  %v1683_v11 = vld [vmem:[#allocation2 + $0x58] sm:$0xff]  ;;  %v1681_v12 = vld [vmem:[#allocation2 + $0x48] sm:$0xff] }
 0xbc7   :  { %1707 = vmatpush.msra.mxu3 %v1683_v11 }
 0xbc8   :  { %v1520_v14 = vadd.f32 1e-05, %v1516_v13 }
 0xbc9   :  { %1708 = vmatpush.msra.mxu3 %v1682_v40 }
 0xbca   :  { %3485 = vrsqrt.f32 %v1520_v14  ;;  %vm1528_vm14 = vweird.f32 %v1520_v14 }
 0xbcb   :  { %1709 = vmatpush.msra.mxu3 %v1681_v12  ;;  %v4143_v12 = vld [vmem:[%s4459_s2] sm:$0xff] }
 0xbcd   :  { %v1448_v15 = vpop.permute.xlu0 %1447 }
 0xbce   :  { %v1458_v18 = vsel %vm175_vm3, %v1365_v34, %v1448_v15 }
 0xbcf   :  { %v1459_v24 = vsel %vm449_vm4, %v1458_v18, %v1452_v23 }
 0xbd0   :  { %v3486_v16 = vpop.eup %3485 }
 0xbd1   :  { %v1523_v17 = vmul.f32 %v3486_v16, %v1520_v14  ;;  %vm1529_vm13 = vweird.f32 %v3486_v16  ;;  %v1680_v14 = vld [vmem:[#allocation2 + $0x40] sm:$0xff] }
 0xbd2   :  { %vm1530_vm15 = vmor %vm1528_vm14, %vm1529_vm13  ;;  %1710 = vmatpush.msra.mxu3 %v1680_v14 }
 0xbd3   :  { %v1524_v19 = vmul.f32 %v3486_v16, %v1523_v17 }
 0xbd5   :  { %v1525_v21 = vmul.f32 0.5, %v1524_v19  ;;  %v1456_v22 = vpop.permute.xlu0 %1455 }
 0xbd6   :  { %v1460_v10 = vsel %vm451_vm5, %v1459_v24, %v1456_v22 }
 0xbd7   :  { %v1526_v25 = vsub.f32 1.5, %v1525_v21  ;;  %3295 = vmatmul.msk.f32.gmra.mxu0 %vm105_vm0, %v1460_v10 }
 0xbd9   :  { %v1527_v26 = vmul.f32 %v3486_v16, %v1526_v25 }
 0xbdb   :  { %v1531_v30 = vsel %vm1530_vm15, %v3486_v16, %v1527_v26 }
 0xbdc   :  { %v1542_v31 = vmul.f32 %v1531_v30, %v1518_v28 }
 0xbde   :  { %v1545_v33 = vmul.f32 %v1544_v29, %v1542_v31 }
 0xbe0   :  { %v1548_v35 = vadd.f32 %v1547_v32, %v1545_v33 }
 0xbe2   :  { %v4065_v36 = vadd.f32 %v1548_v35, %v3937_v27 }
 0xbe4   :  { %3296 = vmatmul.msk.f32.vlgmr.msra.gmra.mxu1 %vm105_vm0, %v4065_v36 }
 0xc54   :  { %v1493_v42 = vpop.f32.mrf.mxu0 }
 0xc55   :  { %v1494_v48 = vadd.f32 %v1493_v42, %v1466_v56 }
 0xc57   :  { %v1499_v43 = vsel %vm105_vm0, %v1494_v48, 0.0  ;;  %v1505_v44 = vmul.f32 %v1494_v48, %v1494_v48 }
 0xc58   :  { %1500 = vadd.xlane.f32.xlu0 %v1499_v43 }
 0xc59   :  { %v1509_v27 = vsel %vm105_vm0, %v1505_v44, 0.0 }
 0xc5a   :  { %1510 = vadd.xlane.f32.xlu1 %v1509_v27 }
 0xc61   :  { %v1580_v46 = vpop.f32.mrf.mxu1 }
 0xc62   :  { %v1581_v20 = vadd.f32 %v1580_v46, %v1556_v45 }
 0xc64   :  { %v1586_v47 = vmax.f32 %v1581_v20, 0.0 }
 0xc66   :  { %3298 = vmatmul.msk.f32.vlgmr.msra.gmra.mxu2 %vm105_vm0, %v1586_v47 }
 0xccb   :  { %v1501_v49 = vpop.xlane.xlu0 %1500 }
 0xccc   :  { %v1503_v50 = vmul.f32 %v1501_v49, %v3919_v3 }
 0xccd   :  { %v1511_v51 = vpop.xlane.xlu1 %1510 }
 0xcce   :  { %v1515_v52 = vmul.f32 %v1503_v50, %v1503_v50  ;;  %v1513_v53 = vmul.f32 %v1511_v51, %v3919_v3  ;;  %v1519_v62 = vsub.f32 %v1494_v48, %v1503_v50 }
 0xcd0   :  { %v1517_v54 = vsub.f32 %v1513_v53, %v1515_v52 }
 0xcd2   :  { %v1521_v55 = vadd.f32 1e-05, %v1517_v54 }
 0xcd4   :  { %3487 = vrsqrt.f32 %v1521_v55  ;;  %vm1538_vm2 = vweird.f32 %v1521_v55 }
 0xcda   :  { %v3488_v34 = vpop.eup %3487 }
 0xcdb   :  { %v1533_v56 = vmul.f32 %v3488_v34, %v1521_v55  ;;  %vm1539_vm1 = vweird.f32 %v3488_v34 }
 0xcdc   :  { %vm1540_vm6 = vmor %vm1538_vm2, %vm1539_vm1 }
 0xcdd   :  { %v1534_v57 = vmul.f32 %v3488_v34, %v1533_v56 }
 0xcdf   :  { %v1535_v58 = vmul.f32 0.5, %v1534_v57 }
 0xce1   :  { %v1536_v60 = vsub.f32 1.5, %v1535_v58 }
 0xce3   :  { %v1537_v61 = vmul.f32 %v3488_v34, %v1536_v60 }
 0xce5   :  { %v1541_v63 = vsel %vm1540_vm6, %v3488_v34, %v1537_v61 }
 0xce6   :  { %v1543_v1 = vmul.f32 %v1541_v63, %v1519_v62 }
 0xce8   :  { %v1546_v23 = vmul.f32 %v1544_v29, %v1543_v1  ;;  %v4091_v29 = vld [vmem:[%s4460_s3 + $0x38] sm:$0xff] }
 0xce9   :  { %v1617_v2 = vpop.f32.mrf.mxu2  ;;  %v1671_v33 = vperm.slane %v4091_v29, 0  ;;  %v1674_v38 = vperm.slane %v4091_v29, 1 }
 0xcea   :  { %v1618_v4 = vadd.f32 %v1617_v2, %v1593_v0  ;;  %v1549_v5 = vadd.f32 %v1547_v32, %v1546_v23 }
 0xcec   :  { %v1623_v6 = vsel %vm105_vm0, %v1618_v4, 0.0  ;;  %v4080_v7 = vadd.f32 %v1549_v5, %v3968_v59  ;;  %v1631_v8 = vmul.f32 %v1618_v4, %v1618_v4 }
 0xced   :  { %1624 = vadd.xlane.f32.xlu1 %v1623_v6 }
 0xcee   :  { %3297 = vmatmul.msk.f32.gmra.mxu1 %vm105_vm0, %v4080_v7  ;;  %v1633_v9 = vsel %vm105_vm0, %v1631_v8, 0.0 }
 0xcef   :  { %1634 = vadd.xlane.f32.xlu2 %v1633_v9 }
 0xd60   :  { %v1625_v13 = vpop.xlane.xlu1 %1624 }
 0xd61   :  { %v1629_v15 = vmul.f32 %v1625_v13, %v3919_v3 }
 0xd62   :  { %v1635_v59 = vpop.xlane.xlu2 %1634 }
 0xd63   :  { %v1641_v16 = vmul.f32 %v1629_v15, %v1629_v15  ;;  %v1639_v17 = vmul.f32 %v1635_v59, %v3919_v3  ;;  %v1645_v32 = vsub.f32 %v1618_v4, %v1629_v15 }
 0xd65   :  { %v1643_v18 = vsub.f32 %v1639_v17, %v1641_v16 }
 0xd67   :  { %v1647_v19 = vadd.f32 1e-05, %v1643_v18 }
 0xd69   :  { %3489 = vrsqrt.f32 %v1647_v19  ;;  %vm1655_vm8 = vweird.f32 %v1647_v19 }
 0xd6b   :  { %v1583_v21 = vpop.f32.mrf.mxu1 }
 0xd6c   :  { %v1584_v22 = vadd.f32 %v1583_v21, %v1556_v45  ;;  %v4104_v45 = vld [vmem:[%s4462_s5 + $0x2] ss:$0 sm:$0xff] }
 0xd6e   :  { %v1587_v24 = vmax.f32 %v1584_v22, 0.0 }
 0xd6f   :  { %v3490_v10 = vpop.eup %3489 }
 0xd70   :  { %v1650_v25 = vmul.f32 %v3490_v10, %v1647_v19  ;;  %3299 = vmatmul.msk.f32.gmra.mxu2 %vm105_vm0, %v1587_v24  ;;  %vm1656_vm7 = vweird.f32 %v3490_v10 }
 0xd71   :  { %vm1657_vm9 = vmor %vm1655_vm8, %vm1656_vm7 }
 0xd72   :  { %v1651_v26 = vmul.f32 %v3490_v10, %v1650_v25 }
 0xd74   :  { %v1652_v28 = vmul.f32 0.5, %v1651_v26 }
 0xd76   :  { %v1653_v30 = vsub.f32 1.5, %v1652_v28 }
 0xd78   :  { %v1654_v31 = vmul.f32 %v3490_v10, %v1653_v30 }
 0xd7a   :  { %v1658_v35 = vsel %vm1657_vm9, %v3490_v10, %v1654_v31 }
 0xd7b   :  { %v1669_v37 = vmul.f32 %v1658_v35, %v1645_v32 }
 0xd7d   :  { %v1672_v39 = vmul.f32 %v1671_v33, %v1669_v37 }
 0xd7f   :  { %v1675_v41 = vadd.f32 %v1674_v38, %v1672_v39 }
 0xd81   :  { %v4096_v42 = vadd.f32 %v1675_v41, %v4065_v36 }
 0xd83   :  { %3301 = vmatmul.msk.f32.vlgmr.msra.gmra.mxu3 %vm105_vm0, %v4096_v42 }
 0xdf3   :  { %v1620_v48 = vpop.f32.mrf.mxu2 }
 0xdf4   :  { %v1621_v43 = vadd.f32 %v1620_v48, %v1593_v0 }
 0xdf6   :  { %v1632_v44 = vmul.f32 %v1621_v43, %v1621_v43  ;;  %v1626_v36 = vsel %vm105_vm0, %v1621_v43, 0.0 }
 0xdf8   :  { %v1636_v27 = vsel %vm105_vm0, %v1632_v44, 0.0 }
 0xdf9   :  { %1637 = vadd.xlane.f32.xlu1 %v1636_v27 }
 0xe06   :  { %v1712_v46 = vpop.f32.mrf.mxu3 }
 0xe07   :  { %v4107_v20 = vadd.f32 %v4104_v45, %v1712_v46 }
 0xe09   :  { %1719 = vrot.lane.b32.xlu2 %v4107_v20, %s3684_s18  ;;  %1775 = vrot.lane.b32.xlu0 %v4107_v20, %s3685_s6 }
 0xe11   :  { %1801 = vrot.lane.b32.xlu2 %v4107_v20, %s3687_s19 }
 0xe12   :  { %1803 = vrot.lane.b32.xlu1 %v4107_v20, %s3682_s16 }
 0xe1a   :  { %1747 = vrot.lane.b32.xlu1 %v4107_v20, %s3686_s4 }
 0xe33   :  { %1627 = vadd.xlane.f32.xlu0 %v1626_v36 }
 0xe47   :  { %1773 = vrot.lane.b32.xlu0 %v4107_v20, %s3688_s7 }
 0xe4f   :  { %1745 = vrot.lane.b32.xlu0 %v4107_v20, %s3683_s17 }
 0xe63   :  { %v1720_v47 = vpop.permute.xlu2 %1719 }
 0xe64   :  { %3303 = vmatpush.xpose.msk.msrb.mxu0 %vm175_vm3, %v1720_v47 }
 0xe67   :  { %3304 = vmatmul.msk.f32.vlgmr.msrb.gmra.mxu0 %vm175_vm3, %v4107_v20 }
 0xe6b   :  { %v1802_v11 = vpop.permute.xlu2 %1801 }
 0xe6c   :  { %v1638_v50 = vpop.xlane.xlu1 %1637 }
 0xe6d   :  { %v1640_v55 = vmul.f32 %v1638_v50, %v3919_v3 }
 0xe7b   :  { %v1776_v49 = vpop.permute.xlu0 %1775 }
 0xe7c   :  { %3307 = vmatpush.xpose.msk.msrb.mxu2 %vm175_vm3, %v1776_v49 }
 0xe84   :  { %v1804_v51 = vpop.permute.xlu1 %1803 }
 0xe85   :  { %3309 = vmatpush.xpose.msk.msrb.mxu3 %vm175_vm3, %v1804_v51 }
 0xe8c   :  { %v1748_v52 = vpop.permute.xlu1 %1747 }
 0xe8d   :  { %3305 = vmatpush.xpose.msk.msrb.mxu1 %vm175_vm3, %v1748_v52 }
 0xea6   :  { %v1628_v53 = vpop.xlane.xlu0 %1627 }
 0xea7   :  { %v1630_v54 = vmul.f32 %v1628_v53, %v3919_v3 }
 0xea9   :  { %v1642_v34 = vmul.f32 %v1630_v54, %v1630_v54  ;;  %v1646_v23 = vsub.f32 %v1621_v43, %v1630_v54 }
 0xeab   :  { %v1644_v56 = vsub.f32 %v1640_v55, %v1642_v34 }
 0xead   :  { %v1648_v57 = vadd.f32 1e-05, %v1644_v56 }
 0xeaf   :  { %3491 = vrsqrt.f32 %v1648_v57  ;;  %vm1665_vm11 = vweird.f32 %v1648_v57 }
 0xeb5   :  { %v3492_v58 = vpop.eup %3491 }
 0xeb6   :  { %v1660_v60 = vmul.f32 %v3492_v58, %v1648_v57  ;;  %vm1666_vm10 = vweird.f32 %v3492_v58 }
 0xeb7   :  { %vm1667_vm12 = vmor %vm1665_vm11, %vm1666_vm10 }
 0xeb8   :  { %v1661_v61 = vmul.f32 %v3492_v58, %v1660_v60 }
 0xeb9   :  { %v1774_v62 = vpop.permute.xlu0 %1773 }
 0xeba   :  { %v1662_v63 = vmul.f32 0.5, %v1661_v61  ;;  %3308 = vmatmul.msk.f32.vlgmr.msrb.gmra.mxu2 %vm175_vm3, %v1774_v62 }
 0xebc   :  { %v1663_v0 = vsub.f32 1.5, %v1662_v63 }
 0xebe   :  { %v1664_v1 = vmul.f32 %v3492_v58, %v1663_v0 }
 0xec0   :  { %v1668_v2 = vsel %vm1667_vm12, %v3492_v58, %v1664_v1 }
 0xec1   :  { %v1670_v4 = vmul.f32 %v1668_v2, %v1646_v23  ;;  %v1746_v5 = vpop.permute.xlu0 %1745 }
 0xec2   :  { %3306 = vmatmul.msk.f32.vlgmr.msrb.gmra.mxu1 %vm175_vm3, %v1746_v5 }
 0xec3   :  { %v1673_v6 = vmul.f32 %v1671_v33, %v1670_v4 }
 0xec5   :  { %v1676_v8 = vadd.f32 %v1674_v38, %v1673_v6 }
 0xec7   :  { %v4135_v9 = vadd.f32 %v1676_v8, %v4080_v7 }
 0xec9   :  { %3302 = vmatmul.msk.f32.gmra.mxu3 %vm105_vm0, %v4135_v9 }
 0xed1   :  { %3310 = vmatmul.msk.f32.vlgmr.msrb.gmra.mxu3 %vm175_vm3, %v1802_v11 }
 0xee4   :  { %v1742_v40 = vpop.f32.mrf.mxu0 }
 0xee5   :  { %v1829_v13 = vadd.f32 %v4143_v12, %v1742_v40 }
 0xee7   :  { %v1833_v14 = vsel %vm175_vm3, %v1829_v13, -inf }
 0xee8   :  { %1834 = vmax.xlane.f32.xlu2 %v1833_v14 }
 0xf3d   :  { %v1798_v15 = vpop.f32.mrf.mxu2 }
 0xf3e   :  { %v1831_v7 = vadd.f32 %v4143_v12, %v1798_v15 }
 0xf3f   :  { %v1770_v59 = vpop.f32.mrf.mxu1 }
 0xf40   :  { %v1830_v16 = vadd.f32 %v4143_v12, %v1770_v59  ;;  %v1839_v17 = vsel %vm175_vm3, %v1831_v7, -inf }
 0xf41   :  { %1840 = vmax.xlane.f32.xlu1 %v1839_v17 }
 0xf42   :  { %v1836_v18 = vsel %vm175_vm3, %v1830_v16, -inf }
 0xf43   :  { %1837 = vmax.xlane.f32.xlu2 %v1836_v18 }
 0xf4c   :  { %v1715_v19 = vpop.f32.mrf.mxu3 }
 0xf4d   :  { %v4152_v21 = vadd.f32 %v4104_v45, %v1715_v19 }
 0xf4f   :  { %1997 = vrot.lane.b32.xlu0 %v4152_v21, %s3684_s18 }
 0xf54   :  { %v1826_v28 = vpop.f32.mrf.mxu3 }
 0xf55   :  { %v1832_v30 = vadd.f32 %v4143_v12, %v1826_v28 }
 0xf57   :  { %1955 = vrot.lane.b32.xlu0 %v4107_v20, %s3692_s25  ;;  %v1842_v31 = vsel %vm175_vm3, %v1832_v30, -inf }
 0xf5b   :  { %v1835_v22 = vpop.xlane.xlu2 %1834  ;;  %1929 = vrot.lane.b32.xlu2 %v4107_v20, %s3690_s23 }
 0xf5c   :  { %v1845_v24 = vsub.f32 %v1829_v13, %v1835_v22 }
 0xf5e   :  { %v1849_v10 = vmul.f32 1.442695, %v1845_v24 }
 0xf5f   :  { %2081 = vrot.lane.b32.xlu0 %v4152_v21, %s3682_s16 }
 0xf60   :  { %3493 = vpow2.f32 %v1849_v10 }
 0xf63   :  { %2053 = vrot.lane.b32.xlu2 %v4152_v21, %s3685_s6 }
 0xf66   :  { %v3494_v25 = vpop.eup %3493 }
 0xf67   :  { %v1857_v26 = vsel %vm175_vm3, %v3494_v25, 0.0 }
 0xf68   :  { %1858 = vadd.xlane.f32.xlu1 %v1857_v26 }
 0xf6b   :  { %2051 = vrot.lane.b32.xlu2 %v4152_v21, %s3688_s7 }
 0xf73   :  { %1903 = vrot.lane.b32.xlu2 %v4107_v20, %s3689_s22 }
 0xf81   :  { %1877 = vrot.lane.b32.xlu1 %v4107_v20, %s3691_s24 }
 0xf89   :  { %1843 = vmax.xlane.f32.xlu0 %v1842_v31 }
 0xf9d   :  { %2079 = vrot.lane.b32.xlu0 %v4152_v21, %s3687_s19 }
 0xfb4   :  { %v1841_v32 = vpop.xlane.xlu1 %1840 }
 0xfb5   :  { %v1847_v33 = vsub.f32 %v1831_v7, %v1841_v32 }
 0xfb6   :  { %v1838_v35 = vpop.xlane.xlu2 %1837 }
 0xfb7   :  { %v1846_v37 = vsub.f32 %v1830_v16, %v1838_v35  ;;  %v1853_v38 = vmul.f32 1.442695, %v1847_v33 }
 0xfb9   :  { %v1851_v39 = vmul.f32 1.442695, %v1846_v37 }
 0xfbb   :  { %3495 = vpow2.f32 %v1851_v39 }
 0xfbc   :  { %3497 = vpow2.f32 %v1853_v38 }
 0xfbe   :  { %v1930_v41 = vpop.permute.xlu2 %1929 }
 0xfbf   :  { %1950 = vmatpush.msra.mxu2 %v1930_v41 }
 0xfc1   :  { %v3496_v48 = vpop.eup %3495  ;;  %v1998_v43 = vpop.permute.xlu0 %1997 }
 0xfc2   :  { %v1860_v44 = vsel %vm175_vm3, %v3496_v48, 0.0  ;;  %v3498_v27 = vpop.eup %3497 }
 0xfc3   :  { %1861 = vadd.xlane.f32.xlu1 %v1860_v44  ;;  %v1863_v46 = vsel %vm175_vm3, %v3498_v27, 0.0 }
 0xfc6   :  { %v2054_v45 = vpop.permute.xlu2 %2053 }
 0xfc7   :  { %1864 = vadd.xlane.f32.xlu0 %v1863_v46  ;;  %3319 = vmatpush.xpose.msk.msrb.mxu2 %vm175_vm3, %v2054_v45 }
 0xfc9   :  { %v1956_v20 = vpop.permute.xlu0 %1955 }
 0xfca   :  { %1976 = vmatpush.msra.mxu3 %v1956_v20 }
 0xfce   :  { %v2052_v36 = vpop.permute.xlu2 %2051 }
 0xfd1   :  { %v2082_v47 = vpop.permute.xlu0 %2081 }
 0xfd2   :  { %3321 = vmatpush.xpose.msk.msrb.mxu3 %vm175_vm3, %v2082_v47  ;;  %v2277_v47 = vld [vmem:[#allocation5 + $0x50] sm:$0xff] }
 0xfd6   :  { %v1904_v49 = vpop.permute.xlu2 %1903 }
 0xfd7   :  { %1924 = vmatpush.msra.mxu1 %v1904_v49  ;;  %v2276_v49 = vld [vmem:[#allocation5 + $0x48] sm:$0xff] }
 0xfdb   :  { %2025 = vrot.lane.b32.xlu0 %v4152_v21, %s3686_s4  ;;  %v1859_v50 = vpop.xlane.xlu1 %1858 }
 0xfdc   :  { %3499 = vrcp.f32 %v1859_v50 }
 0xfe2   :  { %v3500_v51 = vpop.eup %3499 }
 0xfe3   :  { %v1873_v52 = vmul.f32 %v3500_v51, %v3494_v25  ;;  %v2275_v51 = vld [vmem:[#allocation5 + $0x40] sm:$0xff] }
 0xff3   :  { %v1878_v53 = vpop.permute.xlu1 %1877 }
 0xff4   :  { %1898 = vmatpush.msra.mxu0 %v1878_v53 }
 0xff5   :  { %3311 = vmatmul.msk.f32.vlgmr.msra.gmra.mxu0 %vm175_vm3, %v1873_v52 }
 0xff6   :  { %3315 = vmatpush.xpose.msk.msrb.mxu0 %vm175_vm3, %v1998_v43 }
 0xffc   :  { %v1844_v54 = vpop.xlane.xlu0 %1843 }
 0xffd   :  { %v1848_v55 = vsub.f32 %v1832_v30, %v1844_v54  ;;  %3316 = vmatmul.msk.f32.vlgmr.msrb.gmra.mxu0 %vm175_vm3, %v4152_v21 }
 0xfff   :  { %v1855_v34 = vmul.f32 1.442695, %v1848_v55 }
0x1001   :  { %3501 = vpow2.f32 %v1855_v34 }
0x1007   :  { %v3502_v56 = vpop.eup %3501 }
0x1008   :  { %v1866_v57 = vsel %vm175_vm3, %v3502_v56, 0.0 }
0x1009   :  { %1867 = vadd.xlane.f32.xlu2 %v1866_v57 }
0x100f   :  { %v2080_v58 = vpop.permute.xlu0 %2079 }
0x1021   :  { %2023 = vrot.lane.b32.xlu2 %v4152_v21, %s3683_s17 }
0x1036   :  { %v1862_v60 = vpop.xlane.xlu1 %1861 }
0x1037   :  { %3503 = vrcp.f32 %v1862_v60 }
0x103a   :  { %v1865_v61 = vpop.xlane.xlu0 %1864 }
0x103b   :  { %3505 = vrcp.f32 %v1865_v61 }
0x103d   :  { %v3504_v62 = vpop.eup %3503 }
0x103e   :  { %v1874_v63 = vmul.f32 %v3504_v62, %v3496_v48 }
0x1040   :  { %3312 = vmatmul.msk.f32.vlgmr.msra.gmra.mxu1 %vm175_vm3, %v1874_v63 }
0x1041   :  { %v3506_v0 = vpop.eup %3505 }
0x1042   :  { %v1875_v1 = vmul.f32 %v3506_v0, %v3498_v27 }
0x1044   :  { %3313 = vmatmul.msk.f32.vlgmr.msra.gmra.mxu2 %vm175_vm3, %v1875_v1 }
0x104c   :  { %3320 = vmatmul.msk.f32.vlgmr.msrb.gmra.mxu2 %vm175_vm3, %v2052_v36  ;;  %v2278_v36 = vld [vmem:[#allocation5 + $0x58] sm:$0xff] }
0x104d   :  { %v2026_v23 = vpop.permute.xlu0 %2025 }
0x104e   :  { %3317 = vmatpush.xpose.msk.msrb.mxu1 %vm175_vm3, %v2026_v23 }
0x1072   :  { %v4192_v2 = vpop.f32.mrf.mxu0 }
0x107a   :  { %v2020_v4 = vpop.f32.mrf.mxu0 }
0x107b   :  { %v2107_v5 = vadd.f32 %v4143_v12, %v2020_v4 }
0x107c   :  { %v1868_v6 = vpop.xlane.xlu2 %1867 }
0x107d   :  { %3507 = vrcp.f32 %v1868_v6  ;;  %v2111_v8 = vsel %vm175_vm3, %v2107_v5, -inf }
0x107e   :  { %2112 = vmax.xlane.f32.xlu0 %v2111_v8 }
0x1083   :  { %v3508_v11 = vpop.eup %3507 }
0x1084   :  { %v1876_v40 = vmul.f32 %v3508_v11, %v3502_v56  ;;  %v2024_v13 = vpop.permute.xlu2 %2023 }
0x1085   :  { %3318 = vmatmul.msk.f32.vlgmr.msrb.gmra.mxu1 %vm175_vm3, %v2024_v13 }
0x1086   :  { %3314 = vmatmul.msk.f32.vlgmr.msra.gmra.mxu3 %vm175_vm3, %v1876_v40 }
0x108e   :  { %3322 = vmatmul.msk.f32.vlgmr.msrb.gmra.mxu3 %vm175_vm3, %v2080_v58 }
0x10bd   :  { %v1926_v16 = vpop.f32.mrf.mxu1 }
0x10c7   :  { %v1952_v14 = vpop.f32.mrf.mxu2 }
0x10c8   :  { %1986 = vrot.lane.b32.xlu0 %v1952_v14, %s3693_s26  ;;  %v2279_v14 = vperm.slane %v4091_v29, 2 }
0x10cf   :  { %v2076_v15 = vpop.f32.mrf.mxu2 }
0x10d0   :  { %v2109_v7 = vadd.f32 %v4143_v12, %v2076_v15 }
0x10d2   :  { %v2117_v59 = vsel %vm175_vm3, %v2109_v7, -inf }
0x10d3   :  { %2118 = vmax.xlane.f32.xlu2 %v2117_v59 }
0x10eb   :  { %1982 = vrot.lane.b32.xlu2 %v1926_v16, %s3677_s14 }
0x10f1   :  { %v2113_v22 = vpop.xlane.xlu0 %2112 }
0x10f2   :  { %v2123_v24 = vsub.f32 %v2107_v5, %v2113_v22 }
0x10f3   :  { %2207 = vrot.lane.b32.xlu2 %v4152_v21, %s3690_s23 }
0x10f4   :  { %v2127_v10 = vmul.f32 1.442695, %v2123_v24  ;;  %v2366_v24 = vld [vmem:[#allocation2 + $0x60] sm:$0xff] }
0x10f6   :  { %3509 = vpow2.f32 %v2127_v10 }
0x10fb   :  { %2181 = vrot.lane.b32.xlu2 %v4152_v21, %s3689_s22 }
0x10fc   :  { %v3510_v26 = vpop.eup %3509 }
0x10fd   :  { %v2135_v31 = vsel %vm175_vm3, %v3510_v26, 0.0 }
0x1102   :  { %v2048_v17 = vpop.f32.mrf.mxu1 }
0x1103   :  { %v2108_v18 = vadd.f32 %v4143_v12, %v2048_v17  ;;  %v2369_v17 = vld [vmem:[#allocation2 + $0x78] sm:$0xff] }
0x1105   :  { %v2114_v19 = vsel %vm175_vm3, %v2108_v18, -inf }
0x1106   :  { %2115 = vmax.xlane.f32.xlu1 %v2114_v19  ;;  %v2367_v19 = vld [vmem:[#allocation2 + $0x68] sm:$0xff] }
0x1109   :  { %v1978_v25 = vpop.f32.mrf.mxu3 }
0x1111   :  { %v2104_v32 = vpop.f32.mrf.mxu3 }
0x1112   :  { %v2110_v35 = vadd.f32 %v4143_v12, %v2104_v32 }
0x1114   :  { %v2120_v38 = vsel %vm175_vm3, %v2110_v35, -inf }
0x111f   :  { %2155 = vrot.lane.b32.xlu1 %v4152_v21, %s3691_s24 }
0x113a   :  { %v1987_v52 = vpop.permute.xlu0 %1986 }
0x1146   :  { %v2119_v28 = vpop.xlane.xlu2 %2118 }
0x1147   :  { %v2125_v30 = vsub.f32 %v2109_v7, %v2119_v28 }
0x1149   :  { %v2131_v33 = vmul.f32 1.442695, %v2125_v30  ;;  %2136 = vadd.xlane.f32.xlu1 %v2135_v31 }
0x114b   :  { %3511 = vpow2.f32 %v2131_v33 }
0x114e   :  { %v1983_v37 = vpop.permute.xlu2 %1982 }
0x114f   :  { %v1993_v63 = vsel %vm175_vm3, %v4192_v2, %v1983_v37 }
0x1150   :  { %v1994_v1 = vsel %vm449_vm4, %v1993_v63, %v1987_v52 }
0x1151   :  { %v3512_v39 = vpop.eup %3511  ;;  %2121 = vmax.xlane.f32.xlu1 %v2120_v38 }
0x1152   :  { %v2141_v41 = vsel %vm175_vm3, %v3512_v39, 0.0 }
0x1153   :  { %2142 = vadd.xlane.f32.xlu0 %v2141_v41 }
0x1156   :  { %v2208_v48 = vpop.permute.xlu2 %2207 }
0x1157   :  { %2228 = vmatpush.msra.mxu2 %v2208_v48 }
0x115e   :  { %v2182_v43 = vpop.permute.xlu2 %2181 }
0x115f   :  { %2202 = vmatpush.msra.mxu1 %v2182_v43 }
0x1161   :  { %2393 = vmatpush.msrb.mxu1 %v2369_v17 }
0x116a   :  { %1990 = vrot.lane.b32.xlu1 %v1978_v25, %s3694_s27 }
0x1179   :  { %v2116_v44 = vpop.xlane.xlu1 %2115 }
0x117a   :  { %v2124_v27 = vsub.f32 %v2108_v18, %v2116_v44  ;;  %v2368_v18 = vld [vmem:[#allocation2 + $0x70] sm:$0xff] }
0x117b   :  { %2394 = vmatpush.msrb.mxu1 %v2368_v18  ;;  %v3401_v25 = vpack.i.bf16 %v2368_v18, %v2369_v17 }
0x117c   :  { %v2129_v45 = vmul.f32 1.442695, %v2124_v27 }
0x117d   :  { %2395 = vmatpush.msrb.mxu1 %v2367_v19 }
0x117e   :  { %3513 = vpow2.f32 %v2129_v45 }
0x117f   :  { %2396 = vmatpush.msrb.mxu1 %v2366_v24 }
0x1184   :  { %v3514_v46 = vpop.eup %3513 }
0x1185   :  { %v2138_v20 = vsel %vm175_vm3, %v3514_v46, 0.0 }
0x1191   :  { %v2156_v12 = vpop.permute.xlu1 %2155 }
0x1192   :  { %2176 = vmatpush.msra.mxu0 %v2156_v12 }
0x1194   :  { %2139 = vadd.xlane.f32.xlu1 %v2138_v20  ;;  %2298 = vmatpush.msrb.mxu0 %v2278_v36  ;;  %v2360_v36 = vperm.slane %v4091_v29, 4 }
0x1196   :  { %2299 = vmatpush.msrb.mxu0 %v2277_v47 }
0x1198   :  { %2300 = vmatpush.msrb.mxu0 %v2276_v49 }
0x119a   :  { %2301 = vmatpush.msrb.mxu0 %v2275_v51  ;;  %v4257_v51 = vld [vmem:[%s4462_s5 + $0x3] ss:$0 sm:$0xff] }
0x11bc   :  { %v2137_v50 = vpop.xlane.xlu1 %2136 }
0x11bd   :  { %3515 = vrcp.f32 %v2137_v50 }
0x11c3   :  { %v3516_v53 = vpop.eup %3515 }
0x11c4   :  { %v2151_v54 = vmul.f32 %v3516_v53, %v3510_v26  ;;  %v2122_v55 = vpop.xlane.xlu1 %2121  ;;  %v3406_v26 = vpack.i.bf16 %v2366_v24, %v2367_v19 }
0x11c5   :  { %v2126_v34 = vsub.f32 %v2110_v35, %v2122_v55 }
0x11c6   :  { %3323 = vmatmul.msk.f32.vlgmr.msra.gmra.mxu0 %vm175_vm3, %v2151_v54  ;;  %v2143_v56 = vpop.xlane.xlu0 %2142 }
0x11c7   :  { %v2133_v57 = vmul.f32 1.442695, %v2126_v34  ;;  %3517 = vrcp.f32 %v2143_v56 }
0x11c9   :  { %3519 = vpow2.f32 %v2133_v57  ;;  %v3570_v57 = vld [vmem:[%s4458_s1] sm:$0xff] }
0x11cd   :  { %v3518_v58 = vpop.eup %3517 }
0x11ce   :  { %v2153_v60 = vmul.f32 %v3518_v58, %v3512_v39  ;;  %v3571_v58 = vld [vmem:[%s4458_s1 + $0x8] sm:$0xff] }
0x11cf   :  { %v3520_v61 = vpop.eup %3519 }
0x11d0   :  { %3325 = vmatmul.msk.f32.vlgmr.msra.gmra.mxu2 %vm175_vm3, %v2153_v60  ;;  %v2144_v62 = vsel %vm175_vm3, %v3520_v61, 0.0 }
0x11d1   :  { %2145 = vadd.xlane.f32.xlu0 %v2144_v62 }
0x11dc   :  { %v1991_v0 = vpop.permute.xlu1 %1990 }
0x11dd   :  { %v1995_v23 = vsel %vm451_vm5, %v1994_v1, %v1991_v0 }
0x11de   :  { %3327 = vmatmul.msk.f32.vlgmr.msrb.gmra.mxu0 %vm105_vm0, %v1995_v23 }
0x11e5   :  { %2233 = vrot.lane.b32.xlu0 %v4152_v21, %s3692_s25 }
0x1207   :  { %v2140_v4 = vpop.xlane.xlu1 %2139 }
0x1208   :  { %3521 = vrcp.f32 %v2140_v4 }
0x120e   :  { %v3522_v5 = vpop.eup %3521 }
0x120f   :  { %v2152_v6 = vmul.f32 %v3522_v5, %v3514_v46  ;;  %v2357_v46 = vperm.slane %v4091_v29, 3 }
0x1211   :  { %3324 = vmatmul.msk.f32.vlgmr.msra.gmra.mxu1 %vm175_vm3, %v2152_v6 }
0x1243   :  { %v4228_v11 = vpop.f32.mrf.mxu0 }
0x1244   :  { %v2146_v8 = vpop.xlane.xlu0 %2145 }
0x1245   :  { %3523 = vrcp.f32 %v2146_v8 }
0x124b   :  { %v3524_v2 = vpop.eup %3523 }
0x124c   :  { %v2154_v40 = vmul.f32 %v3524_v2, %v3520_v61 }
0x1253   :  { %v2230_v22 = vpop.f32.mrf.mxu2 }
0x1257   :  { %v2234_v13 = vpop.permute.xlu0 %2233 }
0x1258   :  { %2254 = vmatpush.msra.mxu3 %v2234_v13 }
0x1259   :  { %3326 = vmatmul.msk.f32.vlgmr.msra.gmra.mxu3 %vm175_vm3, %v2154_v40 }
0x125b   :  { %v2303_v15 = vpop.f32.mrf.mxu0 }
0x125c   :  { %v2304_v21 = vadd.f32 %v2303_v15, %v2279_v14 }
0x125e   :  { %v2309_v7 = vsel %vm105_vm0, %v2304_v21, 0.0  ;;  %v2317_v59 = vmul.f32 %v2304_v21, %v2304_v21 }
0x125f   :  { %2310 = vadd.xlane.f32.xlu0 %v2309_v7 }
0x1260   :  { %v2319_v16 = vsel %vm105_vm0, %v2317_v59, 0.0 }
0x1261   :  { %2320 = vadd.xlane.f32.xlu2 %v2319_v16 }
0x1279   :  { %2264 = vrot.lane.b32.xlu2 %v2230_v22, %s3693_s26 }
0x128e   :  { %v2204_v10 = vpop.f32.mrf.mxu1 }
0x128f   :  { %2260 = vrot.lane.b32.xlu1 %v2204_v10, %s3677_s14 }
0x1297   :  { %3402 = vrot.lane.b32.xlu1 %v3401_v25, %s3684_s18 }
0x129f   :  { %3407 = vrot.lane.b32.xlu1 %v3406_v26, %s3684_s18 }
0x12d2   :  { %v2311_v28 = vpop.xlane.xlu0 %2310 }
0x12d3   :  { %v2315_v30 = vmul.f32 %v2311_v28, %v3919_v3 }
0x12d4   :  { %v2321_v31 = vpop.xlane.xlu2 %2320 }
0x12d5   :  { %v2327_v32 = vmul.f32 %v2315_v30, %v2315_v30  ;;  %v2325_v33 = vmul.f32 %v2321_v31, %v3919_v3  ;;  %v2331_v45 = vsub.f32 %v2304_v21, %v2315_v30 }
0x12d7   :  { %v2329_v35 = vsub.f32 %v2325_v33, %v2327_v32 }
0x12d9   :  { %v2333_v37 = vadd.f32 1e-05, %v2329_v35 }
0x12db   :  { %3525 = vrsqrt.f32 %v2333_v37  ;;  %vm2341_vm14 = vweird.f32 %v2333_v37 }
0x12dc   :  { %v2256_v38 = vpop.f32.mrf.mxu3  ;;  %v2265_v61 = vpop.permute.xlu2 %2264 }
0x12dd   :  { %2268 = vrot.lane.b32.xlu0 %v2256_v38, %s3694_s27 }
0x12e1   :  { %v3526_v39 = vpop.eup %3525 }
0x12e2   :  { %v2336_v41 = vmul.f32 %v3526_v39, %v2333_v37  ;;  %vm2342_vm13 = vweird.f32 %v3526_v39 }
0x12e3   :  { %vm2343_vm15 = vmor %vm2341_vm14, %vm2342_vm13 }
0x12e4   :  { %v2337_v48 = vmul.f32 %v3526_v39, %v2336_v41 }
0x12e5   :  { %2420 = vrot.lane.b32.xlu0 %v4257_v51, %s3684_s18 }
0x12e6   :  { %v2338_v43 = vmul.f32 0.5, %v2337_v48 }
0x12e8   :  { %v2339_v44 = vsub.f32 1.5, %v2338_v43 }
0x12ea   :  { %v2340_v27 = vmul.f32 %v3526_v39, %v2339_v44 }
0x12ec   :  { %v2344_v12 = vsel %vm2343_vm15, %v3526_v39, %v2340_v27 }
0x12ed   :  { %v2355_v20 = vmul.f32 %v2344_v12, %v2331_v45 }
0x12ef   :  { %v2358_v47 = vmul.f32 %v2357_v46, %v2355_v20 }
0x12f1   :  { %v2361_v49 = vadd.f32 %v2360_v36, %v2358_v47 }
0x12f3   :  { %v4250_v50 = vadd.f32 %v2361_v49, %v4096_v42 }
0x12f5   :  { %3330 = vmatmul.msk.f32.vlgmr.msrb.gmra.mxu1 %vm105_vm0, %v4250_v50 }
0x1301   :  { %v2261_v52 = vpop.permute.xlu1 %2260 }
0x1302   :  { %v2271_v60 = vsel %vm175_vm3, %v4228_v11, %v2261_v52 }
0x1303   :  { %v2272_v63 = vsel %vm449_vm4, %v2271_v60, %v2265_v61 }
0x1309   :  { %v3403_v53 = vpop.permute.xlu1 %3402 }
0x130a   :  { %v3405_v54 = vunpack.i.h.bf16 %v3403_v53  ;;  %v3404_v55 = vunpack.i.l.bf16 %v3403_v53 }
0x130c   :  { %2435 = vmatpush.msrb.mxu2 %v3404_v55 }
0x130e   :  { %2436 = vmatpush.msrb.mxu2 %v3405_v54 }
0x1311   :  { %v3408_v34 = vpop.permute.xlu1 %3407 }
0x1312   :  { %v3410_v42 = vunpack.i.h.bf16 %v3408_v34  ;;  %v3409_v56 = vunpack.i.l.bf16 %v3408_v34 }
0x1314   :  { %2437 = vmatpush.msrb.mxu2 %v3409_v56 }
0x1316   :  { %2438 = vmatpush.msrb.mxu2 %v3410_v42 }
0x1317   :  { %3332 = vmatmul.msk.f32.vlgmr.msrb.gmra.mxu2 %vm105_vm0, %v3570_v57 }
0x131f   :  { %3333 = vmatmul.msk.f32.gmra.mxu2 %vm105_vm0, %v3571_v58 }
0x134f   :  { %v2269_v62 = vpop.permute.xlu0 %2268 }
0x1350   :  { %v2273_v0 = vsel %vm451_vm5, %v2272_v63, %v2269_v62 }
0x1351   :  { %3328 = vmatmul.msk.f32.gmra.mxu0 %vm105_vm0, %v2273_v0 }
0x1357   :  { %v4274_v1 = vpop.permute.xlu0 %2420 }
0x1372   :  { %v2398_v4 = vpop.f32.mrf.mxu1 }
0x1373   :  { %v2399_v6 = vadd.f32 %v4257_v51, %v2398_v4 }
0x139a   :  { %v2440_v23 = vpop.f32.mrf.mxu2 }
0x139b   :  { %v4277_v5 = vadd.f32 %v2440_v23, %v4274_v1 }
0x139d   :  { %2474 = vrot.lane.b32.xlu0 %v4277_v5, %s3683_s17  ;;  %3334 = vmatpush.xpose.msk.msrb.mxu3 %vm175_vm3, %v4277_v5 }
0x13a0   :  { %3335 = vmatmul.msk.f32.vlgmr.msrb.gmra.mxu3 %vm175_vm3, %v2399_v6 }
0x13a2   :  { %v2443_v60 = vpop.f32.mrf.mxu2 }
0x13a3   :  { %v4330_v61 = vadd.f32 %v2443_v60, %v4274_v1 }
0x13a5   :  { %2472 = vrot.lane.b32.xlu0 %v2399_v6, %s3683_s17 }
0x13ad   :  { %2502 = vrot.lane.b32.xlu0 %v4277_v5, %s3688_s7 }
0x13b5   :  { %2530 = vrot.lane.b32.xlu0 %v4277_v5, %s3687_s19 }
0x13bd   :  { %2500 = vrot.lane.b32.xlu0 %v2399_v6, %s3688_s7 }
0x13ce   :  { %v2306_v8 = vpop.f32.mrf.mxu0 }
0x13cf   :  { %v2307_v11 = vadd.f32 %v2306_v8, %v2279_v14 }
0x13d1   :  { %v2312_v2 = vsel %vm105_vm0, %v2307_v11, 0.0  ;;  %v2318_v40 = vmul.f32 %v2307_v11, %v2307_v11 }
0x13d2   :  { %2313 = vadd.xlane.f32.xlu2 %v2312_v2 }
0x13d3   :  { %v2322_v13 = vsel %vm105_vm0, %v2318_v40, 0.0 }
0x13d4   :  { %2323 = vadd.xlane.f32.xlu1 %v2322_v13 }
0x13ea   :  { %2528 = vrot.lane.b32.xlu2 %v2399_v6, %s3687_s19 }
0x140f   :  { %v2475_v15 = vpop.permute.xlu0 %2474 }
0x1410   :  { %3336 = vmatpush.xpose.msk.msra.mxu3 %vm175_vm3, %v2475_v15 }
0x1417   :  { %v2473_v21 = vpop.permute.xlu0 %2472 }
0x1418   :  { %3337 = vmatmul.msk.f32.vlgmr.msra.gmra.mxu3 %vm175_vm3, %v2473_v21 }
0x141f   :  { %v2503_v7 = vpop.permute.xlu0 %2502 }
0x1420   :  { %3338 = vmatpush.xpose.msk.msra.mxu0 %vm175_vm3, %v2503_v7 }
0x1423   :  { %v4299_v59 = vpop.f32.mrf.mxu3 }
0x1424   :  { %v2556_v14 = vsel %vm175_vm3, %v4299_v59, -inf }
0x1425   :  { %2557 = vmax.xlane.f32.xlu1 %v2556_v14 }
0x1427   :  { %v2531_v16 = vpop.permute.xlu0 %2530 }
0x1428   :  { %3340 = vmatpush.xpose.msk.msra.mxu1 %vm175_vm3, %v2531_v16 }
0x142f   :  { %v2501_v17 = vpop.permute.xlu0 %2500 }
0x1430   :  { %3339 = vmatmul.msk.f32.vlgmr.msra.gmra.mxu0 %vm175_vm3, %v2501_v17 }
0x1445   :  { %v2314_v18 = vpop.xlane.xlu2 %2313 }
0x1446   :  { %v2316_v19 = vmul.f32 %v2314_v18, %v3919_v3 }
0x1447   :  { %v2324_v22 = vpop.xlane.xlu1 %2323 }
0x1448   :  { %v2328_v24 = vmul.f32 %v2316_v19, %v2316_v19  ;;  %v2326_v10 = vmul.f32 %v2324_v22, %v3919_v3  ;;  %v2332_v37 = vsub.f32 %v2307_v11, %v2316_v19 }
0x144a   :  { %v2330_v25 = vsub.f32 %v2326_v10, %v2328_v24 }
0x144c   :  { %v2334_v26 = vadd.f32 1e-05, %v2330_v25 }
0x144d   :  { %v2529_v44 = vpop.permute.xlu2 %2528 }
0x144e   :  { %3527 = vrsqrt.f32 %v2334_v26  ;;  %vm2351_vm2 = vweird.f32 %v2334_v26 }
0x1454   :  { %v3528_v28 = vpop.eup %3527 }
0x1455   :  { %v2346_v30 = vmul.f32 %v3528_v28, %v2334_v26  ;;  %vm2352_vm1 = vweird.f32 %v3528_v28 }
0x1456   :  { %vm2353_vm6 = vmor %vm2351_vm2, %vm2352_vm1 }
0x1457   :  { %v2347_v31 = vmul.f32 %v3528_v28, %v2346_v30 }
0x1459   :  { %v2348_v32 = vmul.f32 0.5, %v2347_v31 }
0x145b   :  { %v2349_v33 = vsub.f32 1.5, %v2348_v32 }
0x145d   :  { %v2350_v35 = vmul.f32 %v3528_v28, %v2349_v33 }
0x145f   :  { %v2354_v38 = vsel %vm2353_vm6, %v3528_v28, %v2350_v35 }
0x1460   :  { %v2356_v39 = vmul.f32 %v2354_v38, %v2332_v37 }
0x1462   :  { %v2359_v41 = vmul.f32 %v2357_v46, %v2356_v39 }
0x1464   :  { %v2362_v48 = vadd.f32 %v2360_v36, %v2359_v41 }
0x1466   :  { %v4312_v43 = vadd.f32 %v2362_v48, %v4135_v9 }
0x1468   :  { %3331 = vmatmul.msk.f32.gmra.mxu1 %vm105_vm0, %v4312_v43 }
0x1470   :  { %3341 = vmatmul.msk.f32.vlgmr.msra.gmra.mxu1 %vm175_vm3, %v2529_v44 }
0x1498   :  { %v2558_v9 = vpop.xlane.xlu1 %2557 }
0x1499   :  { %v2568_v23 = vsub.f32 %v4299_v59, %v2558_v9 }
0x149b   :  { %v2497_v27 = vpop.f32.mrf.mxu3  ;;  %v2572_v4 = vmul.f32 1.442695, %v2568_v23 }
0x149c   :  { %v2559_v45 = vsel %vm175_vm3, %v2497_v27, -inf }
0x149d   :  { %2560 = vmax.xlane.f32.xlu1 %v2559_v45 }
0x14ad   :  { %v2525_v12 = vpop.f32.mrf.mxu0 }
0x14ae   :  { %v2562_v20 = vsel %vm175_vm3, %v2525_v12, -inf }
0x14af   :  { %2563 = vmax.xlane.f32.xlu0 %v2562_v20 }
0x14e5   :  { %v2401_v46 = vpop.f32.mrf.mxu1 }
0x14e6   :  { %v4325_v58 = vadd.f32 %v4257_v51, %v2401_v46 }
0x14ed   :  { %v2553_v29 = vpop.f32.mrf.mxu1 }
0x14ee   :  { %v2565_v36 = vsel %vm175_vm3, %v2553_v29, -inf }
0x14ef   :  { %2566 = vmax.xlane.f32.xlu1 %v2565_v36 }
0x1508   :  { %2626 = vrot.lane.b32.xlu1 %v4277_v5, %s3686_s4 }
0x1510   :  { %v2561_v47 = vpop.xlane.xlu1 %2560 }
0x1511   :  { %v2569_v49 = vsub.f32 %v2497_v27, %v2561_v47 }
0x1513   :  { %v2574_v52 = vmul.f32 1.442695, %v2569_v49 }
0x1515   :  { %3529 = vpow2.f32 %v2574_v52 }
0x151b   :  { %v3530_v53 = vpop.eup %3529 }
0x151c   :  { %v2583_v54 = vsel %vm175_vm3, %v3530_v53, 0.0 }
0x151d   :  { %2584 = vadd.xlane.f32.xlu2 %v2583_v54 }
0x1522   :  { %v2564_v55 = vpop.xlane.xlu0 %2563 }
0x1523   :  { %v2570_v34 = vsub.f32 %v2525_v12, %v2564_v55 }
0x1525   :  { %v2576_v42 = vmul.f32 1.442695, %v2570_v34 }
0x1527   :  { %3531 = vpow2.f32 %v2576_v42 }
0x152d   :  { %v3532_v56 = vpop.eup %3531 }
0x152e   :  { %v2586_v57 = vsel %vm175_vm3, %v3532_v56, 0.0 }
0x152f   :  { %2587 = vadd.xlane.f32.xlu0 %v2586_v57 }
0x1535   :  { %2745 = vrot.lane.b32.xlu2 %v4325_v58, %s3683_s17 }
0x153d   :  { %2775 = vrot.lane.b32.xlu2 %v4330_v61, %s3688_s7 }
0x1543   :  { %2747 = vrot.lane.b32.xlu0 %v4330_v61, %s3683_s17 }
0x1545   :  { %2801 = vrot.lane.b32.xlu2 %v4325_v58, %s3687_s19 }
0x154b   :  { %2652 = vrot.lane.b32.xlu0 %v4277_v5, %s3685_s6 }
0x154d   :  { %2600 = vrot.lane.b32.xlu2 %v4277_v5, %s3684_s18 }
0x1553   :  { %2678 = vrot.lane.b32.xlu0 %v4277_v5, %s3682_s16 }
0x155b   :  { %2803 = vrot.lane.b32.xlu0 %v4330_v61, %s3687_s19 }
0x1562   :  { %v2567_v51 = vpop.xlane.xlu1 %2566 }
0x1563   :  { %v2571_v62 = vsub.f32 %v2553_v29, %v2567_v51 }
0x1565   :  { %v2578_v63 = vmul.f32 1.442695, %v2571_v62 }
0x1567   :  { %3533 = vpow2.f32 %v2578_v63 }
0x1568   :  { %3535 = vpow2.f32 %v2572_v4 }
0x156d   :  { %v3534_v0 = vpop.eup %3533 }
0x156e   :  { %v2589_v1 = vsel %vm175_vm3, %v3534_v0, 0.0  ;;  %v3536_v8 = vpop.eup %3535 }
0x156f   :  { %2590 = vadd.xlane.f32.xlu1 %v2589_v1  ;;  %v2580_v5 = vsel %vm175_vm3, %v3536_v8, 0.0 }
0x157a   :  { %v2627_v6 = vpop.permute.xlu1 %2626 }
0x157b   :  { %2647 = vmatpush.msrb.mxu3 %v2627_v6 }
0x1585   :  { %2581 = vadd.xlane.f32.xlu0 %v2580_v5 }
0x1588   :  { %2773 = vrot.lane.b32.xlu1 %v4325_v58, %s3688_s7  ;;  %s3219_s7 = sshll.u32 %s4465_s8, 4  ;;  %s3220_s7 = int_to_ptr.hbm [resolvable:$true] %s3219_s7 }
0x1590   :  { %v2585_v11 = vpop.xlane.xlu2 %2584 }
0x1591   :  { %3537 = vrcp.f32 %v2585_v11 }
0x1597   :  { %v3538_v2 = vpop.eup %3537 }
0x1598   :  { %v2597_v40 = vmul.f32 %v3538_v2, %v3530_v53  ;;  %v2746_v13 = vpop.permute.xlu2 %2745 }
0x159a   :  { %3343 = vmatmul.msk.f32.vlgmr.msrb.gmra.mxu3 %vm175_vm3, %v2597_v40 }
0x15a0   :  { %v2776_v15 = vpop.permute.xlu2 %2775 }
0x15a2   :  { %v2588_v7 = vpop.xlane.xlu0 %2587 }
0x15a3   :  { %3539 = vrcp.f32 %v2588_v7  ;;  %v2995_v7 = vld [vmem:[#allocation5 + $0x70] sm:$0xff] }
0x15a8   :  { %v2802_v21 = vpop.permute.xlu2 %2801 }
0x15a9   :  { %v3540_v16 = vpop.eup %3539 }
0x15aa   :  { %v2598_v17 = vmul.f32 %v3540_v16, %v3532_v56 }
0x15b0   :  { %v2601_v59 = vpop.permute.xlu2 %2600 }
0x15b1   :  { %2621 = vmatpush.msra.mxu2 %v2601_v59  ;;  %v2994_v59 = vld [vmem:[#allocation5 + $0x68] sm:$0xff] }
0x15b3   :  { %3346 = vmatpush.xpose.msk.msrb.mxu2 %vm175_vm3, %v4330_v61 }
0x15b5   :  { %v2748_v14 = vpop.permute.xlu0 %2747 }
0x15b6   :  { %3348 = vmatpush.xpose.msk.msra.mxu3 %vm175_vm3, %v2748_v14  ;;  %v2993_v14 = vld [vmem:[#allocation5 + $0x60] sm:$0xff] }
0x15b9   :  { %3349 = vmatmul.msk.f32.vlgmr.msra.gmra.mxu3 %vm175_vm3, %v2746_v13 }
0x15bd   :  { %v2653_v18 = vpop.permute.xlu0 %2652 }
0x15be   :  { %2673 = vmatpush.msrb.mxu0 %v2653_v18 }
0x15bf   :  { %3344 = vmatmul.msk.f32.vlgmr.msrb.gmra.mxu0 %vm175_vm3, %v2598_v17 }
0x15c0   :  { %3350 = vmatpush.xpose.msk.msra.mxu0 %vm175_vm3, %v2776_v15 }
0x15c5   :  { %v2679_v19 = vpop.permute.xlu0 %2678 }
0x15c6   :  { %2699 = vmatpush.msrb.mxu1 %v2679_v19 }
0x15cd   :  { %v2804_v22 = vpop.permute.xlu0 %2803 }
0x15ce   :  { %3352 = vmatpush.xpose.msk.msra.mxu1 %vm175_vm3, %v2804_v22 }
0x15e2   :  { %v2591_v24 = vpop.xlane.xlu1 %2590 }
0x15e3   :  { %3541 = vrcp.f32 %v2591_v24 }
0x15e9   :  { %v3542_v10 = vpop.eup %3541 }
0x15ea   :  { %v2599_v25 = vmul.f32 %v3542_v10, %v3534_v0 }
0x15ec   :  { %3345 = vmatmul.msk.f32.vlgmr.msrb.gmra.mxu1 %vm175_vm3, %v2599_v25 }
0x15f4   :  { %3353 = vmatmul.msk.f32.vlgmr.msra.gmra.mxu1 %vm175_vm3, %v2802_v21  ;;  %v2996_v21 = vld [vmem:[#allocation5 + $0x78] sm:$0xff] }
0x15f8   :  { %v2582_v26 = vpop.xlane.xlu0 %2581 }
0x15f9   :  { %3543 = vrcp.f32 %v2582_v26 }
0x15fa   :  { %v2774_v28 = vpop.permute.xlu1 %2773 }
0x15fb   :  { %3351 = vmatmul.msk.f32.vlgmr.msra.gmra.mxu0 %vm175_vm3, %v2774_v28 }
0x15ff   :  { %v3544_v30 = vpop.eup %3543 }
0x1600   :  { %v2596_v31 = vmul.f32 %v3544_v30, %v3536_v8 }
0x1602   :  { %3342 = vmatmul.msk.f32.vlgmr.msra.gmra.mxu2 %vm175_vm3, %v2596_v31 }
0x160a   :  { %3347 = vmatmul.msk.f32.vlgmr.msrb.gmra.mxu2 %vm175_vm3, %v4325_v58 }
0x161d   :  { %v2649_v32 = vpop.f32.mrf.mxu3 }
0x163c   :  { %v2770_v33 = vpop.f32.mrf.mxu3  ;;  %v2675_v38 = vpop.f32.mrf.mxu0 }
0x163d   :  { %v2832_v35 = vsel %vm175_vm3, %v2770_v33, -inf }
0x163e   :  { %2833 = vmax.xlane.f32.xlu2 %v2832_v35 }
0x1669   :  { %v2701_v37 = vpop.f32.mrf.mxu1 }
0x1671   :  { %v2826_v39 = vpop.f32.mrf.mxu1 }
0x1672   :  { %v2838_v41 = vsel %vm175_vm3, %v2826_v39, -inf }
0x1673   :  { %2839 = vmax.xlane.f32.xlu0 %v2838_v41 }
0x1678   :  { %v2798_v48 = vpop.f32.mrf.mxu0 }
0x1679   :  { %v2835_v44 = vsel %vm175_vm3, %v2798_v48, -inf }
0x167a   :  { %2836 = vmax.xlane.f32.xlu1 %v2835_v44 }
0x1685   :  { %v4368_v27 = vpop.f32.mrf.mxu2 }
0x168d   :  { %v2742_v45 = vpop.f32.mrf.mxu2 }
0x168e   :  { %v2829_v12 = vsel %vm175_vm3, %v2742_v45, -inf }
0x168f   :  { %2830 = vmax.xlane.f32.xlu0 %v2829_v12 }
0x16b1   :  { %v2834_v20 = vpop.xlane.xlu2 %2833 }
0x16b2   :  { %v2842_v46 = vsub.f32 %v2770_v33, %v2834_v20  ;;  %v4401_v33 = vld [vmem:[%s4460_s3 + $0x38] sm:$0xff] }
0x16b3   :  { %v2997_v35 = vperm.slane %v4401_v33, 5 }
0x16b4   :  { %v2847_v29 = vmul.f32 1.442695, %v2842_v46 }
0x16b6   :  { %3545 = vpow2.f32 %v2847_v29  ;;  %v3087_v29 = vld [vmem:[#allocation7 + $0x58] sm:$0xff] }
0x16bc   :  { %v3546_v36 = vpop.eup %3545 }
0x16bd   :  { %v2856_v9 = vsel %vm175_vm3, %v3546_v36, 0.0 }
0x16be   :  { %2857 = vadd.xlane.f32.xlu2 %v2856_v9  ;;  %v3085_v9 = vld [vmem:[#allocation7 + $0x48] sm:$0xff] }
0x16d6   :  { %2899 = vrot.lane.b32.xlu2 %v4330_v61, %s3686_s4 }
0x16de   :  { %2873 = vrot.lane.b32.xlu2 %v4330_v61, %s3684_s18 }
0x16e6   :  { %2709 = vrot.lane.b32.xlu2 %v2675_v38, %s3693_s26  ;;  %v2840_v47 = vpop.xlane.xlu0 %2839 }
0x16e7   :  { %v2844_v49 = vsub.f32 %v2826_v39, %v2840_v47 }
0x16e9   :  { %v2851_v52 = vmul.f32 1.442695, %v2844_v49  ;;  %v3084_v49 = vld [vmem:[#allocation7 + $0x40] sm:$0xff] }
0x16eb   :  { %3547 = vpow2.f32 %v2851_v52 }
0x16ed   :  { %v2837_v53 = vpop.xlane.xlu1 %2836 }
0x16ee   :  { %v2843_v54 = vsub.f32 %v2798_v48, %v2837_v53 }
0x16f0   :  { %v2849_v55 = vmul.f32 1.442695, %v2843_v54 }
0x16f1   :  { %v3548_v34 = vpop.eup %3547 }
0x16f2   :  { %3549 = vpow2.f32 %v2849_v55  ;;  %v2862_v42 = vsel %vm175_vm3, %v3548_v34, 0.0 }
0x16f3   :  { %2863 = vadd.xlane.f32.xlu1 %v2862_v42 }
0x16f8   :  { %v3550_v56 = vpop.eup %3549 }
0x16f9   :  { %v2859_v57 = vsel %vm175_vm3, %v3550_v56, 0.0 }
0x16fa   :  { %2860 = vadd.xlane.f32.xlu0 %v2859_v57 }
0x1702   :  { %v2831_v58 = vpop.xlane.xlu0 %2830 }
0x1703   :  { %v2841_v60 = vsub.f32 %v2742_v45, %v2831_v58 }
0x1705   :  { %v2845_v51 = vmul.f32 1.442695, %v2841_v60 }
0x1707   :  { %3551 = vpow2.f32 %v2845_v51 }
0x170c   :  { %2951 = vrot.lane.b32.xlu1 %v4330_v61, %s3682_s16 }
0x170d   :  { %v3552_v63 = vpop.eup %3551 }
0x170e   :  { %2925 = vrot.lane.b32.xlu0 %v4330_v61, %s3685_s6  ;;  %v2853_v0 = vsel %vm175_vm3, %v3552_v63, 0.0 }
0x1714   :  { %2705 = vrot.lane.b32.xlu1 %v2649_v32, %s3677_s14 }
0x171c   :  { %2713 = vrot.lane.b32.xlu1 %v2701_v37, %s3694_s27 }
0x1731   :  { %v2858_v62 = vpop.xlane.xlu2 %2857 }
0x1732   :  { %3553 = vrcp.f32 %v2858_v62 }
0x1738   :  { %v3554_v1 = vpop.eup %3553  ;;  %2854 = vadd.xlane.f32.xlu0 %v2853_v0  ;;  %v3075_v0 = vperm.slane %v4401_v33, 6 }
0x1739   :  { %v2870_v23 = vmul.f32 %v3554_v1, %v3546_v36  ;;  %v2900_v4 = vpop.permute.xlu2 %2899  ;;  %v3086_v36 = vld [vmem:[#allocation7 + $0x50] sm:$0xff] }
0x173a   :  { %2920 = vmatpush.msrb.mxu3 %v2900_v4  ;;  %v3078_v4 = vperm.slane %v4401_v33, 7 }
0x173b   :  { %3355 = vmatmul.msk.f32.vlgmr.msrb.gmra.mxu3 %vm175_vm3, %v2870_v23 }
0x173c   :  { %3107 = vmatpush.msra.mxu3 %v3087_v29 }
0x173e   :  { %3108 = vmatpush.msra.mxu3 %v3086_v36 }
0x1740   :  { %3109 = vmatpush.msra.mxu3 %v3085_v9 }
0x1741   :  { %v2874_v61 = vpop.permute.xlu2 %2873 }
0x1742   :  { %2894 = vmatpush.msra.mxu2 %v2874_v61  ;;  %3110 = vmatpush.msra.mxu3 %v3084_v49 }
0x1744   :  { %3016 = vmatpush.msrb.mxu2 %v2996_v21  ;;  %v3123_v21 = vld [vmem:[#allocation7 + $0x70] sm:$0xff] }
0x1746   :  { %3017 = vmatpush.msrb.mxu2 %v2995_v7  ;;  %v3122_v7 = vld [vmem:[#allocation7 + $0x68] sm:$0xff] }
0x1748   :  { %3018 = vmatpush.msrb.mxu2 %v2994_v59  ;;  %v4424_v59 = vld [vmem:[%s4460_s3 + $0x40] sm:$0xf]  ;;  %s3696_s3 = smov [#allocation8]  }
0x1749   :  { %v2710_v10 = vpop.permute.xlu2 %2709  ;;  %s3217_s6 = sshll.u32 %s3696_s3, 4  ;;  %s3218_s6 = int_to_ptr.vmem [resolvable:$true] %s3217_s6 }
0x174a   :  { %3019 = vmatpush.msrb.mxu2 %v2993_v14  ;;  %v3088_v14 = vperm.slane %v4424_v59, 0 }
0x1766   :  { %v2864_v6 = vpop.xlane.xlu1 %2863 }
0x1767   :  { %3555 = vrcp.f32 %v2864_v6 }
0x176d   :  { %v2861_v8 = vpop.xlane.xlu0 %2860  ;;  %v3556_v5 = vpop.eup %3555 }
0x176e   :  { %3557 = vrcp.f32 %v2861_v8  ;;  %v2872_v2 = vmul.f32 %v3556_v5, %v3548_v34  ;;  %v3124_v5 = vld [vmem:[#allocation7 + $0x78] sm:$0xff] }
0x1774   :  { %v3558_v11 = vpop.eup %3557 }
0x1775   :  { %v2871_v13 = vmul.f32 %v3558_v11, %v3550_v56 }
0x177e   :  { %v2952_v40 = vpop.permute.xlu1 %2951 }
0x177f   :  { %2972 = vmatpush.msrb.mxu1 %v2952_v40 }
0x1780   :  { %v2926_v15 = vpop.permute.xlu0 %2925  ;;  %3357 = vmatmul.msk.f32.vlgmr.msrb.gmra.mxu1 %vm175_vm3, %v2872_v2 }
0x1781   :  { %2946 = vmatpush.msrb.mxu0 %v2926_v15 }
0x1782   :  { %3356 = vmatmul.msk.f32.vlgmr.msrb.gmra.mxu0 %vm175_vm3, %v2871_v13 }
0x1783   :  { %3144 = vmatpush.msra.mxu0 %v3124_v5 }
0x1785   :  { %3145 = vmatpush.msra.mxu0 %v3123_v21 }
0x1786   :  { %v2706_v17 = vpop.permute.xlu1 %2705 }
0x1787   :  { %v2716_v22 = vsel %vm175_vm3, %v4368_v27, %v2706_v17  ;;  %3146 = vmatpush.msra.mxu0 %v3122_v7 }
0x1788   :  { %v2717_v25 = vsel %vm449_vm4, %v2716_v22, %v2710_v10 }
0x178e   :  { %v2714_v24 = vpop.permute.xlu1 %2713 }
0x178f   :  { %v2718_v26 = vsel %vm451_vm5, %v2717_v25, %v2714_v24 }
0x17ab   :  { %v2855_v16 = vpop.xlane.xlu0 %2854 }
0x17ac   :  { %3559 = vrcp.f32 %v2855_v16 }
0x17b2   :  { %v3560_v18 = vpop.eup %3559 }
0x17b3   :  { %v2869_v19 = vmul.f32 %v3560_v18, %v3552_v63 }
0x17b5   :  { %3354 = vmatmul.msk.f32.vlgmr.msra.gmra.mxu2 %vm175_vm3, %v2869_v19 }
0x17bd   :  { %3358 = vmatmul.msk.f32.vlgmr.msrb.gmra.mxu2 %vm105_vm0, %v2718_v26 }
0x17be   :  { %v2922_v28 = vpop.f32.mrf.mxu3 }
0x17bf   :  { %2978 = vrot.lane.b32.xlu2 %v2922_v28, %s3677_s14 }
0x17fd   :  { %v2974_v30 = vpop.f32.mrf.mxu1 }
0x17fe   :  { %2986 = vrot.lane.b32.xlu2 %v2974_v30, %s3694_s27 }
0x17ff   :  { %v2948_v31 = vpop.f32.mrf.mxu0 }
0x1800   :  { %2982 = vrot.lane.b32.xlu1 %v2948_v31, %s3693_s26 }
0x1819   :  { %v2979_v44 = vpop.permute.xlu2 %2978 }
0x1838   :  { %v2896_v32 = vpop.f32.mrf.mxu2 }
0x1839   :  { %v2989_v27 = vsel %vm175_vm3, %v2896_v32, %v2979_v44 }
0x1840   :  { %v3021_v37 = vpop.f32.mrf.mxu2 }
0x1841   :  { %v3022_v38 = vadd.f32 %v3021_v37, %v2997_v35 }
0x1843   :  { %v3027_v39 = vsel %vm105_vm0, %v3022_v38, 0.0  ;;  %v3035_v41 = vmul.f32 %v3022_v38, %v3022_v38 }
0x1844   :  { %3028 = vadd.xlane.f32.xlu1 %v3027_v39 }
0x1845   :  { %v3037_v48 = vsel %vm105_vm0, %v3035_v41, 0.0 }
0x1846   :  { %3038 = vadd.xlane.f32.xlu2 %v3037_v48 }
0x1858   :  { %v2987_v12 = vpop.permute.xlu2 %2986 }
0x1872   :  { %v2983_v45 = vpop.permute.xlu1 %2982 }
0x1873   :  { %v2990_v20 = vsel %vm449_vm4, %v2989_v27, %v2983_v45  ;;  %v3125_v45 = vperm.slane %v4424_v59, 1 }
0x1874   :  { %v2991_v46 = vsel %vm451_vm5, %v2990_v20, %v2987_v12 }
0x1875   :  { %3359 = vmatmul.msk.f32.gmra.mxu2 %vm105_vm0, %v2991_v46 }
0x18b7   :  { %v3029_v47 = vpop.xlane.xlu1 %3028 }
0x18b8   :  { %v3033_v52 = vmul.f32 %v3029_v47, %v3919_v3 }
0x18b9   :  { %v3039_v53 = vpop.xlane.xlu2 %3038 }
0x18ba   :  { %v3045_v54 = vmul.f32 %v3033_v52, %v3033_v52  ;;  %v3043_v55 = vmul.f32 %v3039_v53, %v3919_v3  ;;  %v3049_v63 = vsub.f32 %v3022_v38, %v3033_v52 }
0x18bc   :  { %v3047_v34 = vsub.f32 %v3043_v55, %v3045_v54 }
0x18be   :  { %v3051_v42 = vadd.f32 1e-05, %v3047_v34 }
0x18c0   :  { %3561 = vrsqrt.f32 %v3051_v42  ;;  %vm3059_vm4 = vweird.f32 %v3051_v42 }
0x18c6   :  { %v3562_v56 = vpop.eup %3561 }
0x18c7   :  { %v3054_v57 = vmul.f32 %v3562_v56, %v3051_v42  ;;  %vm3060_vm3 = vweird.f32 %v3562_v56 }
0x18c8   :  { %vm3061_vm5 = vmor %vm3059_vm4, %vm3060_vm3 }
0x18c9   :  { %v3055_v58 = vmul.f32 %v3562_v56, %v3054_v57 }
0x18cb   :  { %v3056_v60 = vmul.f32 0.5, %v3055_v58 }
0x18cd   :  { %v3057_v51 = vsub.f32 1.5, %v3056_v60 }
0x18cf   :  { %v3058_v62 = vmul.f32 %v3562_v56, %v3057_v51 }
0x18d1   :  { %v3062_v1 = vsel %vm3061_vm5, %v3562_v56, %v3058_v62 }
0x18d2   :  { %v3073_v23 = vmul.f32 %v3062_v1, %v3049_v63 }
0x18d4   :  { %v3076_v61 = vmul.f32 %v3075_v0, %v3073_v23 }
0x18d6   :  { %v3079_v6 = vadd.f32 %v3078_v4, %v3076_v61 }
0x18d8   :  { %v4415_v8 = vadd.f32 %v3079_v6, %v4250_v50  ;;  %v3121_v50 = vld [vmem:[#allocation7 + $0x60] sm:$0xff] }
0x18d9   :  { %3147 = vmatpush.msra.mxu0 %v3121_v50  ;;  %v3203_v50 = vperm.slane %v4424_v59, 2 }
0x18da   :  { %3360 = vmatmul.msk.f32.vlgmr.msra.gmra.mxu3 %vm105_vm0, %v4415_v8 }
0x18f8   :  { %v3024_v11 = vpop.f32.mrf.mxu2 }
0x18f9   :  { %v3025_v2 = vadd.f32 %v3024_v11, %v2997_v35 }
0x18fb   :  { %v3030_v40 = vsel %vm105_vm0, %v3025_v2, 0.0  ;;  %v3036_v13 = vmul.f32 %v3025_v2, %v3025_v2 }
0x18fc   :  { %3031 = vadd.xlane.f32.xlu0 %v3030_v40 }
0x18fd   :  { %v3040_v15 = vsel %vm105_vm0, %v3036_v13, 0.0 }
0x1904   :  { %3041 = vadd.xlane.f32.xlu0 %v3040_v15 }
0x195d   :  { %v3112_v16 = vpop.f32.mrf.mxu3 }
0x195e   :  { %v3113_v17 = vadd.f32 %v3112_v16, %v3088_v14 }
0x1960   :  { %v3118_v18 = vmax.f32 %v3113_v17, 0.0  ;;  %v3206_v17 = vperm.slane %v4424_v59, 3 }
0x1962   :  { %3362 = vmatmul.msk.f32.vlgmr.msra.gmra.mxu0 %vm105_vm0, %v3118_v18 }
0x196f   :  { %v3032_v19 = vpop.xlane.xlu0 %3031 }
0x1970   :  { %v3034_v22 = vmul.f32 %v3032_v19, %v3919_v3 }
0x1972   :  { %v3046_v10 = vmul.f32 %v3034_v22, %v3034_v22  ;;  %v3050_v38 = vsub.f32 %v3025_v2, %v3034_v22 }
0x1977   :  { %v3042_v24 = vpop.xlane.xlu0 %3041 }
0x1978   :  { %v3044_v25 = vmul.f32 %v3042_v24, %v3919_v3 }
0x197a   :  { %v3048_v26 = vsub.f32 %v3044_v25, %v3046_v10 }
0x197c   :  { %v3052_v28 = vadd.f32 1e-05, %v3048_v26 }
0x197e   :  { %3563 = vrsqrt.f32 %v3052_v28  ;;  %vm3069_vm8 = vweird.f32 %v3052_v28 }
0x1984   :  { %v3564_v30 = vpop.eup %3563 }
0x1985   :  { %v3064_v31 = vmul.f32 %v3564_v30, %v3052_v28  ;;  %vm3070_vm7 = vweird.f32 %v3564_v30 }
0x1986   :  { %vm3071_vm9 = vmor %vm3069_vm8, %vm3070_vm7 }
0x1987   :  { %v3065_v32 = vmul.f32 %v3564_v30, %v3064_v31 }
0x1989   :  { %v3066_v33 = vmul.f32 0.5, %v3065_v32 }
0x198b   :  { %v3067_v35 = vsub.f32 1.5, %v3066_v33 }
0x198d   :  { %v3068_v37 = vmul.f32 %v3564_v30, %v3067_v35 }
0x198f   :  { %v3072_v39 = vsel %vm3071_vm9, %v3564_v30, %v3068_v37 }
0x1990   :  { %v3074_v41 = vmul.f32 %v3072_v39, %v3050_v38 }
0x1992   :  { %v3077_v48 = vmul.f32 %v3075_v0, %v3074_v41 }
0x1994   :  { %v3080_v44 = vadd.f32 %v3078_v4, %v3077_v48 }
0x1996   :  { %v4431_v27 = vadd.f32 %v3080_v44, %v4312_v43 }
0x1998   :  { %3361 = vmatmul.msk.f32.gmra.mxu3 %vm105_vm0, %v4431_v27 }
0x19df   :  { %v3149_v12 = vpop.f32.mrf.mxu0 }
0x19e0   :  { %v3150_v20 = vadd.f32 %v3149_v12, %v3125_v45 }
0x19e2   :  { %v3155_v46 = vsel %vm105_vm0, %v3150_v20, 0.0  ;;  %v3163_v54 = vmul.f32 %v3150_v20, %v3150_v20 }
0x19e3   :  { %3156 = vadd.xlane.f32.xlu0 %v3155_v46 }
0x19e4   :  { %v3165_v55 = vsel %vm105_vm0, %v3163_v54, 0.0 }
0x1a1b   :  { %v3115_v29 = vpop.f32.mrf.mxu3 }
0x1a1c   :  { %v3116_v36 = vadd.f32 %v3115_v29, %v3088_v14 }
0x1a1e   :  { %v3119_v9 = vmax.f32 %v3116_v36, 0.0 }
0x1a20   :  { %3363 = vmatmul.msk.f32.gmra.mxu0 %vm105_vm0, %v3119_v9 }
0x1a56   :  { %v3157_v34 = vpop.xlane.xlu0 %3156 }
0x1a57   :  { %v3161_v51 = vmul.f32 %v3157_v34, %v3919_v3 }
0x1a59   :  { %v3173_v1 = vmul.f32 %v3161_v51, %v3161_v51  ;;  %v3177_v10 = vsub.f32 %v3150_v20, %v3161_v51 }
0x1a9d   :  { %v3152_v47 = vpop.f32.mrf.mxu0 }
0x1a9e   :  { %v3153_v49 = vadd.f32 %v3152_v47, %v3125_v45 }
0x1aa0   :  { %v3158_v43 = vsel %vm105_vm0, %v3153_v49, 0.0  ;;  %v3164_v52 = vmul.f32 %v3153_v49, %v3153_v49 }
0x1aa1   :  { %3159 = vadd.xlane.f32.xlu0 %v3158_v43 }
0x1aa2   :  { %v3168_v53 = vsel %vm105_vm0, %v3164_v52, 0.0 }
0x1aa3   :  { %3169 = vadd.xlane.f32.xlu2 %v3168_v53 }
0x1aa9   :  { %3166 = vadd.xlane.f32.xlu0 %v3165_v55 }
0x1b14   :  { %v3160_v42 = vpop.xlane.xlu0 %3159 }
0x1b15   :  { %v3162_v56 = vmul.f32 %v3160_v42, %v3919_v3 }
0x1b16   :  { %v3170_v57 = vpop.xlane.xlu2 %3169 }
0x1b17   :  { %v3174_v58 = vmul.f32 %v3162_v56, %v3162_v56  ;;  %v3172_v60 = vmul.f32 %v3170_v57, %v3919_v3  ;;  %v3178_v14 = vsub.f32 %v3153_v49, %v3162_v56 }
0x1b19   :  { %v3176_v62 = vsub.f32 %v3172_v60, %v3174_v58 }
0x1b1b   :  { %v3180_v63 = vadd.f32 1e-05, %v3176_v62 }
0x1b1c   :  { %v3167_v0 = vpop.xlane.xlu0 %3166 }
0x1b1d   :  { %3565 = vrsqrt.f32 %v3180_v63  ;;  %v3171_v23 = vmul.f32 %v3167_v0, %v3919_v3  ;;  %vm3197_vm11 = vweird.f32 %v3180_v63 }
0x1b1f   :  { %v3175_v4 = vsub.f32 %v3171_v23, %v3173_v1 }
0x1b21   :  { %v3179_v61 = vadd.f32 1e-05, %v3175_v4 }
0x1b23   :  { %v3566_v6 = vpop.eup %3565  ;;  %3567 = vrsqrt.f32 %v3179_v61  ;;  %vm3187_vm14 = vweird.f32 %v3179_v61 }
0x1b24   :  { %v3192_v5 = vmul.f32 %v3566_v6, %v3180_v63  ;;  %vm3198_vm10 = vweird.f32 %v3566_v6 }
0x1b25   :  { %vm3199_vm12 = vmor %vm3197_vm11, %vm3198_vm10 }
0x1b26   :  { %v3193_v11 = vmul.f32 %v3566_v6, %v3192_v5 }
0x1b28   :  { %v3194_v2 = vmul.f32 0.5, %v3193_v11 }
0x1b29   :  { %v3568_v40 = vpop.eup %3567 }
0x1b2a   :  { %v3195_v13 = vsub.f32 1.5, %v3194_v2  ;;  %v3182_v15 = vmul.f32 %v3568_v40, %v3179_v61  ;;  %vm3188_vm13 = vweird.f32 %v3568_v40 }
0x1b2b   :  { %vm3189_vm15 = vmor %vm3187_vm14, %vm3188_vm13 }
0x1b2c   :  { %v3196_v21 = vmul.f32 %v3566_v6, %v3195_v13  ;;  %v3183_v7 = vmul.f32 %v3568_v40, %v3182_v15 }
0x1b2e   :  { %v3200_v16 = vsel %vm3199_vm12, %v3566_v6, %v3196_v21  ;;  %v3184_v3 = vmul.f32 0.5, %v3183_v7 }
0x1b2f   :  { %v3202_v18 = vmul.f32 %v3200_v16, %v3178_v14 }
0x1b30   :  { %v3185_v19 = vsub.f32 1.5, %v3184_v3 }
0x1b31   :  { %v3205_v22 = vmul.f32 %v3203_v50, %v3202_v18 }
0x1b32   :  { %v3186_v24 = vmul.f32 %v3568_v40, %v3185_v19 }
0x1b33   :  { %v3208_v25 = vadd.f32 %v3206_v17, %v3205_v22 }
0x1b34   :  { %v3190_v26 = vsel %vm3189_vm15, %v3568_v40, %v3186_v24 }
0x1b35   :  { %v3201_v28 = vmul.f32 %v3190_v26, %v3177_v10  ;;  %v3210_v30 = vadd.f32 %v3208_v25, %v4431_v27 }
0x1b37   :  { %v3204_v31 = vmul.f32 %v3203_v50, %v3201_v28  ;;  %3212 = vst.msk [vmem:[#allocation8 + $0x8] sm:$0xff] %vm105_vm0, %v3210_v30 }
0x1b39   :  { %v3207_v59 = vadd.f32 %v3206_v17, %v3204_v31 }
0x1b3b   :  { %v3209_v32 = vadd.f32 %v3207_v59, %v4415_v8 }
0x1b3d   :  { %3211 = vst.msk [vmem:[#allocation8] sm:$0xff] %vm105_vm0, %v3209_v32 }
0x1b3e   :  { %3225 = dma.vmem_to_hbm [thread:$0]  %s3218_s6, 256, %s3220_s7, [#allocation4], %s3676_s13, %s3676_s13, %s3677_s14  }
0x1b3f   :  { %3673 = dma.done.wait [#allocation4], 256  }
0x1b40   :  { %3674 = vsyncadd [#allocation4], 4294967040 }
0x1b41   :  { %3230 = vsyncpa [#allocation3], 1 }
0x1b42   :  { %3231 = vsyncpa [#allocation6], 1 }
0x1b43   :  { %3232 = vsyncpa [#allocation4], 1 }

</bundles_post_ra>
